<compile_context>
chip_gen: v6e
topology: v6e:2x2x1
jax: 0.10.0
libtpu: 0.0.40
codegen_flags: <defaults>
</compile_context>

<pallas_src>
import numpy as np
import jax
import jax.numpy as jnp
from jax.experimental import pallas as pl
from jax.experimental.pallas import tpu as pltpu


# ----------------------------- model constants -----------------------------
C_IN, C1, C2 = 3, 6, 16          # channels: input, conv1, conv2
K = 5                            # conv kernel size
H_IN = 32                        # input spatial size (square)
H_C1 = H_IN - K + 1              # 28  conv1 output size
H_P1 = H_C1 // 2                 # 14  after 2x2 pool
H_C2 = H_P1 - K + 1              # 10  conv2 output size
H_P2 = H_C2 // 2                 # 5   after 2x2 pool
D1, D2, D3 = 120, 84, 10         # MLP widths
LANE = 128                       # TPU lane width
TB = 8                           # images per grid step (multiple of 8)


# ------------------------------- fused kernel -------------------------------

def _make_kernel(tb):
    half1 = H_P1 * tb            # rows per di in the conv1 result (14*TB)
    plane = (H_P1 // 2) * tb     # rows per parity plane in a2 (7*TB)
    m2rows = H_P2 * tb           # conv2 matmul M (5*TB)

    def kernel(lhs1_ref, m1_ref, b1_ref, m2_ref, b2_ref,
               fc1_ref, bf1_ref, fc2_ref, bf2_ref, fc3_ref, bf3_ref,
               o_ref, a2_ref):
        f32 = jnp.float32

        # ---- conv1 + bias + relu + 2x2 maxpool: a single kh-fused dot ----
        # lhs1 rows are ordered (di, ip1%2, ip1//2, b); lanes are (kh, j, cin).
        r1 = jnp.dot(lhs1_ref[...], m1_ref[...],
                     preferred_element_type=f32)            # (28*TB, 256)
        m = jnp.maximum(r1[:half1, :], r1[half1:, :])        # max over di
        m = jnp.maximum(m[:, :LANE], m[:, LANE:])            # max over dj
        # a2 rows: (parity, ie, b)  -> even plane first, then odd plane.
        a2_ref[...] = jnp.maximum(m + b1_ref[...], 0.0)      # (14*TB, 128)

        # ---- conv2 + bias + relu + 2x2 maxpool: batched-M banded dots ----
        acc0 = jnp.zeros((m2rows, 2 * LANE), f32)            # di = 0
        acc1 = jnp.zeros((m2rows, 2 * LANE), f32)            # di = 1
        for s in range(K + 1):                                # s = kh + di
            start = (s % 2) * plane + (s // 2) * tb           # contiguous slice
            lhs = a2_ref[start:start + m2rows, :]             # (5*TB, 128)
            if s < K:                                         # di = 0, kh = s
                acc0 = acc0 + jnp.dot(lhs, m2_ref[s],
                                      preferred_element_type=f32)
            if s >= 1:                                        # di = 1, kh = s-1
                acc1 = acc1 + jnp.dot(lhs, m2_ref[s - 1],
                                      preferred_element_type=f32)
        mv = jnp.maximum(acc0, acc1)                          # max over di
        mv = jnp.maximum(mv[:, :LANE], mv[:, LANE:])          # max over dj
        pooled = jnp.maximum(mv + b2_ref[...], 0.0)           # (5*TB, 128), rows (ip2, b)

        # ---- MLP: fc1 as 5 aligned block dots, then fc2 / fc3 ----
        h = jnp.zeros((tb, D1), f32)
        for ip2 in range(H_P2):
            h = h + jnp.dot(pooled[ip2 * tb:(ip2 + 1) * tb, :], fc1_ref[ip2],
                            preferred_element_type=f32)
        h = jnp.maximum(h + bf1_ref[...], 0.0)
        h = jnp.maximum(jnp.dot(h, fc2_ref[...],
                                preferred_element_type=f32) + bf2_ref[...], 0.0)
        o_ref[...] = (jnp.dot(h, fc3_ref[...],
                              preferred_element_type=f32) + bf3_ref[...])

    return kernel


def _fixed_spec(shape):
    zeros = (0,) * len(shape)
    return pl.BlockSpec(shape, lambda i, _z=zeros: _z)


def convnn_forward(x_nchw, pp, tb=TB):
    assert tb % 8 == 0
    B = x_nchw.shape[0]
    nt = (B + tb - 1) // tb
    bp = nt * tb
    x = x_nchw.astype(jnp.float32)
    if bp != B:
        x = jnp.pad(x, ((0, bp - B), (0, 0), (0, 0), (0, 0)))

    # NCHW -> rows (b, i), lanes (j, cin)
    x_rows = jnp.transpose(x, (0, 2, 3, 1)).reshape(bp, H_IN, H_IN * C_IN)

    # Wrapper-side kh-concat layout for conv1: gather the 5 vertical kernel
    # rows for every (di, ip1) pooled-output row and place them in 128-lane
    # aligned blocks.  Row order per tile is (di, ip1%2, ip1//2, b) so the
    # conv1 result lands directly in the even/odd-partitioned layout conv2's
    # contiguous slices need.  (Cheap XLA glue; hoisted out of the kernel.)
    di = np.arange(2)[:, None, None, None]
    par = np.arange(2)[None, :, None, None]
    ie = np.arange(H_P1 // 2)[None, None, :, None]
    kh = np.arange(K)[None, None, None, :]
    row_idx = (4 * ie + 2 * par + di + kh).reshape(-1).astype(np.int32)  # (140,)

    g = x_rows[:, row_idx, :]                                 # (bp, 140, 96)
    g = g.reshape(bp, 2, 2, H_P1 // 2, K, H_IN * C_IN)
    g = jnp.pad(g, ((0, 0),) * 5 + ((0, LANE - H_IN * C_IN),))  # 96 -> 128 / kh block
    g = g.reshape(nt, tb, 2, 2, H_P1 // 2, K, LANE)
    g = jnp.transpose(g, (0, 2, 3, 4, 1, 5, 6))
    lhs1 = g.reshape(nt * 2 * H_P1 * tb, K * LANE)            # (nt*28*tb, 640)

    args = (lhs1, pp['m1'], pp['b1t'], pp['m2'], pp['b2t'],
            pp['fc1'], pp['bf1'], pp['fc2'], pp['bf2'], pp['fc3'], pp['bf3'])

    in_specs = [pl.BlockSpec((2 * H_P1 * tb, K * LANE), lambda i: (i, 0))] + \
               [_fixed_spec(a.shape) for a in args[1:]]
    out_specs = pl.BlockSpec((tb, LANE), lambda i: (i, 0))

    out = pl.pallas_call(
        _make_kernel(tb),
        out_shape=jax.ShapeDtypeStruct((bp, LANE), jnp.float32),
        grid=(nt,),
        in_specs=in_specs,
        out_specs=out_specs,
        scratch_shapes=[pltpu.VMEM((H_P1 * tb, LANE), jnp.float32)],  # pooled conv1
        compiler_params=pltpu.CompilerParams(
            dimension_semantics=("parallel",)),
    )(*args)
    return out[:B, :D3]


# ----------------------- one-time parameter preparation ---------------------

def prep_params(p):
    """Convert PyTorch-layout weights into the kernel's banded / pool-split /
    kh-fused matmul operands.  Called once; hoisted out of the forward pass."""
    w1 = np.asarray(p['conv1_w'], np.float32)   # (6, 3, 5, 5)  (co, cin, kh, kw)
    w2 = np.asarray(p['conv2_w'], np.float32)   # (16, 6, 5, 5)
    b1 = np.asarray(p['conv1_b'], np.float32)
    b2 = np.asarray(p['conv2_b'], np.float32)

    # conv1 kh-fused banded matrix: rows (kh-block of 128, j*3+cin),
    # cols (dj-half of 128, jp1*6+c1).
    m1 = np.zeros((K * LANE, 2 * LANE), np.float32)
    for kh_i in range(K):
        for dj in range(2):
            for jp in range(H_P1):
                for kw in range(K):
                    j = 2 * jp + dj + kw
                    m1[kh_i * LANE + j * C_IN: kh_i * LANE + (j + 1) * C_IN,
                       dj * LANE + jp * C1: dj * LANE + (jp + 1) * C1] = \
                        w1[:, :, kh_i, kw].T
    b1t = np.zeros((1, LANE), np.float32)
    for jp in range(H_P1):
        b1t[0, jp * C1:(jp + 1) * C1] = b1

    # conv2 banded matrices, one per kernel row kh (rows = a2 lanes jp1*6+c1).
    m2 = np.zeros((K, LANE, 2 * LANE), np.float32)
    for kh_i in range(K):
        for dj in range(2):
            for jp2 in range(H_P2):
                for kw in range(K):
                    jp = 2 * jp2 + dj + kw
                    m2[kh_i, jp * C1:(jp + 1) * C1,
                       dj * LANE + jp2 * C2: dj * LANE + (jp2 + 1) * C2] = \
                        w2[:, :, kh_i, kw].T
    b2t = np.zeros((1, LANE), np.float32)
    for jp2 in range(H_P2):
        b2t[0, jp2 * C2:(jp2 + 1) * C2] = b2

    # fc1: PyTorch columns are CHW-flattened; split into per-ip2 (128, D1)
    # blocks matching the pooled conv2 lane layout (jp2*16 + c2).
    fc1w = np.asarray(p['fc1_w'], np.float32).reshape(D1, C2, H_P2, H_P2)
    fc1b = np.zeros((H_P2, LANE, D1), np.float32)
    for ip2 in range(H_P2):
        for jp2 in range(H_P2):
            fc1b[ip2, jp2 * C2:(jp2 + 1) * C2, :] = fc1w[:, :, ip2, jp2].T

    # fc3 padded to 128 output lanes for unmasked stores.
    fc3 = np.zeros((D2, LANE), np.float32)
    fc3[:, :D3] = np.asarray(p['fc3_w'], np.float32).T
    bf3 = np.zeros((1, LANE), np.float32)
    bf3[0, :D3] = np.asarray(p['fc3_b'], np.float32)

    return dict(
        m1=jnp.asarray(m1), b1t=jnp.asarray(b1t),
        m2=jnp.asarray(m2), b2t=jnp.asarray(b2t),
        fc1=jnp.asarray(fc1b),
        bf1=jnp.asarray(np.asarray(p['fc1_b'], np.float32).reshape(1, D1)),
        fc2=jnp.asarray(np.asarray(p['fc2_w'], np.float32).T),
        bf2=jnp.asarray(np.asarray(p['fc2_b'], np.float32).reshape(1, D2)),
        fc3=jnp.asarray(fc3), bf3=jnp.asarray(bf3),
    )


# ----------------------------- reference (JAX) ------------------------------

def ref_forward(x_nchw, p):
    x = jnp.transpose(x_nchw, (0, 2, 3, 1))

    def conv_relu(x, w, b):
        w_hwio = jnp.transpose(w, (2, 3, 1, 0))
        y = jax.lax.conv_general_dilated(
            x, w_hwio, (1, 1), 'VALID',
            dimension_numbers=('NHWC', 'HWIO', 'NHWC'))
        return jax.nn.relu(y + b)

    def pool(y):
        return jax.lax.reduce_window(y, -jnp.inf, jax.lax.max,
                                     (1, 2, 2, 1), (1, 2, 2, 1), 'VALID')

    y = pool(conv_relu(x, p['conv1_w'], p['conv1_b']))
    y = pool(conv_relu(y, p['conv2_w'], p['conv2_b']))
    f = jnp.transpose(y, (0, 3, 1, 2)).reshape(y.shape[0], -1)   # CHW flatten
    h = jax.nn.relu(f @ p['fc1_w'].T + p['fc1_b'])
    h = jax.nn.relu(h @ p['fc2_w'].T + p['fc2_b'])
    return h @ p['fc3_w'].T + p['fc3_b']


# --------------------------- deterministic params ---------------------------

def init_params(key):
    ks = jax.random.split(key, 10)

    def uni(k, shape, fan_in):
        bound = 1.0 / np.sqrt(fan_in)
        return jax.random.uniform(k, shape, jnp.float32, -bound, bound)

    return dict(
        conv1_w=uni(ks[0], (C1, C_IN, K, K), C_IN * K * K),
        conv1_b=uni(ks[1], (C1,), C_IN * K * K),
        conv2_w=uni(ks[2], (C2, C1, K, K), C1 * K * K),
        conv2_b=uni(ks[3], (C2,), C1 * K * K),
        fc1_w=uni(ks[4], (D1, C2 * H_P2 * H_P2), C2 * H_P2 * H_P2),
        fc1_b=uni(ks[5], (D1,), C2 * H_P2 * H_P2),
        fc2_w=uni(ks[6], (D2, D1), D1),
        fc2_b=uni(ks[7], (D2,), D1),
        fc3_w=uni(ks[8], (D3, D2), D2),
        fc3_b=uni(ks[9], (D3,), D2),
    )


if __name__ == "__main__":
    key = jax.random.PRNGKey(0)
    kx, kp = jax.random.split(key)
    # PyTorch-style NCHW input; 32x32 spatial as implied by the 16*5*5 flatten.
    x = jax.random.normal(kx, (2, C_IN, H_IN, H_IN), jnp.float32)
    params = init_params(kp)
    prepped = prep_params(params)            # one-time weight prep (hoisted)

    fwd = jax.jit(convnn_forward)
    out = jax.block_until_ready(fwd(x, prepped))

    ref = ref_forward(x, params)
    assert out.shape == (2, D3)
    np.testing.assert_allclose(np.asarray(out), np.asarray(ref),
                               rtol=2e-3, atol=2e-3)
    print("KERNEL_OK")
</pallas_src>

<mosaic_0001>
module attributes {stable_mosaic.version = 11 : i64} {
  func.func @kernel(%arg0: i32, %arg1: memref<224x640xf32, #tpu.memory_space<vmem>>, %arg2: memref<640x256xf32, #tpu.memory_space<vmem>>, %arg3: memref<1x128xf32, #tpu.memory_space<vmem>>, %arg4: memref<5x128x256xf32, #tpu.memory_space<vmem>>, %arg5: memref<1x128xf32, #tpu.memory_space<vmem>>, %arg6: memref<5x128x120xf32, #tpu.memory_space<vmem>>, %arg7: memref<1x120xf32, #tpu.memory_space<vmem>>, %arg8: memref<120x84xf32, #tpu.memory_space<vmem>>, %arg9: memref<1x84xf32, #tpu.memory_space<vmem>>, %arg10: memref<84x128xf32, #tpu.memory_space<vmem>>, %arg11: memref<1x128xf32, #tpu.memory_space<vmem>>, %arg12: memref<8x128xf32, #tpu.memory_space<vmem>>, %arg13: memref<112x128xf32, #tpu.memory_space<vmem>>) attributes {dimension_semantics = [#tpu.dimension_semantics<parallel>], iteration_bounds = array<i64: 1>, scalar_prefetch = 0 : i64, scratch_operands = 1 : i64, tpu.core_type = #tpu.core_type<tc>, window_params = [{transform_indices = @transform_0, window_bounds = array<i64: 224, 640>}, {pipeline_mode = #tpu.pipeline_mode<synchronous>, transform_indices = @transform_1, window_bounds = array<i64: 640, 256>}, {pipeline_mode = #tpu.pipeline_mode<synchronous>, transform_indices = @transform_2, window_bounds = array<i64: 1, 128>}, {pipeline_mode = #tpu.pipeline_mode<synchronous>, transform_indices = @transform_3, window_bounds = array<i64: 5, 128, 256>}, {pipeline_mode = #tpu.pipeline_mode<synchronous>, transform_indices = @transform_4, window_bounds = array<i64: 1, 128>}, {pipeline_mode = #tpu.pipeline_mode<synchronous>, transform_indices = @transform_5, window_bounds = array<i64: 5, 128, 120>}, {pipeline_mode = #tpu.pipeline_mode<synchronous>, transform_indices = @transform_6, window_bounds = array<i64: 1, 120>}, {pipeline_mode = #tpu.pipeline_mode<synchronous>, transform_indices = @transform_7, window_bounds = array<i64: 120, 84>}, {pipeline_mode = #tpu.pipeline_mode<synchronous>, transform_indices = @transform_8, window_bounds = array<i64: 1, 84>}, {pipeline_mode = #tpu.pipeline_mode<synchronous>, transform_indices = @transform_9, window_bounds = array<i64: 84, 128>}, {pipeline_mode = #tpu.pipeline_mode<synchronous>, transform_indices = @transform_10, window_bounds = array<i64: 1, 128>}, {transform_indices = @transform_11, window_bounds = array<i64: 8, 128>}]} {
    %c0 = arith.constant 0 : index
    %c0_0 = arith.constant 0 : index
    %0 = vector.load %arg1[%c0, %c0_0] : memref<224x640xf32, #tpu.memory_space<vmem>>, vector<224x640xf32>
    %c0_1 = arith.constant 0 : index
    %c0_2 = arith.constant 0 : index
    %1 = vector.load %arg2[%c0_1, %c0_2] : memref<640x256xf32, #tpu.memory_space<vmem>>, vector<640x256xf32>
    %cst = arith.constant dense<0.000000e+00> : vector<224x256xf32>
    %2 = tpu.matmul %0, %1, %cst {dimension_numbers = #tpu.dot_dimension_numbers<[1], [0], [0], [1], [0, 0, 1, 1], [], []>} : vector<224x640xf32>, vector<640x256xf32>, vector<224x256xf32> -> vector<224x256xf32>
    %3 = vector.extract_strided_slice %2 {offsets = [0, 0], sizes = [112, 256], strides = [1, 1]} : vector<224x256xf32> to vector<112x256xf32>
    %4 = vector.extract_strided_slice %2 {offsets = [112, 0], sizes = [112, 256], strides = [1, 1]} : vector<224x256xf32> to vector<112x256xf32>
    %5 = arith.maximumf %3, %4 : vector<112x256xf32>
    %6 = vector.extract_strided_slice %5 {offsets = [0, 0], sizes = [112, 128], strides = [1, 1]} : vector<112x256xf32> to vector<112x128xf32>
    %7 = vector.extract_strided_slice %5 {offsets = [0, 128], sizes = [112, 128], strides = [1, 1]} : vector<112x256xf32> to vector<112x128xf32>
    %8 = arith.maximumf %6, %7 : vector<112x128xf32>
    %c0_3 = arith.constant 0 : index
    %c0_4 = arith.constant 0 : index
    %9 = vector.load %arg3[%c0_3, %c0_4] : memref<1x128xf32, #tpu.memory_space<vmem>>, vector<1x128xf32>
    %10 = vector.broadcast %9 : vector<1x128xf32> to vector<112x128xf32>
    %11 = arith.addf %8, %10 : vector<112x128xf32>
    %cst_5 = arith.constant 0.000000e+00 : f32
    %12 = vector.broadcast %cst_5 : f32 to vector<112x128xf32>
    %13 = arith.maximumf %11, %12 : vector<112x128xf32>
    %c0_6 = arith.constant 0 : index
    %c0_7 = arith.constant 0 : index
    %14 = vector.load %arg13[%c0_6, %c0_7] : memref<112x128xf32, #tpu.memory_space<vmem>>, vector<112x128xf32>
    tpu.vector_store %arg13[%c0_6, %c0_7], %13 {strides = array<i32>} : memref<112x128xf32, #tpu.memory_space<vmem>>, vector<112x128xf32>,
    %cst_8 = arith.constant 0.000000e+00 : f32
    %15 = vector.broadcast %cst_8 : f32 to vector<40x256xf32>
    %cst_9 = arith.constant 0.000000e+00 : f32
    %16 = vector.broadcast %cst_9 : f32 to vector<40x256xf32>
    %c0_10 = arith.constant 0 : index
    %c0_11 = arith.constant 0 : index
    %17 = vector.load %arg13[%c0_10, %c0_11] : memref<112x128xf32, #tpu.memory_space<vmem>>, vector<40x128xf32>
    %c0_12 = arith.constant 0 : index
    %c0_13 = arith.constant 0 : index
    %c0_14 = arith.constant 0 : index
    %18 = vector.load %arg4[%c0_12, %c0_13, %c0_14] : memref<5x128x256xf32, #tpu.memory_space<vmem>>, vector<1x128x256xf32>
    %19 = vector.shape_cast %18 : vector<1x128x256xf32> to vector<128x256xf32>
    %cst_15 = arith.constant dense<0.000000e+00> : vector<40x256xf32>
    %20 = tpu.matmul %17, %19, %cst_15 {dimension_numbers = #tpu.dot_dimension_numbers<[1], [0], [0], [1], [0, 0, 1, 1], [], []>} : vector<40x128xf32>, vector<128x256xf32>, vector<40x256xf32> -> vector<40x256xf32>
    %21 = arith.addf %15, %20 : vector<40x256xf32>
    %c56 = arith.constant 56 : index
    %c0_16 = arith.constant 0 : index
    %22 = vector.load %arg13[%c56, %c0_16] : memref<112x128xf32, #tpu.memory_space<vmem>>, vector<40x128xf32>
    %c1 = arith.constant 1 : index
    %c0_17 = arith.constant 0 : index
    %c0_18 = arith.constant 0 : index
    %23 = vector.load %arg4[%c1, %c0_17, %c0_18] : memref<5x128x256xf32, #tpu.memory_space<vmem>>, vector<1x128x256xf32>
    %24 = vector.shape_cast %23 : vector<1x128x256xf32> to vector<128x256xf32>
    %cst_19 = arith.constant dense<0.000000e+00> : vector<40x256xf32>
    %25 = tpu.matmul %22, %24, %cst_19 {dimension_numbers = #tpu.dot_dimension_numbers<[1], [0], [0], [1], [0, 0, 1, 1], [], []>} : vector<40x128xf32>, vector<128x256xf32>, vector<40x256xf32> -> vector<40x256xf32>
    %26 = arith.addf %21, %25 : vector<40x256xf32>
    %c0_20 = arith.constant 0 : index
    %c0_21 = arith.constant 0 : index
    %c0_22 = arith.constant 0 : index
    %27 = vector.load %arg4[%c0_20, %c0_21, %c0_22] : memref<5x128x256xf32, #tpu.memory_space<vmem>>, vector<1x128x256xf32>
    %28 = vector.shape_cast %27 : vector<1x128x256xf32> to vector<128x256xf32>
    %cst_23 = arith.constant dense<0.000000e+00> : vector<40x256xf32>
    %29 = tpu.matmul %22, %28, %cst_23 {dimension_numbers = #tpu.dot_dimension_numbers<[1], [0], [0], [1], [0, 0, 1, 1], [], []>} : vector<40x128xf32>, vector<128x256xf32>, vector<40x256xf32> -> vector<40x256xf32>
    %30 = arith.addf %16, %29 : vector<40x256xf32>
    %c8 = arith.constant 8 : index
    %c0_24 = arith.constant 0 : index
    %31 = vector.load %arg13[%c8, %c0_24] : memref<112x128xf32, #tpu.memory_space<vmem>>, vector<40x128xf32>
    %c2 = arith.constant 2 : index
    %c0_25 = arith.constant 0 : index
    %c0_26 = arith.constant 0 : index
    %32 = vector.load %arg4[%c2, %c0_25, %c0_26] : memref<5x128x256xf32, #tpu.memory_space<vmem>>, vector<1x128x256xf32>
    %33 = vector.shape_cast %32 : vector<1x128x256xf32> to vector<128x256xf32>
    %cst_27 = arith.constant dense<0.000000e+00> : vector<40x256xf32>
    %34 = tpu.matmul %31, %33, %cst_27 {dimension_numbers = #tpu.dot_dimension_numbers<[1], [0], [0], [1], [0, 0, 1, 1], [], []>} : vector<40x128xf32>, vector<128x256xf32>, vector<40x256xf32> -> vector<40x256xf32>
    %35 = arith.addf %26, %34 : vector<40x256xf32>
    %c1_28 = arith.constant 1 : index
    %c0_29 = arith.constant 0 : index
    %c0_30 = arith.constant 0 : index
    %36 = vector.load %arg4[%c1_28, %c0_29, %c0_30] : memref<5x128x256xf32, #tpu.memory_space<vmem>>, vector<1x128x256xf32>
    %37 = vector.shape_cast %36 : vector<1x128x256xf32> to vector<128x256xf32>
    %cst_31 = arith.constant dense<0.000000e+00> : vector<40x256xf32>
    %38 = tpu.matmul %31, %37, %cst_31 {dimension_numbers = #tpu.dot_dimension_numbers<[1], [0], [0], [1], [0, 0, 1, 1], [], []>} : vector<40x128xf32>, vector<128x256xf32>, vector<40x256xf32> -> vector<40x256xf32>
    %39 = arith.addf %30, %38 : vector<40x256xf32>
    %c64 = arith.constant 64 : index
    %c0_32 = arith.constant 0 : index
    %40 = vector.load %arg13[%c64, %c0_32] : memref<112x128xf32, #tpu.memory_space<vmem>>, vector<40x128xf32>
    %c3 = arith.constant 3 : index
    %c0_33 = arith.constant 0 : index
    %c0_34 = arith.constant 0 : index
    %41 = vector.load %arg4[%c3, %c0_33, %c0_34] : memref<5x128x256xf32, #tpu.memory_space<vmem>>, vector<1x128x256xf32>
    %42 = vector.shape_cast %41 : vector<1x128x256xf32> to vector<128x256xf32>
    %cst_35 = arith.constant dense<0.000000e+00> : vector<40x256xf32>
    %43 = tpu.matmul %40, %42, %cst_35 {dimension_numbers = #tpu.dot_dimension_numbers<[1], [0], [0], [1], [0, 0, 1, 1], [], []>} : vector<40x128xf32>, vector<128x256xf32>, vector<40x256xf32> -> vector<40x256xf32>
    %44 = arith.addf %35, %43 : vector<40x256xf32>
    %c2_36 = arith.constant 2 : index
    %c0_37 = arith.constant 0 : index
    %c0_38 = arith.constant 0 : index
    %45 = vector.load %arg4[%c2_36, %c0_37, %c0_38] : memref<5x128x256xf32, #tpu.memory_space<vmem>>, vector<1x128x256xf32>
    %46 = vector.shape_cast %45 : vector<1x128x256xf32> to vector<128x256xf32>
    %cst_39 = arith.constant dense<0.000000e+00> : vector<40x256xf32>
    %47 = tpu.matmul %40, %46, %cst_39 {dimension_numbers = #tpu.dot_dimension_numbers<[1], [0], [0], [1], [0, 0, 1, 1], [], []>} : vector<40x128xf32>, vector<128x256xf32>, vector<40x256xf32> -> vector<40x256xf32>
    %48 = arith.addf %39, %47 : vector<40x256xf32>
    %c16 = arith.constant 16 : index
    %c0_40 = arith.constant 0 : index
    %49 = vector.load %arg13[%c16, %c0_40] : memref<112x128xf32, #tpu.memory_space<vmem>>, vector<40x128xf32>
    %c4 = arith.constant 4 : index
    %c0_41 = arith.constant 0 : index
    %c0_42 = arith.constant 0 : index
    %50 = vector.load %arg4[%c4, %c0_41, %c0_42] : memref<5x128x256xf32, #tpu.memory_space<vmem>>, vector<1x128x256xf32>
    %51 = vector.shape_cast %50 : vector<1x128x256xf32> to vector<128x256xf32>
    %cst_43 = arith.constant dense<0.000000e+00> : vector<40x256xf32>
    %52 = tpu.matmul %49, %51, %cst_43 {dimension_numbers = #tpu.dot_dimension_numbers<[1], [0], [0], [1], [0, 0, 1, 1], [], []>} : vector<40x128xf32>, vector<128x256xf32>, vector<40x256xf32> -> vector<40x256xf32>
    %53 = arith.addf %44, %52 : vector<40x256xf32>
    %c3_44 = arith.constant 3 : index
    %c0_45 = arith.constant 0 : index
    %c0_46 = arith.constant 0 : index
    %54 = vector.load %arg4[%c3_44, %c0_45, %c0_46] : memref<5x128x256xf32, #tpu.memory_space<vmem>>, vector<1x128x256xf32>
    %55 = vector.shape_cast %54 : vector<1x128x256xf32> to vector<128x256xf32>
    %cst_47 = arith.constant dense<0.000000e+00> : vector<40x256xf32>
    %56 = tpu.matmul %49, %55, %cst_47 {dimension_numbers = #tpu.dot_dimension_numbers<[1], [0], [0], [1], [0, 0, 1, 1], [], []>} : vector<40x128xf32>, vector<128x256xf32>, vector<40x256xf32> -> vector<40x256xf32>
    %57 = arith.addf %48, %56 : vector<40x256xf32>
    %c72 = arith.constant 72 : index
    %c0_48 = arith.constant 0 : index
    %58 = vector.load %arg13[%c72, %c0_48] : memref<112x128xf32, #tpu.memory_space<vmem>>, vector<40x128xf32>
    %c4_49 = arith.constant 4 : index
    %c0_50 = arith.constant 0 : index
    %c0_51 = arith.constant 0 : index
    %59 = vector.load %arg4[%c4_49, %c0_50, %c0_51] : memref<5x128x256xf32, #tpu.memory_space<vmem>>, vector<1x128x256xf32>
    %60 = vector.shape_cast %59 : vector<1x128x256xf32> to vector<128x256xf32>
    %cst_52 = arith.constant dense<0.000000e+00> : vector<40x256xf32>
    %61 = tpu.matmul %58, %60, %cst_52 {dimension_numbers = #tpu.dot_dimension_numbers<[1], [0], [0], [1], [0, 0, 1, 1], [], []>} : vector<40x128xf32>, vector<128x256xf32>, vector<40x256xf32> -> vector<40x256xf32>
    %62 = arith.addf %57, %61 : vector<40x256xf32>
    %63 = arith.maximumf %53, %62 : vector<40x256xf32>
    %64 = vector.extract_strided_slice %63 {offsets = [0, 0], sizes = [40, 128], strides = [1, 1]} : vector<40x256xf32> to vector<40x128xf32>
    %65 = vector.extract_strided_slice %63 {offsets = [0, 128], sizes = [40, 128], strides = [1, 1]} : vector<40x256xf32> to vector<40x128xf32>
    %66 = arith.maximumf %64, %65 : vector<40x128xf32>
    %c0_53 = arith.constant 0 : index
    %c0_54 = arith.constant 0 : index
    %67 = vector.load %arg5[%c0_53, %c0_54] : memref<1x128xf32, #tpu.memory_space<vmem>>, vector<1x128xf32>
    %68 = vector.broadcast %67 : vector<1x128xf32> to vector<40x128xf32>
    %69 = arith.addf %66, %68 : vector<40x128xf32>
    %cst_55 = arith.constant 0.000000e+00 : f32
    %70 = vector.broadcast %cst_55 : f32 to vector<40x128xf32>
    %71 = arith.maximumf %69, %70 : vector<40x128xf32>
    %cst_56 = arith.constant 0.000000e+00 : f32
    %72 = vector.broadcast %cst_56 : f32 to vector<8x120xf32>
    %73 = vector.extract_strided_slice %71 {offsets = [0, 0], sizes = [8, 128], strides = [1, 1]} : vector<40x128xf32> to vector<8x128xf32>
    %c0_57 = arith.constant 0 : index
    %c0_58 = arith.constant 0 : index
    %c0_59 = arith.constant 0 : index
    %74 = vector.load %arg6[%c0_57, %c0_58, %c0_59] : memref<5x128x120xf32, #tpu.memory_space<vmem>>, vector<1x128x120xf32>
    %75 = vector.shape_cast %74 : vector<1x128x120xf32> to vector<128x120xf32>
    %cst_60 = arith.constant dense<0.000000e+00> : vector<8x120xf32>
    %76 = tpu.matmul %73, %75, %cst_60 {dimension_numbers = #tpu.dot_dimension_numbers<[1], [0], [0], [1], [0, 0, 1, 1], [], []>} : vector<8x128xf32>, vector<128x120xf32>, vector<8x120xf32> -> vector<8x120xf32>
    %77 = arith.addf %72, %76 : vector<8x120xf32>
    %78 = vector.extract_strided_slice %71 {offsets = [8, 0], sizes = [8, 128], strides = [1, 1]} : vector<40x128xf32> to vector<8x128xf32>
    %c1_61 = arith.constant 1 : index
    %c0_62 = arith.constant 0 : index
    %c0_63 = arith.constant 0 : index
    %79 = vector.load %arg6[%c1_61, %c0_62, %c0_63] : memref<5x128x120xf32, #tpu.memory_space<vmem>>, vector<1x128x120xf32>
    %80 = vector.shape_cast %79 : vector<1x128x120xf32> to vector<128x120xf32>
    %cst_64 = arith.constant dense<0.000000e+00> : vector<8x120xf32>
    %81 = tpu.matmul %78, %80, %cst_64 {dimension_numbers = #tpu.dot_dimension_numbers<[1], [0], [0], [1], [0, 0, 1, 1], [], []>} : vector<8x128xf32>, vector<128x120xf32>, vector<8x120xf32> -> vector<8x120xf32>
    %82 = arith.addf %77, %81 : vector<8x120xf32>
    %83 = vector.extract_strided_slice %71 {offsets = [16, 0], sizes = [8, 128], strides = [1, 1]} : vector<40x128xf32> to vector<8x128xf32>
    %c2_65 = arith.constant 2 : index
    %c0_66 = arith.constant 0 : index
    %c0_67 = arith.constant 0 : index
    %84 = vector.load %arg6[%c2_65, %c0_66, %c0_67] : memref<5x128x120xf32, #tpu.memory_space<vmem>>, vector<1x128x120xf32>
    %85 = vector.shape_cast %84 : vector<1x128x120xf32> to vector<128x120xf32>
    %cst_68 = arith.constant dense<0.000000e+00> : vector<8x120xf32>
    %86 = tpu.matmul %83, %85, %cst_68 {dimension_numbers = #tpu.dot_dimension_numbers<[1], [0], [0], [1], [0, 0, 1, 1], [], []>} : vector<8x128xf32>, vector<128x120xf32>, vector<8x120xf32> -> vector<8x120xf32>
    %87 = arith.addf %82, %86 : vector<8x120xf32>
    %88 = vector.extract_strided_slice %71 {offsets = [24, 0], sizes = [8, 128], strides = [1, 1]} : vector<40x128xf32> to vector<8x128xf32>
    %c3_69 = arith.constant 3 : index
    %c0_70 = arith.constant 0 : index
    %c0_71 = arith.constant 0 : index
    %89 = vector.load %arg6[%c3_69, %c0_70, %c0_71] : memref<5x128x120xf32, #tpu.memory_space<vmem>>, vector<1x128x120xf32>
    %90 = vector.shape_cast %89 : vector<1x128x120xf32> to vector<128x120xf32>
    %cst_72 = arith.constant dense<0.000000e+00> : vector<8x120xf32>
    %91 = tpu.matmul %88, %90, %cst_72 {dimension_numbers = #tpu.dot_dimension_numbers<[1], [0], [0], [1], [0, 0, 1, 1], [], []>} : vector<8x128xf32>, vector<128x120xf32>, vector<8x120xf32> -> vector<8x120xf32>
    %92 = arith.addf %87, %91 : vector<8x120xf32>
    %93 = vector.extract_strided_slice %71 {offsets = [32, 0], sizes = [8, 128], strides = [1, 1]} : vector<40x128xf32> to vector<8x128xf32>
    %c4_73 = arith.constant 4 : index
    %c0_74 = arith.constant 0 : index
    %c0_75 = arith.constant 0 : index
    %94 = vector.load %arg6[%c4_73, %c0_74, %c0_75] : memref<5x128x120xf32, #tpu.memory_space<vmem>>, vector<1x128x120xf32>
    %95 = vector.shape_cast %94 : vector<1x128x120xf32> to vector<128x120xf32>
    %cst_76 = arith.constant dense<0.000000e+00> : vector<8x120xf32>
    %96 = tpu.matmul %93, %95, %cst_76 {dimension_numbers = #tpu.dot_dimension_numbers<[1], [0], [0], [1], [0, 0, 1, 1], [], []>} : vector<8x128xf32>, vector<128x120xf32>, vector<8x120xf32> -> vector<8x120xf32>
    %97 = arith.addf %92, %96 : vector<8x120xf32>
    %c0_77 = arith.constant 0 : index
    %c0_78 = arith.constant 0 : index
    %98 = vector.load %arg7[%c0_77, %c0_78] : memref<1x120xf32, #tpu.memory_space<vmem>>, vector<1x120xf32>
    %99 = vector.broadcast %98 : vector<1x120xf32> to vector<8x120xf32>
    %100 = arith.addf %97, %99 : vector<8x120xf32>
    %cst_79 = arith.constant 0.000000e+00 : f32
    %101 = vector.broadcast %cst_79 : f32 to vector<8x120xf32>
    %102 = arith.maximumf %100, %101 : vector<8x120xf32>
    %c0_80 = arith.constant 0 : index
    %c0_81 = arith.constant 0 : index
    %103 = vector.load %arg8[%c0_80, %c0_81] : memref<120x84xf32, #tpu.memory_space<vmem>>, vector<120x84xf32>
    %cst_82 = arith.constant dense<0.000000e+00> : vector<8x84xf32>
    %104 = tpu.matmul %102, %103, %cst_82 {dimension_numbers = #tpu.dot_dimension_numbers<[1], [0], [0], [1], [0, 0, 1, 1], [], []>} : vector<8x120xf32>, vector<120x84xf32>, vector<8x84xf32> -> vector<8x84xf32>
    %c0_83 = arith.constant 0 : index
    %c0_84 = arith.constant 0 : index
    %105 = vector.load %arg9[%c0_83, %c0_84] : memref<1x84xf32, #tpu.memory_space<vmem>>, vector<1x84xf32>
    %106 = vector.broadcast %105 : vector<1x84xf32> to vector<8x84xf32>
    %107 = arith.addf %104, %106 : vector<8x84xf32>
    %cst_85 = arith.constant 0.000000e+00 : f32
    %108 = vector.broadcast %cst_85 : f32 to vector<8x84xf32>
    %109 = arith.maximumf %107, %108 : vector<8x84xf32>
    %c0_86 = arith.constant 0 : index
    %c0_87 = arith.constant 0 : index
    %110 = vector.load %arg10[%c0_86, %c0_87] : memref<84x128xf32, #tpu.memory_space<vmem>>, vector<84x128xf32>
    %cst_88 = arith.constant dense<0.000000e+00> : vector<8x128xf32>
    %111 = tpu.matmul %109, %110, %cst_88 {dimension_numbers = #tpu.dot_dimension_numbers<[1], [0], [0], [1], [0, 0, 1, 1], [], []>} : vector<8x84xf32>, vector<84x128xf32>, vector<8x128xf32> -> vector<8x128xf32>
    %c0_89 = arith.constant 0 : index
    %c0_90 = arith.constant 0 : index
    %112 = vector.load %arg11[%c0_89, %c0_90] : memref<1x128xf32, #tpu.memory_space<vmem>>, vector<1x128xf32>
    %113 = vector.broadcast %112 : vector<1x128xf32> to vector<8x128xf32>
    %114 = arith.addf %111, %113 : vector<8x128xf32>
    %c0_91 = arith.constant 0 : index
    %c0_92 = arith.constant 0 : index
    %115 = vector.load %arg12[%c0_91, %c0_92] : memref<8x128xf32, #tpu.memory_space<vmem>>, vector<8x128xf32>
    tpu.vector_store %arg12[%c0_91, %c0_92], %114 {strides = array<i32>} : memref<8x128xf32, #tpu.memory_space<vmem>>, vector<8x128xf32>,
    return
  }
  func.func @transform_0(%arg0: i32) -> (i32, i32) {
    %c0_i32 = arith.constant 0 : i32
    %c0_i32_0 = arith.constant 0 : i32
    return %arg0, %c0_i32 : i32, i32
  }
  func.func @transform_1(%arg0: i32) -> (i32, i32) {
    %c0_i32 = arith.constant 0 : i32
    %c0_i32_0 = arith.constant 0 : i32
    %c0_i32_1 = arith.constant 0 : i32
    return %c0_i32, %c0_i32_0 : i32, i32
  }
  func.func @transform_2(%arg0: i32) -> (i32, i32) {
    %c0_i32 = arith.constant 0 : i32
    %c0_i32_0 = arith.constant 0 : i32
    %c0_i32_1 = arith.constant 0 : i32
    return %c0_i32, %c0_i32_0 : i32, i32
  }
  func.func @transform_3(%arg0: i32) -> (i32, i32, i32) {
    %c0_i32 = arith.constant 0 : i32
    %c0_i32_0 = arith.constant 0 : i32
    %c0_i32_1 = arith.constant 0 : i32
    %c0_i32_2 = arith.constant 0 : i32
    return %c0_i32, %c0_i32_0, %c0_i32_1 : i32, i32, i32
  }
  func.func @transform_4(%arg0: i32) -> (i32, i32) {
    %c0_i32 = arith.constant 0 : i32
    %c0_i32_0 = arith.constant 0 : i32
    %c0_i32_1 = arith.constant 0 : i32
    return %c0_i32, %c0_i32_0 : i32, i32
  }
  func.func @transform_5(%arg0: i32) -> (i32, i32, i32) {
    %c0_i32 = arith.constant 0 : i32
    %c0_i32_0 = arith.constant 0 : i32
    %c0_i32_1 = arith.constant 0 : i32
    %c0_i32_2 = arith.constant 0 : i32
    return %c0_i32, %c0_i32_0, %c0_i32_1 : i32, i32, i32
  }
  func.func @transform_6(%arg0: i32) -> (i32, i32) {
    %c0_i32 = arith.constant 0 : i32
    %c0_i32_0 = arith.constant 0 : i32
    %c0_i32_1 = arith.constant 0 : i32
    return %c0_i32, %c0_i32_0 : i32, i32
  }
  func.func @transform_7(%arg0: i32) -> (i32, i32) {
    %c0_i32 = arith.constant 0 : i32
    %c0_i32_0 = arith.constant 0 : i32
    %c0_i32_1 = arith.constant 0 : i32
    return %c0_i32, %c0_i32_0 : i32, i32
  }
  func.func @transform_8(%arg0: i32) -> (i32, i32) {
    %c0_i32 = arith.constant 0 : i32
    %c0_i32_0 = arith.constant 0 : i32
    %c0_i32_1 = arith.constant 0 : i32
    return %c0_i32, %c0_i32_0 : i32, i32
  }
  func.func @transform_9(%arg0: i32) -> (i32, i32) {
    %c0_i32 = arith.constant 0 : i32
    %c0_i32_0 = arith.constant 0 : i32
    %c0_i32_1 = arith.constant 0 : i32
    return %c0_i32, %c0_i32_0 : i32, i32
  }
  func.func @transform_10(%arg0: i32) -> (i32, i32) {
    %c0_i32 = arith.constant 0 : i32
    %c0_i32_0 = arith.constant 0 : i32
    %c0_i32_1 = arith.constant 0 : i32
    return %c0_i32, %c0_i32_0 : i32, i32
  }
  func.func @transform_11(%arg0: i32) -> (i32, i32) {
    %c0_i32 = arith.constant 0 : i32
    %c0_i32_0 = arith.constant 0 : i32
    return %arg0, %c0_i32 : i32, i32
  }
}

</mosaic_0001>

<bundles_post_ra>
// kernel: convnn_forward.1
= control target key start
LH: loop header
LB: loop body
LE: loop exit
PB: predicated region body
PF: predicated region fallthrough
CT: control target
= control target key end

     0   :  { %vm3589_vm0 = vmmov 0   ;;  %vm2929_vm1 = vcmask 1043456   ;;  %vm2832_vm2 = vcmask 982016   ;;  %vm2925_vm3 = vcmask 687104   ;;  %s6690_s1 = inlined_call_operand.vmem [shape: f32[640,256], index: 1, kind: input, shape index: {}]   ;;  %s6691_s0 = inlined_call_operand.vmem [shape: f32[224,640], index: 0, kind: input, shape index: {}]   ;;  %s6692_s3 = inlined_call_operand.vmem [shape: f32[5,128,256], index: 3, kind: input, shape index: {}]   ;;  %s6693_s2 = inlined_call_operand.vmem [shape: f32[1,128], index: 2, kind: input, shape index: {}]   ;;  %s6694_s5 = inlined_call_operand.vmem [shape: f32[5,128,120], index: 5, kind: input, shape index: {}]   ;;  %s6695_s4 = inlined_call_operand.vmem [shape: f32[1,128], index: 4, kind: input, shape index: {}]   ;;  %s6696_s7 = inlined_call_operand.vmem [shape: f32[120,84], index: 7, kind: input, shape index: {}]   ;;  %s6697_s9 = inlined_call_operand.vmem [shape: f32[84,128], index: 9, kind: input, shape index: {}]   ;;  %s6698_s6 = inlined_call_operand.vmem [shape: f32[1,120], index: 6, kind: input, shape index: {}]   ;;  %s6699_s8 = inlined_call_operand.vmem [shape: f32[1,84], index: 8, kind: input, shape index: {}]   ;;  %s6700_s10 = inlined_call_operand.vmem [shape: f32[1,128], index: 10, kind: input, shape index: {}]   ;;  %s6701_s11 = inlined_call_operand.vmem [shape: f32[8,128], index: 11, kind: output, shape index: {}]  }
   0x1   :  { %v209_v0 = vld [vmem:[%s6690_s1 + $0xf8] sm:$0xff]  ;;  %v208_v2 = vld [vmem:[%s6690_s1 + $0xf0] sm:$0xff]  ;;  %v207_v4 = vld [vmem:[%s6690_s1 + $0xe8] sm:$0xff] }
   0x2   :  { %v273_v1 = vld [vmem:[%s6690_s1 + $0x2f8] sm:$0xff]  ;;  %338 = vmatprep.subr.mxu0 %v209_v0  ;;  %v272_v3 = vld [vmem:[%s6690_s1 + $0x2f0] sm:$0xff]  ;;  %v271_v5 = vld [vmem:[%s6690_s1 + $0x2e8] sm:$0xff] }
   0x3   :  { %571 = vmatprep.subr.mxu1 %v273_v1  ;;  %339 = vmatpush1.msra.mxu0 %v208_v2  ;;  %v206_v6 = vld [vmem:[%s6690_s1 + $0xe0] sm:$0xff]  ;;  %v205_v8 = vld [vmem:[%s6690_s1 + $0xd8] sm:$0xff]  ;;  %v204_v10 = vld [vmem:[%s6690_s1 + $0xd0] sm:$0xff] }
   0x4   :  { %572 = vmatpush1.msra.mxu1 %v272_v3  ;;  %v270_v7 = vld [vmem:[%s6690_s1 + $0x2e0] sm:$0xff]  ;;  %340 = vmatprep.subr.mxu0 %v207_v4  ;;  %v269_v9 = vld [vmem:[%s6690_s1 + $0x2d8] sm:$0xff]  ;;  %v268_v11 = vld [vmem:[%s6690_s1 + $0x2d0] sm:$0xff] }
   0x5   :  { %573 = vmatprep.subr.mxu1 %v271_v5  ;;  %341 = vmatpush1.msra.mxu0 %v206_v6  ;;  %v203_v12 = vld [vmem:[%s6690_s1 + $0xc8] sm:$0xff]  ;;  %v202_v14 = vld [vmem:[%s6690_s1 + $0xc0] sm:$0xff]  ;;  %v201_v16 = vld [vmem:[%s6690_s1 + $0xb8] sm:$0xff] }
   0x6   :  { %574 = vmatpush1.msra.mxu1 %v270_v7  ;;  %v267_v13 = vld [vmem:[%s6690_s1 + $0x2c8] sm:$0xff]  ;;  %342 = vmatprep.subr.mxu0 %v205_v8  ;;  %v266_v15 = vld [vmem:[%s6690_s1 + $0x2c0] sm:$0xff]  ;;  %v265_v17 = vld [vmem:[%s6690_s1 + $0x2b8] sm:$0xff] }
   0x7   :  { %575 = vmatprep.subr.mxu1 %v269_v9  ;;  %343 = vmatpush1.msra.mxu0 %v204_v10  ;;  %v200_v18 = vld [vmem:[%s6690_s1 + $0xb0] sm:$0xff]  ;;  %v199_v20 = vld [vmem:[%s6690_s1 + $0xa8] sm:$0xff]  ;;  %v198_v22 = vld [vmem:[%s6690_s1 + $0xa0] sm:$0xff] }
   0x8   :  { %576 = vmatpush1.msra.mxu1 %v268_v11  ;;  %344 = vmatprep.subr.mxu0 %v203_v12  ;;  %v264_v19 = vld [vmem:[%s6690_s1 + $0x2b0] sm:$0xff]  ;;  %v263_v21 = vld [vmem:[%s6690_s1 + $0x2a8] sm:$0xff]  ;;  %v262_v23 = vld [vmem:[%s6690_s1 + $0x2a0] sm:$0xff] }
   0x9   :  { %577 = vmatprep.subr.mxu1 %v267_v13  ;;  %345 = vmatpush1.msra.mxu0 %v202_v14  ;;  %v197_v24 = vld [vmem:[%s6690_s1 + $0x98] sm:$0xff]  ;;  %v196_v26 = vld [vmem:[%s6690_s1 + $0x90] sm:$0xff]  ;;  %v195_v28 = vld [vmem:[%s6690_s1 + $0x88] sm:$0xff] }
   0xa   :  { %578 = vmatpush1.msra.mxu1 %v266_v15  ;;  %346 = vmatprep.subr.mxu0 %v201_v16  ;;  %v261_v25 = vld [vmem:[%s6690_s1 + $0x298] sm:$0xff]  ;;  %v260_v27 = vld [vmem:[%s6690_s1 + $0x290] sm:$0xff]  ;;  %v259_v29 = vld [vmem:[%s6690_s1 + $0x288] sm:$0xff] }
   0xb   :  { %579 = vmatprep.subr.mxu1 %v265_v17  ;;  %347 = vmatpush1.msra.mxu0 %v200_v18  ;;  %v194_v30 = vld [vmem:[%s6690_s1 + $0x80] sm:$0xff]  ;;  %v193_v32 = vld [vmem:[%s6690_s1 + $0x78] sm:$0xff]  ;;  %v192_v34 = vld [vmem:[%s6690_s1 + $0x70] sm:$0xff] }
   0xc   :  { %580 = vmatpush1.msra.mxu1 %v264_v19  ;;  %348 = vmatprep.subr.mxu0 %v199_v20  ;;  %v258_v31 = vld [vmem:[%s6690_s1 + $0x280] sm:$0xff]  ;;  %v257_v33 = vld [vmem:[%s6690_s1 + $0x278] sm:$0xff]  ;;  %v256_v35 = vld [vmem:[%s6690_s1 + $0x270] sm:$0xff] }
   0xd   :  { %581 = vmatprep.subr.mxu1 %v263_v21  ;;  %349 = vmatpush1.msra.mxu0 %v198_v22  ;;  %v191_v36 = vld [vmem:[%s6690_s1 + $0x68] sm:$0xff]  ;;  %v190_v38 = vld [vmem:[%s6690_s1 + $0x60] sm:$0xff]  ;;  %v189_v40 = vld [vmem:[%s6690_s1 + $0x58] sm:$0xff] }
   0xe   :  { %582 = vmatpush1.msra.mxu1 %v262_v23  ;;  %350 = vmatprep.subr.mxu0 %v197_v24  ;;  %v255_v37 = vld [vmem:[%s6690_s1 + $0x268] sm:$0xff]  ;;  %v254_v39 = vld [vmem:[%s6690_s1 + $0x260] sm:$0xff]  ;;  %v253_v41 = vld [vmem:[%s6690_s1 + $0x258] sm:$0xff] }
   0xf   :  { %583 = vmatprep.subr.mxu1 %v261_v25  ;;  %351 = vmatpush1.msra.mxu0 %v196_v26  ;;  %v188_v42 = vld [vmem:[%s6690_s1 + $0x50] sm:$0xff]  ;;  %v187_v44 = vld [vmem:[%s6690_s1 + $0x48] sm:$0xff]  ;;  %v186_v46 = vld [vmem:[%s6690_s1 + $0x40] sm:$0xff] }
  0x10   :  { %584 = vmatpush1.msra.mxu1 %v260_v27  ;;  %352 = vmatprep.subr.mxu0 %v195_v28  ;;  %v252_v43 = vld [vmem:[%s6690_s1 + $0x250] sm:$0xff]  ;;  %v251_v45 = vld [vmem:[%s6690_s1 + $0x248] sm:$0xff]  ;;  %v250_v47 = vld [vmem:[%s6690_s1 + $0x240] sm:$0xff] }
  0x11   :  { %585 = vmatprep.subr.mxu1 %v259_v29  ;;  %353 = vmatpush1.msra.mxu0 %v194_v30  ;;  %v185_v48 = vld [vmem:[%s6690_s1 + $0x38] sm:$0xff]  ;;  %v184_v50 = vld [vmem:[%s6690_s1 + $0x30] sm:$0xff]  ;;  %v183_v52 = vld [vmem:[%s6690_s1 + $0x28] sm:$0xff] }
  0x12   :  { %586 = vmatpush1.msra.mxu1 %v258_v31  ;;  %354 = vmatprep.subr.mxu0 %v193_v32  ;;  %v249_v49 = vld [vmem:[%s6690_s1 + $0x238] sm:$0xff]  ;;  %v248_v51 = vld [vmem:[%s6690_s1 + $0x230] sm:$0xff]  ;;  %v247_v53 = vld [vmem:[%s6690_s1 + $0x228] sm:$0xff] }
  0x13   :  { %587 = vmatprep.subr.mxu1 %v257_v33  ;;  %355 = vmatpush1.msra.mxu0 %v192_v34  ;;  %v182_v54 = vld [vmem:[%s6690_s1 + $0x20] sm:$0xff]  ;;  %v181_v56 = vld [vmem:[%s6690_s1 + $0x18] sm:$0xff]  ;;  %v180_v58 = vld [vmem:[%s6690_s1 + $0x10] sm:$0xff] }
  0x14   :  { %588 = vmatpush1.msra.mxu1 %v256_v35  ;;  %356 = vmatprep.subr.mxu0 %v191_v36  ;;  %v246_v55 = vld [vmem:[%s6690_s1 + $0x220] sm:$0xff]  ;;  %v245_v57 = vld [vmem:[%s6690_s1 + $0x218] sm:$0xff]  ;;  %v244_v59 = vld [vmem:[%s6690_s1 + $0x210] sm:$0xff] }
  0x15   :  { %589 = vmatprep.subr.mxu1 %v255_v37  ;;  %357 = vmatpush1.msra.mxu0 %v190_v38  ;;  %v179_v60 = vld [vmem:[%s6690_s1 + $0x8] sm:$0xff]  ;;  %v178_v62 = vld [vmem:[%s6690_s1] sm:$0xff]  ;;  %v241_v0 = vld [vmem:[%s6690_s1 + $0x1f8] sm:$0xff] }
  0x16   :  { %590 = vmatpush1.msra.mxu1 %v254_v39  ;;  %358 = vmatprep.subr.mxu0 %v189_v40  ;;  %v243_v61 = vld [vmem:[%s6690_s1 + $0x208] sm:$0xff]  ;;  %v242_v63 = vld [vmem:[%s6690_s1 + $0x200] sm:$0xff]  ;;  %v305_v1 = vld [vmem:[%s6690_s1 + $0x3f8] sm:$0xff] }
  0x17   :  { %591 = vmatprep.subr.mxu1 %v253_v41  ;;  %359 = vmatpush1.msra.mxu0 %v188_v42  ;;  %v240_v2 = vld [vmem:[%s6690_s1 + $0x1f0] sm:$0xff]  ;;  %v239_v4 = vld [vmem:[%s6690_s1 + $0x1e8] sm:$0xff]  ;;  %v238_v6 = vld [vmem:[%s6690_s1 + $0x1e0] sm:$0xff] }
  0x18   :  { %592 = vmatpush1.msra.mxu1 %v252_v43  ;;  %360 = vmatprep.subr.mxu0 %v187_v44  ;;  %v304_v3 = vld [vmem:[%s6690_s1 + $0x3f0] sm:$0xff]  ;;  %v303_v5 = vld [vmem:[%s6690_s1 + $0x3e8] sm:$0xff]  ;;  %v302_v7 = vld [vmem:[%s6690_s1 + $0x3e0] sm:$0xff] }
  0x19   :  { %593 = vmatprep.subr.mxu1 %v251_v45  ;;  %361 = vmatpush1.msra.mxu0 %v186_v46  ;;  %v237_v8 = vld [vmem:[%s6690_s1 + $0x1d8] sm:$0xff]  ;;  %v236_v10 = vld [vmem:[%s6690_s1 + $0x1d0] sm:$0xff]  ;;  %v235_v12 = vld [vmem:[%s6690_s1 + $0x1c8] sm:$0xff] }
  0x1a   :  { %594 = vmatpush1.msra.mxu1 %v250_v47  ;;  %362 = vmatprep.subr.mxu0 %v185_v48  ;;  %v301_v9 = vld [vmem:[%s6690_s1 + $0x3d8] sm:$0xff]  ;;  %v300_v11 = vld [vmem:[%s6690_s1 + $0x3d0] sm:$0xff]  ;;  %v299_v13 = vld [vmem:[%s6690_s1 + $0x3c8] sm:$0xff] }
  0x1b   :  { %595 = vmatprep.subr.mxu1 %v249_v49  ;;  %363 = vmatpush1.msra.mxu0 %v184_v50  ;;  %v234_v14 = vld [vmem:[%s6690_s1 + $0x1c0] sm:$0xff]  ;;  %v233_v16 = vld [vmem:[%s6690_s1 + $0x1b8] sm:$0xff]  ;;  %v232_v18 = vld [vmem:[%s6690_s1 + $0x1b0] sm:$0xff] }
  0x1c   :  { %596 = vmatpush1.msra.mxu1 %v248_v51  ;;  %364 = vmatprep.subr.mxu0 %v183_v52  ;;  %v298_v15 = vld [vmem:[%s6690_s1 + $0x3c0] sm:$0xff]  ;;  %v297_v17 = vld [vmem:[%s6690_s1 + $0x3b8] sm:$0xff]  ;;  %v296_v19 = vld [vmem:[%s6690_s1 + $0x3b0] sm:$0xff] }
  0x1d   :  { %597 = vmatprep.subr.mxu1 %v247_v53  ;;  %365 = vmatpush1.msra.mxu0 %v182_v54  ;;  %v231_v20 = vld [vmem:[%s6690_s1 + $0x1a8] sm:$0xff]  ;;  %v230_v22 = vld [vmem:[%s6690_s1 + $0x1a0] sm:$0xff]  ;;  %v229_v24 = vld [vmem:[%s6690_s1 + $0x198] sm:$0xff] }
  0x1e   :  { %598 = vmatpush1.msra.mxu1 %v246_v55  ;;  %366 = vmatprep.subr.mxu0 %v181_v56  ;;  %v295_v21 = vld [vmem:[%s6690_s1 + $0x3a8] sm:$0xff]  ;;  %v294_v23 = vld [vmem:[%s6690_s1 + $0x3a0] sm:$0xff]  ;;  %v293_v25 = vld [vmem:[%s6690_s1 + $0x398] sm:$0xff] }
  0x1f   :  { %599 = vmatprep.subr.mxu1 %v245_v57  ;;  %367 = vmatpush1.msra.mxu0 %v180_v58  ;;  %v228_v26 = vld [vmem:[%s6690_s1 + $0x190] sm:$0xff]  ;;  %v227_v28 = vld [vmem:[%s6690_s1 + $0x188] sm:$0xff]  ;;  %v226_v30 = vld [vmem:[%s6690_s1 + $0x180] sm:$0xff] }
  0x20   :  { %600 = vmatpush1.msra.mxu1 %v244_v59  ;;  %368 = vmatprep.subr.mxu0 %v179_v60  ;;  %v292_v27 = vld [vmem:[%s6690_s1 + $0x390] sm:$0xff]  ;;  %v291_v29 = vld [vmem:[%s6690_s1 + $0x388] sm:$0xff]  ;;  %v290_v31 = vld [vmem:[%s6690_s1 + $0x380] sm:$0xff] }
  0x21   :  { %601 = vmatprep.subr.mxu1 %v243_v61  ;;  %369 = vmatpush1.msra.mxu0 %v178_v62  ;;  %v225_v32 = vld [vmem:[%s6690_s1 + $0x178] sm:$0xff]  ;;  %v224_v34 = vld [vmem:[%s6690_s1 + $0x170] sm:$0xff]  ;;  %v223_v36 = vld [vmem:[%s6690_s1 + $0x168] sm:$0xff] }
  0x22   :  { %602 = vmatpush1.msra.mxu1 %v242_v63  ;;  %370 = vmatprep.subr.mxu0 %v241_v0  ;;  %v289_v33 = vld [vmem:[%s6690_s1 + $0x378] sm:$0xff]  ;;  %v288_v35 = vld [vmem:[%s6690_s1 + $0x370] sm:$0xff]  ;;  %v287_v37 = vld [vmem:[%s6690_s1 + $0x368] sm:$0xff] }
  0x23   :  { %603 = vmatprep.subr.mxu1 %v305_v1  ;;  %371 = vmatpush2.msra.mxu0 %v240_v2  ;;  %v222_v38 = vld [vmem:[%s6690_s1 + $0x160] sm:$0xff]  ;;  %v221_v40 = vld [vmem:[%s6690_s1 + $0x158] sm:$0xff]  ;;  %v220_v42 = vld [vmem:[%s6690_s1 + $0x150] sm:$0xff] }
  0x24   :  { %604 = vmatpush2.msra.mxu1 %v304_v3  ;;  %372 = vmatprep.subr.mxu0 %v239_v4  ;;  %v286_v39 = vld [vmem:[%s6690_s1 + $0x360] sm:$0xff]  ;;  %v285_v41 = vld [vmem:[%s6690_s1 + $0x358] sm:$0xff]  ;;  %v284_v43 = vld [vmem:[%s6690_s1 + $0x350] sm:$0xff] }
  0x25   :  { %605 = vmatprep.subr.mxu1 %v303_v5  ;;  %373 = vmatpush2.msra.mxu0 %v238_v6  ;;  %v219_v44 = vld [vmem:[%s6690_s1 + $0x148] sm:$0xff]  ;;  %v218_v46 = vld [vmem:[%s6690_s1 + $0x140] sm:$0xff]  ;;  %v217_v48 = vld [vmem:[%s6690_s1 + $0x138] sm:$0xff] }
  0x26   :  { %606 = vmatpush2.msra.mxu1 %v302_v7  ;;  %374 = vmatprep.subr.mxu0 %v237_v8  ;;  %v283_v45 = vld [vmem:[%s6690_s1 + $0x348] sm:$0xff]  ;;  %v282_v47 = vld [vmem:[%s6690_s1 + $0x340] sm:$0xff]  ;;  %v281_v49 = vld [vmem:[%s6690_s1 + $0x338] sm:$0xff] }
  0x27   :  { %607 = vmatprep.subr.mxu1 %v301_v9  ;;  %375 = vmatpush2.msra.mxu0 %v236_v10  ;;  %v216_v50 = vld [vmem:[%s6690_s1 + $0x130] sm:$0xff]  ;;  %v215_v52 = vld [vmem:[%s6690_s1 + $0x128] sm:$0xff]  ;;  %v214_v54 = vld [vmem:[%s6690_s1 + $0x120] sm:$0xff] }
  0x28   :  { %608 = vmatpush2.msra.mxu1 %v300_v11  ;;  %376 = vmatprep.subr.mxu0 %v235_v12  ;;  %v280_v51 = vld [vmem:[%s6690_s1 + $0x330] sm:$0xff]  ;;  %v279_v53 = vld [vmem:[%s6690_s1 + $0x328] sm:$0xff]  ;;  %v278_v55 = vld [vmem:[%s6690_s1 + $0x320] sm:$0xff] }
  0x29   :  { %609 = vmatprep.subr.mxu1 %v299_v13  ;;  %377 = vmatpush2.msra.mxu0 %v234_v14  ;;  %v213_v56 = vld [vmem:[%s6690_s1 + $0x118] sm:$0xff]  ;;  %v212_v58 = vld [vmem:[%s6690_s1 + $0x110] sm:$0xff]  ;;  %v211_v60 = vld [vmem:[%s6690_s1 + $0x108] sm:$0xff] }
  0x2a   :  { %610 = vmatpush2.msra.mxu1 %v298_v15  ;;  %378 = vmatprep.subr.mxu0 %v233_v16  ;;  %v277_v57 = vld [vmem:[%s6690_s1 + $0x318] sm:$0xff]  ;;  %v276_v59 = vld [vmem:[%s6690_s1 + $0x310] sm:$0xff]  ;;  %v275_v61 = vld [vmem:[%s6690_s1 + $0x308] sm:$0xff] }
  0x2b   :  { %611 = vmatprep.subr.mxu1 %v297_v17  ;;  %379 = vmatpush2.msra.mxu0 %v232_v18  ;;  %v210_v62 = vld [vmem:[%s6690_s1 + $0x100] sm:$0xff]  ;;  %v39_v63 = vld [vmem:[%s6691_s0 + $0x8] sm:$0xff]  ;;  %v41_v1 = vld [vmem:[%s6691_s0 + $0x18] sm:$0xff] }
  0x2c   :  { %612 = vmatpush2.msra.mxu1 %v296_v19  ;;  %380 = vmatprep.subr.mxu0 %v231_v20  ;;  %v274_v0 = vld [vmem:[%s6690_s1 + $0x300] sm:$0xff]  ;;  %v40_v3 = vld [vmem:[%s6691_s0 + $0x10] sm:$0xff]  ;;  %v337_v4 = vld [vmem:[%s6690_s1 + $0x4f8] sm:$0xff] }
  0x2d   :  { %613 = vmatprep.subr.mxu1 %v295_v21  ;;  %381 = vmatpush2.msra.mxu0 %v230_v22  ;;  %v38_v2 = vld [vmem:[%s6691_s0] sm:$0xff]  ;;  %v44_v5 = vld [vmem:[%s6691_s0 + $0x30] sm:$0xff]  ;;  %v335_v8 = vld [vmem:[%s6690_s1 + $0x4e8] sm:$0xff] }
  0x2e   :  { %614 = vmatpush2.msra.mxu1 %v294_v23  ;;  %382 = vmatprep.subr.mxu0 %v229_v24  ;;  %v336_v6 = vld [vmem:[%s6690_s1 + $0x4f0] sm:$0xff]  ;;  %v46_v7 = vld [vmem:[%s6691_s0 + $0x40] sm:$0xff]  ;;  %v43_v9 = vld [vmem:[%s6691_s0 + $0x28] sm:$0xff] }
  0x2f   :  { %615 = vmatprep.subr.mxu1 %v293_v25  ;;  %383 = vmatpush2.msra.mxu0 %v228_v26  ;;  %v45_v10 = vld [vmem:[%s6691_s0 + $0x38] sm:$0xff]  ;;  %v51_v12 = vld [vmem:[%s6691_s0 + $0x68] sm:$0xff]  ;;  %v334_v13 = vld [vmem:[%s6690_s1 + $0x4e0] sm:$0xff] }
  0x30   :  { %616 = vmatpush2.msra.mxu1 %v292_v27  ;;  %384 = vmatprep.subr.mxu0 %v227_v28  ;;  %v49_v11 = vld [vmem:[%s6691_s0 + $0x58] sm:$0xff]  ;;  %v48_v15 = vld [vmem:[%s6691_s0 + $0x50] sm:$0xff]  ;;  %v50_v16 = vld [vmem:[%s6691_s0 + $0x60] sm:$0xff] }
  0x31   :  { %617 = vmatprep.subr.mxu1 %v291_v29  ;;  %385 = vmatpush2.msra.mxu0 %v226_v30  ;;  %v333_v14 = vld [vmem:[%s6690_s1 + $0x4d8] sm:$0xff]  ;;  %v54_v17 = vld [vmem:[%s6691_s0 + $0x80] sm:$0xff]  ;;  %v56_v18 = vld [vmem:[%s6691_s0 + $0x90] sm:$0xff] }
  0x32   :  { %618 = vmatpush2.msra.mxu1 %v290_v31  ;;  %386 = vmatprep.subr.mxu0 %v225_v32  ;;  %v332_v19 = vld [vmem:[%s6690_s1 + $0x4d0] sm:$0xff]  ;;  %v331_v20 = vld [vmem:[%s6690_s1 + $0x4c8] sm:$0xff]  ;;  %v53_v21 = vld [vmem:[%s6691_s0 + $0x78] sm:$0xff] }
  0x33   :  { %619 = vmatprep.subr.mxu1 %v289_v33  ;;  %387 = vmatpush2.msra.mxu0 %v224_v34  ;;  %v55_v22 = vld [vmem:[%s6691_s0 + $0x88] sm:$0xff]  ;;  %v61_v24 = vld [vmem:[%s6691_s0 + $0xb8] sm:$0xff]  ;;  %v330_v25 = vld [vmem:[%s6690_s1 + $0x4c0] sm:$0xff] }
  0x34   :  { %620 = vmatpush2.msra.mxu1 %v288_v35  ;;  %388 = vmatprep.subr.mxu0 %v223_v36  ;;  %v59_v23 = vld [vmem:[%s6691_s0 + $0xa8] sm:$0xff]  ;;  %v329_v26 = vld [vmem:[%s6690_s1 + $0x4b8] sm:$0xff]  ;;  %v58_v27 = vld [vmem:[%s6691_s0 + $0xa0] sm:$0xff] }
  0x35   :  { %621 = vmatprep.subr.mxu1 %v287_v37  ;;  %389 = vmatpush2.msra.mxu0 %v222_v38  ;;  %v60_v28 = vld [vmem:[%s6691_s0 + $0xb0] sm:$0xff]  ;;  %v66_v30 = vld [vmem:[%s6691_s0 + $0xe0] sm:$0xff]  ;;  %v327_v32 = vld [vmem:[%s6690_s1 + $0x4a8] sm:$0xff] }
  0x36   :  { %622 = vmatpush2.msra.mxu1 %v286_v39  ;;  %390 = vmatprep.subr.mxu0 %v221_v40  ;;  %v64_v29 = vld [vmem:[%s6691_s0 + $0xd0] sm:$0xff]  ;;  %v63_v33 = vld [vmem:[%s6691_s0 + $0xc8] sm:$0xff]  ;;  %v65_v34 = vld [vmem:[%s6691_s0 + $0xd8] sm:$0xff] }
  0x37   :  { %623 = vmatprep.subr.mxu1 %v285_v41  ;;  %391 = vmatpush2.msra.mxu0 %v220_v42  ;;  %v328_v31 = vld [vmem:[%s6690_s1 + $0x4b0] sm:$0xff]  ;;  %v69_v35 = vld [vmem:[%s6691_s0 + $0xf8] sm:$0xff]  ;;  %v71_v36 = vld [vmem:[%s6691_s0 + $0x108] sm:$0xff] }
  0x38   :  { %624 = vmatpush2.msra.mxu1 %v284_v43  ;;  %392 = vmatprep.subr.mxu0 %v219_v44  ;;  %v326_v37 = vld [vmem:[%s6690_s1 + $0x4a0] sm:$0xff]  ;;  %v325_v38 = vld [vmem:[%s6690_s1 + $0x498] sm:$0xff]  ;;  %v68_v39 = vld [vmem:[%s6691_s0 + $0xf0] sm:$0xff] }
  0x39   :  { %625 = vmatprep.subr.mxu1 %v283_v45  ;;  %393 = vmatpush2.msra.mxu0 %v218_v46  ;;  %v70_v40 = vld [vmem:[%s6691_s0 + $0x100] sm:$0xff]  ;;  %v76_v42 = vld [vmem:[%s6691_s0 + $0x130] sm:$0xff]  ;;  %v323_v44 = vld [vmem:[%s6690_s1 + $0x488] sm:$0xff] }
  0x3a   :  { %626 = vmatpush2.msra.mxu1 %v282_v47  ;;  %394 = vmatprep.subr.mxu0 %v217_v48  ;;  %v74_v41 = vld [vmem:[%s6691_s0 + $0x120] sm:$0xff]  ;;  %v324_v43 = vld [vmem:[%s6690_s1 + $0x490] sm:$0xff]  ;;  %v73_v45 = vld [vmem:[%s6691_s0 + $0x118] sm:$0xff] }
  0x3b   :  { %627 = vmatprep.subr.mxu1 %v281_v49  ;;  %395 = vmatpush2.msra.mxu0 %v216_v50  ;;  %v75_v46 = vld [vmem:[%s6691_s0 + $0x128] sm:$0xff]  ;;  %v81_v48 = vld [vmem:[%s6691_s0 + $0x158] sm:$0xff]  ;;  %v322_v49 = vld [vmem:[%s6690_s1 + $0x480] sm:$0xff] }
  0x3c   :  { %628 = vmatpush2.msra.mxu1 %v280_v51  ;;  %396 = vmatprep.subr.mxu0 %v215_v52  ;;  %v79_v47 = vld [vmem:[%s6691_s0 + $0x148] sm:$0xff]  ;;  %v321_v50 = vld [vmem:[%s6690_s1 + $0x478] sm:$0xff]  ;;  %v78_v51 = vld [vmem:[%s6691_s0 + $0x140] sm:$0xff] }
  0x3d   :  { %629 = vmatprep.subr.mxu1 %v279_v53  ;;  %397 = vmatpush2.msra.mxu0 %v214_v54  ;;  %v80_v52 = vld [vmem:[%s6691_s0 + $0x150] sm:$0xff]  ;;  %v86_v54 = vld [vmem:[%s6691_s0 + $0x180] sm:$0xff] }
  0x3e   :  { %630 = vmatpush2.msra.mxu1 %v278_v55  ;;  %398 = vmatprep.subr.mxu0 %v213_v56  ;;  %v84_v53 = vld [vmem:[%s6691_s0 + $0x170] sm:$0xff]  ;;  %v319_v56 = vld [vmem:[%s6690_s1 + $0x468] sm:$0xff] }
  0x3f   :  { %631 = vmatprep.subr.mxu1 %v277_v57  ;;  %399 = vmatpush2.msra.mxu0 %v212_v58  ;;  %v320_v55 = vld [vmem:[%s6690_s1 + $0x470] sm:$0xff]  ;;  %v83_v57 = vld [vmem:[%s6691_s0 + $0x168] sm:$0xff]  ;;  %v85_v58 = vld [vmem:[%s6691_s0 + $0x178] sm:$0xff] }
  0x40   :  { %632 = vmatpush2.msra.mxu1 %v276_v59  ;;  %400 = vmatprep.subr.mxu0 %v211_v60  ;;  %v89_v59 = vld [vmem:[%s6691_s0 + $0x198] sm:$0xff]  ;;  %v91_v60 = vld [vmem:[%s6691_s0 + $0x1a8] sm:$0xff] }
  0x41   :  { %633 = vmatprep.subr.mxu1 %v275_v61  ;;  %401 = vmatpush2.msra.mxu0 %v210_v62  ;;  %v318_v61 = vld [vmem:[%s6690_s1 + $0x460] sm:$0xff]  ;;  %v317_v62 = vld [vmem:[%s6690_s1 + $0x458] sm:$0xff] }
  0x42   :  { %402 = vmatprep.mubr.f32.mxu0 %v39_v63  ;;  %634 = vmatpush2.msra.mxu1 %v274_v0  ;;  %v88_v63 = vld [vmem:[%s6691_s0 + $0x190] sm:$0xff]  ;;  %v90_v0 = vld [vmem:[%s6691_s0 + $0x1a0] sm:$0xff] }
  0x43   :  { %635 = vmatprep.mubr.f32.mxu1 %v41_v1  ;;  %403 = vmatmul.mubr.f32.vlgmr.msra.gmra.mxu0 %v38_v2  ;;  %v94_v1 = vld [vmem:[%s6691_s0 + $0x1c0] sm:$0xff]  ;;  %v96_v2 = vld [vmem:[%s6691_s0 + $0x1d0] sm:$0xff] }
  0x44   :  { %636 = vmatmul.mubr.f32.vlgmr.msra.gmra.mxu1 %v40_v3  ;;  %804 = vmatprep.subr.mxu0 %v337_v4  ;;  %v316_v3 = vld [vmem:[%s6690_s1 + $0x450] sm:$0xff]  ;;  %v315_v4 = vld [vmem:[%s6690_s1 + $0x448] sm:$0xff] }
  0x45   :  { %408 = vmatprep.mubr.f32.mxu0 %v44_v5  ;;  %805 = vmatpush1.msra.mxu0 %v336_v6  ;;  %v93_v5 = vld [vmem:[%s6691_s0 + $0x1b8] sm:$0xff]  ;;  %v95_v6 = vld [vmem:[%s6691_s0 + $0x1c8] sm:$0xff] }
  0x46   :  { %641 = vmatprep.mubr.f32.mxu1 %v46_v7  ;;  %806 = vmatprep.subr.mxu0 %v335_v8  ;;  %v99_v7 = vld [vmem:[%s6691_s0 + $0x1e8] sm:$0xff]  ;;  %v101_v8 = vld [vmem:[%s6691_s0 + $0x1f8] sm:$0xff] }
  0x47   :  { %409 = vmatmul.mubr.f32.gmra.mxu0 %v43_v9  ;;  %v314_v9 = vld [vmem:[%s6690_s1 + $0x440] sm:$0xff] }
  0x48   :  { %642 = vmatmul.mubr.f32.gmra.mxu1 %v45_v10  ;;  %414 = vmatprep.mubr.f32.mxu0 %v49_v11  ;;  %v313_v10 = vld [vmem:[%s6690_s1 + $0x438] sm:$0xff]  ;;  %v98_v11 = vld [vmem:[%s6691_s0 + $0x1e0] sm:$0xff] }
  0x49   :  { %647 = vmatprep.mubr.f32.mxu1 %v51_v12  ;;  %807 = vmatpush1.msra.mxu0 %v334_v13  ;;  %v100_v12 = vld [vmem:[%s6691_s0 + $0x1f0] sm:$0xff] }
  0x4a   :  { %808 = vmatprep.subr.mxu0 %v333_v14  ;;  %v104_v13 = vld [vmem:[%s6691_s0 + $0x210] sm:$0xff]  ;;  %v106_v14 = vld [vmem:[%s6691_s0 + $0x220] sm:$0xff] }
  0x4b   :  { %415 = vmatmul.mubr.f32.gmra.mxu0 %v48_v15  ;;  %v312_v15 = vld [vmem:[%s6690_s1 + $0x430] sm:$0xff] }
  0x4c   :  { %648 = vmatmul.mubr.f32.gmra.mxu1 %v50_v16  ;;  %420 = vmatprep.mubr.f32.mxu0 %v54_v17  ;;  %v311_v16 = vld [vmem:[%s6690_s1 + $0x428] sm:$0xff] }
  0x4d   :  { %653 = vmatprep.mubr.f32.mxu1 %v56_v18  ;;  %809 = vmatpush1.msra.mxu0 %v332_v19  ;;  %v103_v17 = vld [vmem:[%s6691_s0 + $0x208] sm:$0xff]  ;;  %v105_v18 = vld [vmem:[%s6691_s0 + $0x218] sm:$0xff] }
  0x4e   :  { %810 = vmatprep.subr.mxu0 %v331_v20  ;;  %v109_v19 = vld [vmem:[%s6691_s0 + $0x238] sm:$0xff]  ;;  %v111_v20 = vld [vmem:[%s6691_s0 + $0x248] sm:$0xff] }
  0x4f   :  { %421 = vmatmul.mubr.f32.gmra.mxu0 %v53_v21  ;;  %v310_v21 = vld [vmem:[%s6690_s1 + $0x420] sm:$0xff] }
  0x50   :  { %654 = vmatmul.mubr.f32.gmra.mxu1 %v55_v22  ;;  %426 = vmatprep.mubr.f32.mxu0 %v59_v23  ;;  %v309_v22 = vld [vmem:[%s6690_s1 + $0x418] sm:$0xff]  ;;  %v108_v23 = vld [vmem:[%s6691_s0 + $0x230] sm:$0xff] }
  0x51   :  { %659 = vmatprep.mubr.f32.mxu1 %v61_v24  ;;  %811 = vmatpush1.msra.mxu0 %v330_v25  ;;  %v110_v24 = vld [vmem:[%s6691_s0 + $0x240] sm:$0xff] }
  0x52   :  { %812 = vmatprep.subr.mxu0 %v329_v26  ;;  %v114_v25 = vld [vmem:[%s6691_s0 + $0x260] sm:$0xff]  ;;  %v116_v26 = vld [vmem:[%s6691_s0 + $0x270] sm:$0xff] }
  0x53   :  { %427 = vmatmul.mubr.f32.gmra.mxu0 %v58_v27  ;;  %v308_v27 = vld [vmem:[%s6690_s1 + $0x410] sm:$0xff] }
  0x54   :  { %660 = vmatmul.mubr.f32.gmra.mxu1 %v60_v28  ;;  %432 = vmatprep.mubr.f32.mxu0 %v64_v29  ;;  %v307_v28 = vld [vmem:[%s6690_s1 + $0x408] sm:$0xff]  ;;  %v113_v29 = vld [vmem:[%s6691_s0 + $0x258] sm:$0xff] }
  0x55   :  { %665 = vmatprep.mubr.f32.mxu1 %v66_v30  ;;  %813 = vmatpush1.msra.mxu0 %v328_v31  ;;  %v115_v30 = vld [vmem:[%s6691_s0 + $0x268] sm:$0xff] }
  0x56   :  { %814 = vmatprep.subr.mxu0 %v327_v32  ;;  %v119_v31 = vld [vmem:[%s6691_s0 + $0x288] sm:$0xff]  ;;  %v121_v32 = vld [vmem:[%s6691_s0 + $0x298] sm:$0xff] }
  0x57   :  { %433 = vmatmul.mubr.f32.gmra.mxu0 %v63_v33  ;;  %v306_v33 = vld [vmem:[%s6690_s1 + $0x400] sm:$0xff] }
  0x58   :  { %666 = vmatmul.mubr.f32.gmra.mxu1 %v65_v34  ;;  %438 = vmatprep.mubr.f32.mxu0 %v69_v35  ;;  %v118_v34 = vld [vmem:[%s6691_s0 + $0x280] sm:$0xff]  ;;  %v120_v35 = vld [vmem:[%s6691_s0 + $0x290] sm:$0xff] }
  0x59   :  { %671 = vmatprep.mubr.f32.mxu1 %v71_v36  ;;  %815 = vmatpush1.msra.mxu0 %v326_v37  ;;  %v124_v36 = vld [vmem:[%s6691_s0 + $0x2b0] sm:$0xff]  ;;  %v126_v37 = vld [vmem:[%s6691_s0 + $0x2c0] sm:$0xff] }
  0x5a   :  { %816 = vmatprep.subr.mxu0 %v325_v38  ;;  %v123_v38 = vld [vmem:[%s6691_s0 + $0x2a8] sm:$0xff] }
  0x5b   :  { %439 = vmatmul.mubr.f32.gmra.mxu0 %v68_v39  ;;  %v125_v39 = vld [vmem:[%s6691_s0 + $0x2b8] sm:$0xff] }
  0x5c   :  { %672 = vmatmul.mubr.f32.gmra.mxu1 %v70_v40  ;;  %444 = vmatprep.mubr.f32.mxu0 %v74_v41  ;;  %v129_v40 = vld [vmem:[%s6691_s0 + $0x2d8] sm:$0xff]  ;;  %v131_v41 = vld [vmem:[%s6691_s0 + $0x2e8] sm:$0xff] }
  0x5d   :  { %677 = vmatprep.mubr.f32.mxu1 %v76_v42  ;;  %817 = vmatpush1.msra.mxu0 %v324_v43  ;;  %v128_v42 = vld [vmem:[%s6691_s0 + $0x2d0] sm:$0xff]  ;;  %v130_v43 = vld [vmem:[%s6691_s0 + $0x2e0] sm:$0xff] }
  0x5e   :  { %818 = vmatprep.subr.mxu0 %v323_v44  ;;  %v134_v44 = vld [vmem:[%s6691_s0 + $0x300] sm:$0xff] }
  0x5f   :  { %445 = vmatmul.mubr.f32.gmra.mxu0 %v73_v45  ;;  %v136_v45 = vld [vmem:[%s6691_s0 + $0x310] sm:$0xff] }
  0x60   :  { %678 = vmatmul.mubr.f32.gmra.mxu1 %v75_v46  ;;  %450 = vmatprep.mubr.f32.mxu0 %v79_v47  ;;  %v133_v46 = vld [vmem:[%s6691_s0 + $0x2f8] sm:$0xff]  ;;  %v135_v47 = vld [vmem:[%s6691_s0 + $0x308] sm:$0xff] }
  0x61   :  { %683 = vmatprep.mubr.f32.mxu1 %v81_v48  ;;  %819 = vmatpush1.msra.mxu0 %v322_v49  ;;  %v139_v48 = vld [vmem:[%s6691_s0 + $0x328] sm:$0xff]  ;;  %v141_v49 = vld [vmem:[%s6691_s0 + $0x338] sm:$0xff] }
  0x62   :  { %820 = vmatprep.subr.mxu0 %v321_v50  ;;  %v138_v50 = vld [vmem:[%s6691_s0 + $0x320] sm:$0xff] }
  0x63   :  { %451 = vmatmul.mubr.f32.gmra.mxu0 %v78_v51  ;;  %v140_v51 = vld [vmem:[%s6691_s0 + $0x330] sm:$0xff] }
  0x64   :  { %684 = vmatmul.mubr.f32.gmra.mxu1 %v80_v52  ;;  %456 = vmatprep.mubr.f32.mxu0 %v84_v53  ;;  %v144_v52 = vld [vmem:[%s6691_s0 + $0x350] sm:$0xff]  ;;  %v146_v53 = vld [vmem:[%s6691_s0 + $0x360] sm:$0xff] }
  0x65   :  { %689 = vmatprep.mubr.f32.mxu1 %v86_v54  ;;  %821 = vmatpush1.msra.mxu0 %v320_v55  ;;  %v143_v54 = vld [vmem:[%s6691_s0 + $0x348] sm:$0xff]  ;;  %v145_v55 = vld [vmem:[%s6691_s0 + $0x358] sm:$0xff] }
  0x66   :  { %822 = vmatprep.subr.mxu0 %v319_v56  ;;  %v149_v56 = vld [vmem:[%s6691_s0 + $0x378] sm:$0xff] }
  0x67   :  { %457 = vmatmul.mubr.f32.gmra.mxu0 %v83_v57  ;;  %v151_v57 = vld [vmem:[%s6691_s0 + $0x388] sm:$0xff] }
  0x68   :  { %690 = vmatmul.mubr.f32.gmra.mxu1 %v85_v58  ;;  %462 = vmatprep.mubr.f32.mxu0 %v89_v59  ;;  %v148_v58 = vld [vmem:[%s6691_s0 + $0x370] sm:$0xff]  ;;  %v150_v59 = vld [vmem:[%s6691_s0 + $0x380] sm:$0xff] }
  0x69   :  { %695 = vmatprep.mubr.f32.mxu1 %v91_v60  ;;  %823 = vmatpush1.msra.mxu0 %v318_v61  ;;  %v154_v60 = vld [vmem:[%s6691_s0 + $0x3a0] sm:$0xff]  ;;  %v156_v61 = vld [vmem:[%s6691_s0 + $0x3b0] sm:$0xff] }
  0x6a   :  { %824 = vmatprep.subr.mxu0 %v317_v62  ;;  %v153_v62 = vld [vmem:[%s6691_s0 + $0x398] sm:$0xff] }
  0x6b   :  { %463 = vmatmul.mubr.f32.gmra.mxu0 %v88_v63  ;;  %v155_v63 = vld [vmem:[%s6691_s0 + $0x3a8] sm:$0xff] }
  0x6c   :  { %696 = vmatmul.mubr.f32.gmra.mxu1 %v90_v0  ;;  %468 = vmatprep.mubr.f32.mxu0 %v94_v1  ;;  %v159_v0 = vld [vmem:[%s6691_s0 + $0x3c8] sm:$0xff]  ;;  %v161_v1 = vld [vmem:[%s6691_s0 + $0x3d8] sm:$0xff] }
  0x6d   :  { %701 = vmatprep.mubr.f32.mxu1 %v96_v2  ;;  %825 = vmatpush1.msra.mxu0 %v316_v3  ;;  %v158_v2 = vld [vmem:[%s6691_s0 + $0x3c0] sm:$0xff]  ;;  %v160_v3 = vld [vmem:[%s6691_s0 + $0x3d0] sm:$0xff] }
  0x6e   :  { %826 = vmatprep.subr.mxu0 %v315_v4  ;;  %v164_v4 = vld [vmem:[%s6691_s0 + $0x3f0] sm:$0xff] }
  0x6f   :  { %469 = vmatmul.mubr.f32.gmra.mxu0 %v93_v5  ;;  %v166_v5 = vld [vmem:[%s6691_s0 + $0x400] sm:$0xff] }
  0x70   :  { %702 = vmatmul.mubr.f32.gmra.mxu1 %v95_v6  ;;  %474 = vmatprep.mubr.f32.mxu0 %v99_v7  ;;  %v163_v6 = vld [vmem:[%s6691_s0 + $0x3e8] sm:$0xff]  ;;  %v165_v7 = vld [vmem:[%s6691_s0 + $0x3f8] sm:$0xff] }
  0x71   :  { %707 = vmatprep.mubr.f32.mxu1 %v101_v8  ;;  %827 = vmatpush1.msra.mxu0 %v314_v9  ;;  %v169_v8 = vld [vmem:[%s6691_s0 + $0x418] sm:$0xff]  ;;  %v171_v9 = vld [vmem:[%s6691_s0 + $0x428] sm:$0xff] }
  0x72   :  { %828 = vmatprep.subr.mxu0 %v313_v10  ;;  %v168_v10 = vld [vmem:[%s6691_s0 + $0x410] sm:$0xff] }
  0x73   :  { %475 = vmatmul.mubr.f32.gmra.mxu0 %v98_v11  ;;  %v170_v11 = vld [vmem:[%s6691_s0 + $0x420] sm:$0xff] }
  0x74   :  { %708 = vmatmul.mubr.f32.gmra.mxu1 %v100_v12  ;;  %480 = vmatprep.mubr.f32.mxu0 %v104_v13  ;;  %v174_v12 = vld [vmem:[%s6691_s0 + $0x440] sm:$0xff]  ;;  %v176_v13 = vld [vmem:[%s6691_s0 + $0x450] sm:$0xff] }
  0x75   :  { %713 = vmatprep.mubr.f32.mxu1 %v106_v14  ;;  %829 = vmatpush1.msra.mxu0 %v312_v15  ;;  %v173_v14 = vld [vmem:[%s6691_s0 + $0x438] sm:$0xff]  ;;  %v175_v15 = vld [vmem:[%s6691_s0 + $0x448] sm:$0xff] }
  0x76   :  { %830 = vmatprep.subr.mxu0 %v311_v16  ;;  %v6702_v16 = vmov 0.0  }
  0x77   :  { %481 = vmatmul.mubr.f32.gmra.mxu0 %v103_v17  ;;  %v42_v17 = vld [vmem:[%s6691_s0 + $0x20] sm:$0xff] }
  0x78   :  { %714 = vmatmul.mubr.f32.gmra.mxu1 %v105_v18  ;;  %486 = vmatprep.mubr.f32.mxu0 %v109_v19  ;;  %v47_v18 = vld [vmem:[%s6691_s0 + $0x48] sm:$0xff]  ;;  %v52_v19 = vld [vmem:[%s6691_s0 + $0x70] sm:$0xff] }
  0x79   :  { %719 = vmatprep.mubr.f32.mxu1 %v111_v20  ;;  %831 = vmatpush1.msra.mxu0 %v310_v21  ;;  %v57_v20 = vld [vmem:[%s6691_s0 + $0x98] sm:$0xff]  ;;  %v62_v21 = vld [vmem:[%s6691_s0 + $0xc0] sm:$0xff] }
  0x7a   :  { %832 = vmatprep.subr.mxu0 %v309_v22  ;;  %v67_v22 = vld [vmem:[%s6691_s0 + $0xe8] sm:$0xff] }
  0x7b   :  { %487 = vmatmul.mubr.f32.gmra.mxu0 %v108_v23  ;;  %v72_v23 = vld [vmem:[%s6691_s0 + $0x110] sm:$0xff] }
  0x7c   :  { %720 = vmatmul.mubr.f32.gmra.mxu1 %v110_v24  ;;  %492 = vmatprep.mubr.f32.mxu0 %v114_v25  ;;  %v77_v24 = vld [vmem:[%s6691_s0 + $0x138] sm:$0xff]  ;;  %v82_v25 = vld [vmem:[%s6691_s0 + $0x160] sm:$0xff] }
  0x7d   :  { %725 = vmatprep.mubr.f32.mxu1 %v116_v26  ;;  %833 = vmatpush1.msra.mxu0 %v308_v27  ;;  %v87_v26 = vld [vmem:[%s6691_s0 + $0x188] sm:$0xff]  ;;  %v92_v27 = vld [vmem:[%s6691_s0 + $0x1b0] sm:$0xff] }
  0x7e   :  { %834 = vmatprep.subr.mxu0 %v307_v28  ;;  %v97_v28 = vld [vmem:[%s6691_s0 + $0x1d8] sm:$0xff] }
  0x7f   :  { %493 = vmatmul.mubr.f32.gmra.mxu0 %v113_v29  ;;  %v102_v29 = vld [vmem:[%s6691_s0 + $0x200] sm:$0xff] }
  0x80   :  { %726 = vmatmul.mubr.f32.gmra.mxu1 %v115_v30  ;;  %498 = vmatprep.mubr.f32.mxu0 %v119_v31  ;;  %v107_v30 = vld [vmem:[%s6691_s0 + $0x228] sm:$0xff]  ;;  %v3040_v31 = vld [vmem:[%s6692_s3 + $0x1f8] sm:$0xff] }
  0x81   :  { %731 = vmatprep.mubr.f32.mxu1 %v121_v32  ;;  %835 = vmatpush1.msra.mxu0 %v306_v33  ;;  %v3039_v32 = vld [vmem:[%s6692_s3 + $0x1f0] sm:$0xff] }
  0x82   :  { %1203 = vmatprep.subr.mxu1 %v3040_v31  ;;  %v112_v33 = vld [vmem:[%s6691_s0 + $0x250] sm:$0xff]  ;;  %v3024_v31 = vld [vmem:[%s6692_s3 + $0x178] sm:$0xff] }
  0x83   :  { %499 = vmatmul.mubr.f32.gmra.mxu0 %v118_v34  ;;  %1204 = vmatpush1.msra.mxu1 %v3039_v32  ;;  %v117_v34 = vld [vmem:[%s6691_s0 + $0x278] sm:$0xff] }
  0x84   :  { %732 = vmatmul.mubr.f32.gmra.mxu1 %v120_v35  ;;  %504 = vmatprep.mubr.f32.mxu0 %v124_v36  ;;  %v3038_v35 = vld [vmem:[%s6692_s3 + $0x1e8] sm:$0xff]  ;;  %v3037_v36 = vld [vmem:[%s6692_s3 + $0x1e0] sm:$0xff] }
  0x85   :  { %737 = vmatprep.mubr.f32.mxu1 %v126_v37  ;;  %1205 = vmatprep.subr.mxu1 %v3038_v35  ;;  %v122_v37 = vld [vmem:[%s6691_s0 + $0x2a0] sm:$0xff] }
  0x86   :  { %1206 = vmatpush1.msra.mxu1 %v3037_v36 }
  0x87   :  { %505 = vmatmul.mubr.f32.gmra.mxu0 %v123_v38  ;;  %v3036_v38 = vld [vmem:[%s6692_s3 + $0x1d8] sm:$0xff] }
  0x88   :  { %738 = vmatmul.mubr.f32.gmra.mxu1 %v125_v39  ;;  %510 = vmatprep.mubr.f32.mxu0 %v129_v40  ;;  %v127_v39 = vld [vmem:[%s6691_s0 + $0x2c8] sm:$0xff]  ;;  %v3035_v40 = vld [vmem:[%s6692_s3 + $0x1d0] sm:$0xff] }
  0x89   :  { %743 = vmatprep.mubr.f32.mxu1 %v131_v41  ;;  %1207 = vmatprep.subr.mxu1 %v3036_v38  ;;  %v132_v41 = vld [vmem:[%s6691_s0 + $0x2f0] sm:$0xff] }
  0x8a   :  { %1208 = vmatpush1.msra.mxu1 %v3035_v40 }
  0x8b   :  { %511 = vmatmul.mubr.f32.gmra.mxu0 %v128_v42  ;;  %v3034_v42 = vld [vmem:[%s6692_s3 + $0x1c8] sm:$0xff] }
  0x8c   :  { %744 = vmatmul.mubr.f32.gmra.mxu1 %v130_v43  ;;  %516 = vmatprep.mubr.f32.mxu0 %v134_v44  ;;  %v3033_v43 = vld [vmem:[%s6692_s3 + $0x1c0] sm:$0xff]  ;;  %v137_v44 = vld [vmem:[%s6691_s0 + $0x318] sm:$0xff] }
  0x8d   :  { %749 = vmatprep.mubr.f32.mxu1 %v136_v45  ;;  %1209 = vmatprep.subr.mxu1 %v3034_v42  ;;  %v142_v45 = vld [vmem:[%s6691_s0 + $0x340] sm:$0xff] }
  0x8e   :  { %1210 = vmatpush1.msra.mxu1 %v3033_v43  ;;  %v3021_v42 = vld [vmem:[%s6692_s3 + $0x160] sm:$0xff] }
  0x8f   :  { %517 = vmatmul.mubr.f32.gmra.mxu0 %v133_v46  ;;  %v3032_v46 = vld [vmem:[%s6692_s3 + $0x1b8] sm:$0xff] }
  0x90   :  { %750 = vmatmul.mubr.f32.gmra.mxu1 %v135_v47  ;;  %522 = vmatprep.mubr.f32.mxu0 %v139_v48  ;;  %v3031_v47 = vld [vmem:[%s6692_s3 + $0x1b0] sm:$0xff] }
  0x91   :  { %755 = vmatprep.mubr.f32.mxu1 %v141_v49  ;;  %1211 = vmatprep.subr.mxu1 %v3032_v46 }
  0x92   :  { %1212 = vmatpush1.msra.mxu1 %v3031_v47 }
  0x93   :  { %523 = vmatmul.mubr.f32.gmra.mxu0 %v138_v50 }
  0x94   :  { %756 = vmatmul.mubr.f32.gmra.mxu1 %v140_v51  ;;  %528 = vmatprep.mubr.f32.mxu0 %v144_v52  ;;  %v147_v51 = vld [vmem:[%s6691_s0 + $0x368] sm:$0xff] }
  0x95   :  { %761 = vmatprep.mubr.f32.mxu1 %v146_v53 }
  0x97   :  { %529 = vmatmul.mubr.f32.gmra.mxu0 %v143_v54 }
  0x98   :  { %762 = vmatmul.mubr.f32.gmra.mxu1 %v145_v55  ;;  %534 = vmatprep.mubr.f32.mxu0 %v149_v56 }
  0x99   :  { %767 = vmatprep.mubr.f32.mxu1 %v151_v57  ;;  %v152_v57 = vld [vmem:[%s6691_s0 + $0x390] sm:$0xff] }
  0x9b   :  { %535 = vmatmul.mubr.f32.gmra.mxu0 %v148_v58  ;;  %v3030_v58 = vld [vmem:[%s6692_s3 + $0x1a8] sm:$0xff] }
  0x9c   :  { %768 = vmatmul.mubr.f32.gmra.mxu1 %v150_v59  ;;  %540 = vmatprep.mubr.f32.mxu0 %v154_v60  ;;  %v3029_v59 = vld [vmem:[%s6692_s3 + $0x1a0] sm:$0xff] }
  0x9d   :  { %773 = vmatprep.mubr.f32.mxu1 %v156_v61  ;;  %1213 = vmatprep.subr.mxu1 %v3030_v58 }
  0x9e   :  { %1214 = vmatpush1.msra.mxu1 %v3029_v59  ;;  %v3019_v59 = vld [vmem:[%s6692_s3 + $0x150] sm:$0xff] }
  0x9f   :  { %541 = vmatmul.mubr.f32.gmra.mxu0 %v153_v62 }
  0xa0   :  { %774 = vmatmul.mubr.f32.gmra.mxu1 %v155_v63  ;;  %546 = vmatprep.mubr.f32.mxu0 %v159_v0 }
  0xa1   :  { %779 = vmatprep.mubr.f32.mxu1 %v161_v1  ;;  %v157_v1 = vld [vmem:[%s6691_s0 + $0x3b8] sm:$0xff] }
  0xa3   :  { %547 = vmatmul.mubr.f32.gmra.mxu0 %v158_v2 }
  0xa4   :  { %780 = vmatmul.mubr.f32.gmra.mxu1 %v160_v3  ;;  %552 = vmatprep.mubr.f32.mxu0 %v164_v4  ;;  %v3028_v4 = vld [vmem:[%s6692_s3 + $0x198] sm:$0xff] }
  0xa5   :  { %785 = vmatprep.mubr.f32.mxu1 %v166_v5  ;;  %1215 = vmatprep.subr.mxu1 %v3028_v4 }
  0xa7   :  { %553 = vmatmul.mubr.f32.gmra.mxu0 %v163_v6 }
  0xa8   :  { %786 = vmatmul.mubr.f32.gmra.mxu1 %v165_v7  ;;  %558 = vmatprep.mubr.f32.mxu0 %v169_v8  ;;  %v162_v8 = vld [vmem:[%s6691_s0 + $0x3e0] sm:$0xff] }
  0xa9   :  { %791 = vmatprep.mubr.f32.mxu1 %v171_v9  ;;  %v3027_v9 = vld [vmem:[%s6692_s3 + $0x190] sm:$0xff] }
  0xaa   :  { %1216 = vmatpush1.msra.mxu1 %v3027_v9 }
  0xab   :  { %559 = vmatmul.mubr.f32.gmra.mxu0 %v168_v10 }
  0xac   :  { %792 = vmatmul.mubr.f32.gmra.mxu1 %v170_v11  ;;  %564 = vmatprep.mubr.f32.mxu0 %v174_v12 }
  0xad   :  { %797 = vmatprep.mubr.f32.mxu1 %v176_v13 }
  0xaf   :  { %565 = vmatmul.mubr.f32.gmra.mxu0 %v173_v14 }
  0xb0   :  { %798 = vmatmul.mubr.f32.gmra.mxu1 %v175_v15  ;;  %868 = vmatprep.mubr.f32.mxu0 %v6702_v16  ;;  %v167_v15 = vld [vmem:[%s6691_s0 + $0x408] sm:$0xff] }
  0xb1   :  { %1267 = vmatprep.mubr.f32.mxu1 %v6702_v16 }
  0xb3   :  { %869 = vmatmul.mubr.f32.vlgmr.msra.gmra.mxu0 %v42_v17 }
  0xb4   :  { %874 = vmatprep.mubr.f32.mxu0 %v6702_v16 }
  0xb7   :  { %875 = vmatmul.mubr.f32.gmra.mxu0 %v47_v18 }
  0xb8   :  { %880 = vmatprep.mubr.f32.mxu0 %v6702_v16 }
  0xbb   :  { %881 = vmatmul.mubr.f32.gmra.mxu0 %v52_v19  ;;  %v3026_v19 = vld [vmem:[%s6692_s3 + $0x188] sm:$0xff] }
  0xbc   :  { %886 = vmatprep.mubr.f32.mxu0 %v6702_v16  ;;  %1217 = vmatprep.subr.mxu1 %v3026_v19 }
  0xbf   :  { %887 = vmatmul.mubr.f32.gmra.mxu0 %v57_v20  ;;  %v3025_v20 = vld [vmem:[%s6692_s3 + $0x180] sm:$0xff] }
  0xc0   :  { %892 = vmatprep.mubr.f32.mxu0 %v6702_v16  ;;  %1218 = vmatpush1.msra.mxu1 %v3025_v20 }
  0xc1   :  { %1219 = vmatprep.subr.mxu1 %v3024_v31  ;;  %v4769_v31 = vld [vmem:[%s6692_s3 + $0xd0] sm:$0xff] }
  0xc2   :  { %6756 = vst [vmem:[#allocation22_spill] sm:$0xff] %v4769_v31 }
  0xc3   :  { %893 = vmatmul.mubr.f32.gmra.mxu0 %v62_v21 }
  0xc4   :  { %898 = vmatprep.mubr.f32.mxu0 %v6702_v16 }
  0xc7   :  { %899 = vmatmul.mubr.f32.gmra.mxu0 %v67_v22 }
  0xc8   :  { %904 = vmatprep.mubr.f32.mxu0 %v6702_v16 }
  0xcb   :  { %905 = vmatmul.mubr.f32.gmra.mxu0 %v72_v23 }
  0xcc   :  { %910 = vmatprep.mubr.f32.mxu0 %v6702_v16 }
  0xcf   :  { %911 = vmatmul.mubr.f32.gmra.mxu0 %v77_v24  ;;  %v172_v24 = vld [vmem:[%s6691_s0 + $0x430] sm:$0xff] }
  0xd0   :  { %916 = vmatprep.mubr.f32.mxu0 %v6702_v16 }
  0xd3   :  { %917 = vmatmul.mubr.f32.gmra.mxu0 %v82_v25 }
  0xd4   :  { %922 = vmatprep.mubr.f32.mxu0 %v6702_v16 }
  0xd7   :  { %923 = vmatmul.mubr.f32.gmra.mxu0 %v87_v26 }
  0xd8   :  { %928 = vmatprep.mubr.f32.mxu0 %v6702_v16 }
  0xdb   :  { %929 = vmatmul.mubr.f32.gmra.mxu0 %v92_v27 }
  0xdc   :  { %934 = vmatprep.mubr.f32.mxu0 %v6702_v16 }
  0xdf   :  { %935 = vmatmul.mubr.f32.gmra.mxu0 %v97_v28 }
  0xe0   :  { %940 = vmatprep.mubr.f32.mxu0 %v6702_v16 }
  0xe3   :  { %941 = vmatmul.mubr.f32.gmra.mxu0 %v102_v29 }
  0xe4   :  { %946 = vmatprep.mubr.f32.mxu0 %v6702_v16 }
  0xe7   :  { %947 = vmatmul.mubr.f32.gmra.mxu0 %v107_v30  ;;  %v177_v30 = vld [vmem:[%s6691_s0 + $0x458] sm:$0xff] }
  0xe8   :  { %952 = vmatprep.mubr.f32.mxu0 %v6702_v16 }
  0xeb   :  { %953 = vmatmul.mubr.f32.gmra.mxu0 %v112_v33 }
  0xec   :  { %958 = vmatprep.mubr.f32.mxu0 %v6702_v16 }
  0xef   :  { %959 = vmatmul.mubr.f32.gmra.mxu0 %v117_v34  ;;  %v3023_v34 = vld [vmem:[%s6692_s3 + $0x170] sm:$0xff] }
  0xf0   :  { %964 = vmatprep.mubr.f32.mxu0 %v6702_v16  ;;  %1220 = vmatpush1.msra.mxu1 %v3023_v34 }
  0xf3   :  { %965 = vmatmul.mubr.f32.gmra.mxu0 %v122_v37 }
  0xf4   :  { %970 = vmatprep.mubr.f32.mxu0 %v6702_v16 }
  0xf7   :  { %971 = vmatmul.mubr.f32.gmra.mxu0 %v127_v39 }
  0xf8   :  { %976 = vmatprep.mubr.f32.mxu0 %v6702_v16 }
  0xfb   :  { %977 = vmatmul.mubr.f32.gmra.mxu0 %v132_v41  ;;  %v3022_v41 = vld [vmem:[%s6692_s3 + $0x168] sm:$0xff] }
  0xfc   :  { %982 = vmatprep.mubr.f32.mxu0 %v6702_v16  ;;  %1221 = vmatprep.subr.mxu1 %v3022_v41  ;;  %v4777_v41 = vld [vmem:[%s6692_s3 + $0xc8] sm:$0xff] }
  0xfd   :  { %1222 = vmatpush1.msra.mxu1 %v3021_v42  ;;  %6757 = vst [vmem:[#allocation23_spill] sm:$0xff] %v4777_v41 }
  0xff   :  { %983 = vmatmul.mubr.f32.gmra.mxu0 %v137_v44 }
 0x100   :  { %988 = vmatprep.mubr.f32.mxu0 %v6702_v16 }
 0x103   :  { %v404_v48 = vpop.f32.mrf.mxu0  ;;  %989 = vmatmul.mubr.f32.gmra.mxu0 %v142_v45 }
 0x104   :  { %v637_v49 = vpop.f32.mrf.mxu1  ;;  %994 = vmatprep.mubr.f32.mxu0 %v6702_v16 }
 0x105   :  { %v4581_v50 = vadd.f32 %v637_v49, %v404_v48  ;;  %v4587_v52 = vpop.f32.mrf.mxu0  ;;  %v3020_v49 = vld [vmem:[%s6692_s3 + $0x158] sm:$0xff] }
 0x106   :  { %v4589_v53 = vpop.f32.mrf.mxu1  ;;  %1223 = vmatprep.subr.mxu1 %v3020_v49 }
 0x107   :  { %v410_v54 = vpop.f32.mrf.mxu0  ;;  %995 = vmatmul.mubr.f32.gmra.mxu0 %v147_v51  ;;  %1224 = vmatpush1.msra.mxu1 %v3019_v59 }
 0x108   :  { %v643_v55 = vpop.f32.mrf.mxu1  ;;  %1000 = vmatprep.mubr.f32.mxu0 %v6702_v16 }
 0x109   :  { %v4591_v56 = vadd.f32 %v643_v55, %v410_v54  ;;  %v4603_v60 = vpop.f32.mrf.mxu0 }
 0x10a   :  { %v4605_v61 = vpop.f32.mrf.mxu1 }
 0x10b   :  { %v416_v62 = vpop.f32.mrf.mxu0  ;;  %1001 = vmatmul.mubr.f32.gmra.mxu0 %v152_v57 }
 0x10c   :  { %v649_v63 = vpop.f32.mrf.mxu1  ;;  %1006 = vmatprep.mubr.f32.mxu0 %v6702_v16 }
 0x10d   :  { %v4607_v0 = vadd.f32 %v649_v63, %v416_v62  ;;  %v4613_v2 = vpop.f32.mrf.mxu0 }
 0x10e   :  { %v4615_v3 = vpop.f32.mrf.mxu1 }
 0x10f   :  { %v422_v5 = vpop.f32.mrf.mxu0  ;;  %1007 = vmatmul.mubr.f32.gmra.mxu0 %v157_v1 }
 0x110   :  { %v655_v6 = vpop.f32.mrf.mxu1  ;;  %1012 = vmatprep.mubr.f32.mxu0 %v6702_v16 }
 0x111   :  { %v4620_v7 = vadd.f32 %v655_v6, %v422_v5  ;;  %v4629_v10 = vpop.f32.mrf.mxu0  ;;  %v4727_v6 = vld [vmem:[%s6692_s3 + $0xf8] sm:$0xff] }
 0x112   :  { %v4631_v11 = vpop.f32.mrf.mxu1  ;;  %1631 = vmatprep.subr.mxu0 %v4727_v6 }
 0x113   :  { %v428_v12 = vpop.f32.mrf.mxu0  ;;  %1013 = vmatmul.mubr.f32.gmra.mxu0 %v162_v8 }
 0x114   :  { %v661_v13 = vpop.f32.mrf.mxu1  ;;  %1018 = vmatprep.mubr.f32.mxu0 %v6702_v16 }
 0x115   :  { %v4633_v14 = vadd.f32 %v661_v13, %v428_v12  ;;  %v4639_v17 = vpop.f32.mrf.mxu0  ;;  %v4733_v12 = vld [vmem:[%s6692_s3 + $0xf0] sm:$0xff] }
 0x116   :  { %v4641_v18 = vpop.f32.mrf.mxu1  ;;  %6752 = vst [vmem:[#allocation18_spill] sm:$0xff] %v4733_v12  ;;  %1632 = vmatpush1.msra.mxu0 %v4733_v12 }
 0x117   :  { %v434_v21 = vpop.f32.mrf.mxu0  ;;  %1019 = vmatmul.mubr.f32.gmra.mxu0 %v167_v15  ;;  %v4741_v15 = vld [vmem:[%s6692_s3 + $0xe8] sm:$0xff] }
 0x118   :  { %v667_v22 = vpop.f32.mrf.mxu1  ;;  %1024 = vmatprep.mubr.f32.mxu0 %v6702_v16  ;;  %6753 = vst [vmem:[#allocation19_spill] sm:$0xff] %v4741_v15  ;;  %1633 = vmatprep.subr.mxu0 %v4741_v15 }
 0x119   :  { %v4649_v23 = vadd.f32 %v667_v22, %v434_v21  ;;  %v4655_v25 = vpop.f32.mrf.mxu0  ;;  %v4751_v21 = vld [vmem:[%s6692_s3 + $0xe0] sm:$0xff]  ;;  %v3018_v22 = vld [vmem:[%s6692_s3 + $0x148] sm:$0xff] }
 0x11a   :  { %v4657_v26 = vpop.f32.mrf.mxu1  ;;  %6754 = vst [vmem:[#allocation20_spill] sm:$0xff] %v4751_v21  ;;  %1634 = vmatpush1.msra.mxu0 %v4751_v21  ;;  %1225 = vmatprep.subr.mxu1 %v3018_v22  ;;  %v4901_v21 = vld [vmem:[%s6692_s3 + $0x50] sm:$0xff] }
 0x11b   :  { %v440_v27 = vpop.f32.mrf.mxu0  ;;  %1025 = vmatmul.mubr.f32.gmra.mxu0 %v172_v24  ;;  %v3017_v24 = vld [vmem:[%s6692_s3 + $0x140] sm:$0xff]  ;;  %6772 = vst [vmem:[#allocation38_spill] sm:$0xff] %v4901_v21 }
 0x11c   :  { %v673_v28 = vpop.f32.mrf.mxu1  ;;  %1030 = vmatprep.mubr.f32.mxu0 %v6702_v16  ;;  %1226 = vmatpush1.msra.mxu1 %v3017_v24 }
 0x11d   :  { %v4659_v29 = vadd.f32 %v673_v28, %v440_v27  ;;  %v4668_v32 = vpop.f32.mrf.mxu0  ;;  %v4763_v27 = vld [vmem:[%s6692_s3 + $0xd8] sm:$0xff] }
 0x11e   :  { %v4670_v33 = vpop.f32.mrf.mxu1  ;;  %6755 = vst [vmem:[#allocation21_spill] sm:$0xff] %v4763_v27  ;;  %1635 = vmatprep.subr.mxu0 %v4763_v27 }
 0x11f   :  { %6737 = vst [vmem:[#allocation3_spill] sm:$0xff] %v4670_v33  ;;  %v4675_v35 = vpop.f32.mrf.mxu0  ;;  %1031 = vmatmul.mubr.f32.gmra.mxu0 %v177_v30 }
 0x120   :  { %6738 = vst [vmem:[#allocation4_spill] sm:$0xff] %v4675_v35  ;;  %v4677_v36 = vpop.f32.mrf.mxu1  ;;  %1695 = vmatprep.mubr.f32.mxu0 %v6702_v16  ;;  %1636 = vmatpush1.msra.mxu0 %v4769_v31 }
 0x121   :  { %6739 = vst [vmem:[#allocation5_spill] sm:$0xff] %v4677_v36  ;;  %v4680_v37 = vpop.f32.mrf.mxu0  ;;  %1637 = vmatprep.subr.mxu0 %v4777_v41 }
 0x122   :  { %6740 = vst [vmem:[#allocation6_spill] sm:$0xff] %v4680_v37  ;;  %v4682_v38 = vpop.f32.mrf.mxu1 }
 0x123   :  { %6741 = vst [vmem:[#allocation7_spill] sm:$0xff] %v4682_v38  ;;  %v4684_v39 = vpop.f32.mrf.mxu0 }
 0x124   :  { %6742 = vst [vmem:[#allocation8_spill] sm:$0xff] %v4684_v39  ;;  %v4686_v40 = vpop.f32.mrf.mxu1 }
 0x125   :  { %6743 = vst [vmem:[#allocation9_spill] sm:$0xff] %v4686_v40  ;;  %v4694_v43 = vpop.f32.mrf.mxu0 }
 0x126   :  { %6744 = vst [vmem:[#allocation10_spill] sm:$0xff] %v4694_v43  ;;  %v4696_v44 = vpop.f32.mrf.mxu1 }
 0x127   :  { %6745 = vst [vmem:[#allocation11_spill] sm:$0xff] %v4696_v44  ;;  %v4698_v45 = vpop.f32.mrf.mxu0 }
 0x128   :  { %6746 = vst [vmem:[#allocation12_spill] sm:$0xff] %v4698_v45  ;;  %v4700_v46 = vpop.f32.mrf.mxu1 }
 0x129   :  { %6747 = vst [vmem:[#allocation13_spill] sm:$0xff] %v4700_v46  ;;  %v4702_v47 = vpop.f32.mrf.mxu0 }
 0x12a   :  { %6748 = vst [vmem:[#allocation14_spill] sm:$0xff] %v4702_v47  ;;  %v4704_v48 = vpop.f32.mrf.mxu1  ;;  %v4967_v47 = vld [vmem:[%s6692_s3 + $0x10] sm:$0xff] }
 0x12b   :  { %6749 = vst [vmem:[#allocation15_spill] sm:$0xff] %v4704_v48  ;;  %v464_v51 = vpop.f32.mrf.mxu0  ;;  %6780 = vst [vmem:[#allocation46_spill] sm:$0xff] %v4967_v47 }
 0x12c   :  { %v697_v54 = vpop.f32.mrf.mxu1 }
 0x12d   :  { %v4709_v55 = vadd.f32 %v697_v54, %v464_v51  ;;  %v4711_v57 = vpop.f32.mrf.mxu0  ;;  %v4787_v51 = vld [vmem:[%s6692_s3 + $0xc0] sm:$0xff]  ;;  %v4793_v54 = vld [vmem:[%s6692_s3 + $0xb8] sm:$0xff] }
 0x12e   :  { %6750 = vst [vmem:[#allocation16_spill] sm:$0xff] %v4711_v57  ;;  %v4713_v58 = vpop.f32.mrf.mxu1  ;;  %6758 = vst [vmem:[#allocation24_spill] sm:$0xff] %v4787_v51  ;;  %1638 = vmatpush1.msra.mxu0 %v4787_v51 }
 0x12f   :  { %6751 = vst [vmem:[#allocation17_spill] sm:$0xff] %v4713_v58  ;;  %v470_v62 = vpop.f32.mrf.mxu0  ;;  %6759 = vst [vmem:[#allocation25_spill] sm:$0xff] %v4793_v54  ;;  %1639 = vmatprep.subr.mxu0 %v4793_v54 }
 0x130   :  { %v703_v63 = vpop.f32.mrf.mxu1 }
 0x131   :  { %v4718_v1 = vadd.f32 %v703_v63, %v470_v62  ;;  %v4720_v4 = vpop.f32.mrf.mxu0  ;;  %v4799_v63 = vld [vmem:[%s6692_s3 + $0xb0] sm:$0xff] }
 0x132   :  { %v4722_v5 = vpop.f32.mrf.mxu1  ;;  %6760 = vst [vmem:[#allocation26_spill] sm:$0xff] %v4799_v63  ;;  %1640 = vmatpush1.msra.mxu0 %v4799_v63 }
 0x133   :  { %v476_v8 = vpop.f32.mrf.mxu0 }
 0x134   :  { %v709_v9 = vpop.f32.mrf.mxu1 }
 0x135   :  { %v4735_v13 = vadd.f32 %v709_v9, %v476_v8  ;;  %v4743_v19 = vpop.f32.mrf.mxu0  ;;  %v4807_v9 = vld [vmem:[%s6692_s3 + $0xa8] sm:$0xff] }
 0x136   :  { %v4745_v20 = vpop.f32.mrf.mxu1  ;;  %6761 = vst [vmem:[#allocation27_spill] sm:$0xff] %v4807_v9  ;;  %1641 = vmatprep.subr.mxu0 %v4807_v9  ;;  %v4832_v9 = vld [vmem:[%s6692_s3 + $0x90] sm:$0xff] }
 0x137   :  { %v482_v28 = vpop.f32.mrf.mxu0  ;;  %6764 = vst [vmem:[#allocation30_spill] sm:$0xff] %v4832_v9 }
 0x138   :  { %v715_v30 = vpop.f32.mrf.mxu1 }
 0x139   :  { %v4771_v34 = vadd.f32 %v715_v30, %v482_v28  ;;  %v4779_v42 = vpop.f32.mrf.mxu0  ;;  %v4817_v28 = vld [vmem:[%s6692_s3 + $0xa0] sm:$0xff]  ;;  %v3016_v30 = vld [vmem:[%s6692_s3 + $0x138] sm:$0xff] }
 0x13a   :  { %v4781_v49 = vpop.f32.mrf.mxu1  ;;  %6762 = vst [vmem:[#allocation28_spill] sm:$0xff] %v4817_v28  ;;  %1642 = vmatpush1.msra.mxu0 %v4817_v28  ;;  %1227 = vmatprep.subr.mxu1 %v3016_v30  ;;  %v4840_v28 = vld [vmem:[%s6692_s3 + $0x88] sm:$0xff]  ;;  %v4850_v30 = vld [vmem:[%s6692_s3 + $0x80] sm:$0xff] }
 0x13b   :  { %v488_v59 = vpop.f32.mrf.mxu0  ;;  %6765 = vst [vmem:[#allocation31_spill] sm:$0xff] %v4840_v28  ;;  %6766 = vst [vmem:[#allocation32_spill] sm:$0xff] %v4850_v30 }
 0x13c   :  { %v721_v62 = vpop.f32.mrf.mxu1 }
 0x13d   :  { %v4801_v8 = vadd.f32 %v721_v62, %v488_v59  ;;  %v4809_v22 = vpop.f32.mrf.mxu0  ;;  %v4826_v59 = vld [vmem:[%s6692_s3 + $0x98] sm:$0xff] }
 0x13e   :  { %v4811_v24 = vpop.f32.mrf.mxu1  ;;  %6763 = vst [vmem:[#allocation29_spill] sm:$0xff] %v4826_v59  ;;  %1643 = vmatprep.subr.mxu0 %v4826_v59 }
 0x13f   :  { %v494_v62 = vpop.f32.mrf.mxu0  ;;  %1644 = vmatpush1.msra.mxu0 %v4832_v9 }
 0x140   :  { %v727_v16 = vpop.f32.mrf.mxu1  ;;  %1645 = vmatprep.subr.mxu0 %v4840_v28  ;;  %v4865_v28 = vld [vmem:[%s6692_s3 + $0x70] sm:$0xff] }
 0x141   :  { %v4834_v63 = vadd.f32 %v727_v16, %v494_v62  ;;  %v4842_v54 = vpop.f32.mrf.mxu0  ;;  %v3015_v16 = vld [vmem:[%s6692_s3 + $0x130] sm:$0xff]  ;;  %1646 = vmatpush1.msra.mxu0 %v4850_v30  ;;  %v4859_v62 = vld [vmem:[%s6692_s3 + $0x78] sm:$0xff]  ;;  %6768 = vst [vmem:[#allocation34_spill] sm:$0xff] %v4865_v28  ;;  %v4873_v30 = vld [vmem:[%s6692_s3 + $0x68] sm:$0xff] }
 0x142   :  { %v4844_v51 = vpop.f32.mrf.mxu1  ;;  %6767 = vst [vmem:[#allocation33_spill] sm:$0xff] %v4859_v62  ;;  %1228 = vmatpush1.msra.mxu1 %v3015_v16  ;;  %1647 = vmatprep.subr.mxu0 %v4859_v62  ;;  %6769 = vst [vmem:[#allocation35_spill] sm:$0xff] %v4873_v30  ;;  %v4883_v16 = vld [vmem:[%s6692_s3 + $0x60] sm:$0xff] }
 0x143   :  { %v500_v9 = vpop.f32.mrf.mxu0  ;;  %1648 = vmatpush1.msra.mxu0 %v4865_v28  ;;  %6770 = vst [vmem:[#allocation36_spill] sm:$0xff] %v4883_v16  ;;  %v4895_v28 = vld [vmem:[%s6692_s3 + $0x58] sm:$0xff] }
 0x144   :  { %v733_v59 = vpop.f32.mrf.mxu1  ;;  %1649 = vmatprep.subr.mxu0 %v4873_v30  ;;  %6771 = vst [vmem:[#allocation37_spill] sm:$0xff] %v4895_v28 }
 0x145   :  { %v4867_v41 = vadd.f32 %v733_v59, %v500_v9  ;;  %v4875_v31 = vpop.f32.mrf.mxu0  ;;  %v3014_v9 = vld [vmem:[%s6692_s3 + $0x128] sm:$0xff]  ;;  %v3013_v59 = vld [vmem:[%s6692_s3 + $0x120] sm:$0xff]  ;;  %1650 = vmatpush1.msra.mxu0 %v4883_v16 }
 0x146   :  { %v4877_v27 = vpop.f32.mrf.mxu1  ;;  %1229 = vmatprep.subr.mxu1 %v3014_v9  ;;  %1651 = vmatprep.subr.mxu0 %v4895_v28  ;;  %v4909_v16 = vld [vmem:[%s6692_s3 + $0x48] sm:$0xff]  ;;  %v4919_v28 = vld [vmem:[%s6692_s3 + $0x40] sm:$0xff] }
 0x147   :  { %v506_v30 = vpop.f32.mrf.mxu0  ;;  %1230 = vmatpush1.msra.mxu1 %v3013_v59  ;;  %1652 = vmatpush1.msra.mxu0 %v4901_v21  ;;  %6773 = vst [vmem:[#allocation39_spill] sm:$0xff] %v4909_v16  ;;  %6774 = vst [vmem:[#allocation40_spill] sm:$0xff] %v4919_v28 }
 0x148   :  { %v739_v62 = vpop.f32.mrf.mxu1  ;;  %1653 = vmatprep.subr.mxu0 %v4909_v16  ;;  %v4931_v16 = vld [vmem:[%s6692_s3 + $0x30] sm:$0xff] }
 0x149   :  { %v4903_v15 = vadd.f32 %v739_v62, %v506_v30  ;;  %v4911_v12 = vpop.f32.mrf.mxu0  ;;  %1654 = vmatpush1.msra.mxu0 %v4919_v28  ;;  %v4925_v30 = vld [vmem:[%s6692_s3 + $0x38] sm:$0xff]  ;;  %6776 = vst [vmem:[#allocation42_spill] sm:$0xff] %v4931_v16  ;;  %v4939_v28 = vld [vmem:[%s6692_s3 + $0x28] sm:$0xff] }
 0x14a   :  { %v4913_v9 = vpop.f32.mrf.mxu1  ;;  %6775 = vst [vmem:[#allocation41_spill] sm:$0xff] %v4925_v30  ;;  %1655 = vmatprep.subr.mxu0 %v4925_v30  ;;  %6777 = vst [vmem:[#allocation43_spill] sm:$0xff] %v4939_v28  ;;  %v4949_v30 = vld [vmem:[%s6692_s3 + $0x20] sm:$0xff] }
 0x14b   :  { %v512_v62 = vpop.f32.mrf.mxu0  ;;  %1656 = vmatpush1.msra.mxu0 %v4931_v16  ;;  %6778 = vst [vmem:[#allocation44_spill] sm:$0xff] %v4949_v30  ;;  %v4961_v16 = vld [vmem:[%s6692_s3 + $0x18] sm:$0xff] }
 0x14c   :  { %v745_v59 = vpop.f32.mrf.mxu1  ;;  %1657 = vmatprep.subr.mxu0 %v4939_v28  ;;  %6779 = vst [vmem:[#allocation45_spill] sm:$0xff] %v4961_v16 }
 0x14d   :  { %v4933_v21 = vadd.f32 %v745_v59, %v512_v62  ;;  %v4941_v58 = vpop.f32.mrf.mxu0  ;;  %v3012_v62 = vld [vmem:[%s6692_s3 + $0x118] sm:$0xff]  ;;  %v3011_v59 = vld [vmem:[%s6692_s3 + $0x110] sm:$0xff]  ;;  %1658 = vmatpush1.msra.mxu0 %v4949_v30  ;;  %v3010_v30 = vld [vmem:[%s6692_s3 + $0x108] sm:$0xff] }
 0x14e   :  { %v4943_v57 = vpop.f32.mrf.mxu1  ;;  %1231 = vmatprep.subr.mxu1 %v3012_v62  ;;  %1659 = vmatprep.subr.mxu0 %v4961_v16  ;;  %v4978_v62 = vld [vmem:[%s6692_s3 + $0x8] sm:$0xff] }
 0x14f   :  { %v518_v28 = vpop.f32.mrf.mxu0  ;;  %1232 = vmatpush1.msra.mxu1 %v3011_v59  ;;  %1660 = vmatpush1.msra.mxu0 %v4967_v47  ;;  %6781 = vst [vmem:[#allocation47_spill] sm:$0xff] %v4978_v62 }
 0x150   :  { %v751_v48 = vpop.f32.mrf.mxu1  ;;  %1233 = vmatprep.subr.mxu1 %v3010_v30  ;;  %1661 = vmatprep.subr.mxu0 %v4978_v62  ;;  %v4995_v30 = vld [vmem:[%s6692_s3 + $0x2f8] sm:$0xff] }
 0x151   :  { %v4969_v46 = vadd.f32 %v751_v48, %v518_v28  ;;  %v520_v16 = vpop.f32.mrf.mxu0  ;;  %v3009_v48 = vld [vmem:[%s6692_s3 + $0x100] sm:$0xff]  ;;  %6783 = vst [vmem:[#allocation49_spill] sm:$0xff] %v4995_v30 }
 0x152   :  { %v753_v45 = vpop.f32.mrf.mxu1  ;;  %v4987_v28 = vld [vmem:[%s6692_s3] sm:$0xff]  ;;  %1234 = vmatpush1.msra.mxu1 %v3009_v48 }
 0x153   :  { %6782 = vst [vmem:[#allocation48_spill] sm:$0xff] %v4987_v28  ;;  %v4989_v59 = vadd.f32 %v753_v45, %v520_v16  ;;  %1662 = vmatpush1.msra.mxu0 %v4987_v28  ;;  %v524_v47 = vpop.f32.mrf.mxu0  ;;  %1298 = vmatprep.subr.mxu1 %v4727_v6 }
 0x154   :  { %v757_v44 = vpop.f32.mrf.mxu1  ;;  %1869 = vmatprep.subr.mxu0 %v4995_v30 }
 0x155   :  { %v4999_v62 = vadd.f32 %v757_v44, %v524_v47  ;;  %v526_v43 = vpop.f32.mrf.mxu0 }
 0x156   :  { %v759_v40 = vpop.f32.mrf.mxu1 }
 0x157   :  { %6784 = vst [vmem:[#allocation50_spill] sm:$0xff] %v4999_v62  ;;  %v5001_v45 = vadd.f32 %v759_v40, %v526_v43  ;;  %v5003_v16 = vpop.f32.mrf.mxu0 }
 0x158   :  { %6786 = vst [vmem:[#allocation52_spill] sm:$0xff] %v5003_v16 }
 0x159   :  { %6785 = vst [vmem:[#allocation51_spill] sm:$0xff] %v5001_v45  ;;  %v5005_v48 = vpop.f32.mrf.mxu0 }
 0x15a   :  { %6787 = vst [vmem:[#allocation53_spill] sm:$0xff] %v5005_v48 }
 0x15b   :  { %v5007_v28 = vpop.f32.mrf.mxu0 }
 0x15c   :  { %6788 = vst [vmem:[#allocation54_spill] sm:$0xff] %v5007_v28 }
 0x15d   :  { %v5009_v39 = vpop.f32.mrf.mxu0 }
 0x15e   :  { %6789 = vst [vmem:[#allocation55_spill] sm:$0xff] %v5009_v39 }
 0x15f   :  { %v5011_v38 = vpop.f32.mrf.mxu0 }
 0x160   :  { %6790 = vst [vmem:[#allocation56_spill] sm:$0xff] %v5011_v38 }
 0x161   :  { %v5013_v37 = vpop.f32.mrf.mxu0 }
 0x162   :  { %6791 = vst [vmem:[#allocation57_spill] sm:$0xff] %v5013_v37 }
 0x163   :  { %v5015_v6 = vpop.f32.mrf.mxu0 }
 0x164   :  { %6792 = vst [vmem:[#allocation58_spill] sm:$0xff] %v5015_v6 }
 0x165   :  { %v5017_v44 = vpop.f32.mrf.mxu0 }
 0x166   :  { %6793 = vst [vmem:[#allocation59_spill] sm:$0xff] %v5017_v44 }
 0x167   :  { %v5019_v47 = vpop.f32.mrf.mxu0 }
 0x168   :  { %6794 = vst [vmem:[#allocation60_spill] sm:$0xff] %v5019_v47 }
 0x169   :  { %v5021_v40 = vpop.f32.mrf.mxu0 }
 0x16a   :  { %6795 = vst [vmem:[#allocation61_spill] sm:$0xff] %v5021_v40 }
 0x16b   :  { %v5023_v43 = vpop.f32.mrf.mxu0 }
 0x16c   :  { %6796 = vst [vmem:[#allocation62_spill] sm:$0xff] %v5023_v43 }
 0x16d   :  { %v5025_v30 = vpop.f32.mrf.mxu0 }
 0x16e   :  { %6797 = vst [vmem:[#allocation63_spill] sm:$0xff] %v5025_v30 }
 0x16f   :  { %v5027_v48 = vpop.f32.mrf.mxu0 }
 0x170   :  { %6798 = vst [vmem:[#allocation64_spill] sm:$0xff] %v5027_v48 }
 0x171   :  { %v5029_v28 = vpop.f32.mrf.mxu0 }
 0x172   :  { %6799 = vst [vmem:[#allocation65_spill] sm:$0xff] %v5029_v28 }
 0x173   :  { %v870_v39 = vpop.f32.mrf.mxu0 }
 0x174   :  { %v5032_v38 = vadd.f32 %v870_v39, %v4581_v50 }
 0x175   :  { %v872_v37 = vpop.f32.mrf.mxu0 }
 0x177   :  { %v876_v6 = vpop.f32.mrf.mxu0 }
 0x178   :  { %v5035_v44 = vadd.f32 %v876_v6, %v4591_v56 }
 0x179   :  { %v878_v47 = vpop.f32.mrf.mxu0 }
 0x17b   :  { %v882_v45 = vpop.f32.mrf.mxu0 }
 0x17c   :  { %v5038_v40 = vadd.f32 %v882_v45, %v4607_v0 }
 0x17d   :  { %v5040_v43 = vpop.f32.mrf.mxu0 }
 0x17f   :  { %v888_v30 = vpop.f32.mrf.mxu0 }
 0x180   :  { %v5043_v48 = vadd.f32 %v888_v30, %v4620_v7 }
 0x181   :  { %v5045_v28 = vpop.f32.mrf.mxu0 }
 0x183   :  { %v894_v50 = vpop.f32.mrf.mxu0 }
 0x184   :  { %v5048_v39 = vadd.f32 %v894_v50, %v4633_v14 }
 0x185   :  { %v5050_v16 = vpop.f32.mrf.mxu0 }
 0x187   :  { %v900_v56 = vpop.f32.mrf.mxu0 }
 0x188   :  { %v5053_v6 = vadd.f32 %v900_v56, %v4649_v23 }
 0x189   :  { %v5055_v0 = vpop.f32.mrf.mxu0 }
 0x18b   :  { %v906_v45 = vpop.f32.mrf.mxu0 }
 0x18c   :  { %v5058_v36 = vadd.f32 %v906_v45, %v4659_v29 }
 0x18d   :  { %v5060_v7 = vpop.f32.mrf.mxu0 }
 0x18e   :  { %6800 = vst [vmem:[#allocation66_spill] sm:$0xff] %v5058_v36 }
 0x18f   :  { %v5062_v30 = vpop.f32.mrf.mxu0 }
 0x190   :  { %6801 = vst [vmem:[#allocation67_spill] sm:$0xff] %v5062_v30  ;;  %v706_v30 = vadd.f32 %v4722_v5, %v4720_v4  ;;  %v718_v4 = vadd.f32 %v4781_v49, %v4779_v42  ;;  %v5098_v5 = vpop.f32.mrf.mxu1 }
 0x191   :  { %v5064_v35 = vpop.f32.mrf.mxu0 }
 0x192   :  { %6802 = vst [vmem:[#allocation68_spill] sm:$0xff] %v5064_v35 }
 0x193   :  { %v5066_v14 = vpop.f32.mrf.mxu0 }
 0x194   :  { %6803 = vst [vmem:[#allocation69_spill] sm:$0xff] %v5066_v14 }
 0x195   :  { %v5068_v50 = vpop.f32.mrf.mxu0 }
 0x196   :  { %6804 = vst [vmem:[#allocation70_spill] sm:$0xff] %v5068_v50 }
 0x197   :  { %v5070_v62 = vpop.f32.mrf.mxu0 }
 0x198   :  { %6805 = vst [vmem:[#allocation71_spill] sm:$0xff] %v5070_v62 }
 0x199   :  { %v5072_v23 = vpop.f32.mrf.mxu0 }
 0x19a   :  { %6806 = vst [vmem:[#allocation72_spill] sm:$0xff] %v5072_v23  ;;  %v712_v23 = vadd.f32 %v4745_v20, %v4743_v19  ;;  %v724_v19 = vadd.f32 %v4811_v24, %v4809_v22 }
 0x19b   :  { %v930_v56 = vpop.f32.mrf.mxu0 }
 0x19c   :  { %v5075_v33 = vadd.f32 %v930_v56, %v4709_v55 }
 0x19d   :  { %v5077_v29 = vpop.f32.mrf.mxu0 }
 0x19e   :  { %6807 = vst [vmem:[#allocation73_spill] sm:$0xff] %v5075_v33 }
 0x19f   :  { %v936_v45 = vpop.f32.mrf.mxu0 }
 0x1a0   :  { %v5082_v35 = vadd.f32 %v936_v45, %v4718_v1 }
 0x1a1   :  { %v938_v14 = vpop.f32.mrf.mxu0 }
 0x1a2   :  { %v5084_v36 = vadd.f32 %v938_v14, %v706_v30 }
 0x1a3   :  { %v942_v50 = vpop.f32.mrf.mxu0 }
 0x1a4   :  { %v5089_v62 = vadd.f32 %v942_v50, %v4735_v13  ;;  %v640_v13 = vadd.f32 %v4589_v53, %v4587_v52  ;;  %v5107_v50 = vpop.f32.mrf.mxu1 }
 0x1a5   :  { %v944_v55 = vpop.f32.mrf.mxu0 }
 0x1a6   :  { %v5091_v56 = vadd.f32 %v944_v55, %v712_v23  ;;  %v873_v49 = vadd.f32 %v872_v37, %v640_v13  ;;  %v646_v55 = vadd.f32 %v4605_v61, %v4603_v60  ;;  %v5115_v22 = vpop.f32.mrf.mxu1  ;;  %v652_v13 = vadd.f32 %v4615_v3, %v4613_v2 }
 0x1a7   :  { %v948_v33 = vpop.f32.mrf.mxu0  ;;  %v736_v60 = vadd.f32 %v4877_v27, %v4875_v31  ;;  %v658_v2 = vadd.f32 %v4631_v11, %v4629_v10  ;;  %v742_v3 = vadd.f32 %v4913_v9, %v4911_v12  ;;  %v664_v10 = vadd.f32 %v4641_v18, %v4639_v17 }
 0x1a8   :  { %v5096_v1 = vadd.f32 %v948_v33, %v4771_v34  ;;  %v879_v24 = vadd.f32 %v878_v47, %v646_v55  ;;  %v885_v47 = vadd.f32 %v5040_v43, %v652_v13  ;;  %v748_v11 = vadd.f32 %v4943_v57, %v4941_v58  ;;  %v6809_v13 = vld [vmem:[#allocation50_spill] sm:$0xff] }
 0x1a9   :  { %v950_v30 = vpop.f32.mrf.mxu0  ;;  %v891_v43 = vadd.f32 %v5045_v28, %v658_v2 }
 0x1aa   :  { %v5100_v14 = vadd.f32 %v950_v30, %v718_v4  ;;  %v730_v4 = vadd.f32 %v4844_v51, %v4842_v54  ;;  %v5125_v54 = vpop.f32.mrf.mxu1 }
 0x1ab   :  { %v954_v45 = vpop.f32.mrf.mxu0 }
 0x1ac   :  { %v955_v20 = vadd.f32 %v954_v45, %v4801_v8 }
 0x1ad   :  { %v956_v42 = vpop.f32.mrf.mxu0 }
 0x1ae   :  { %v1037_v33 = vmax.f32 %v5032_v38, %v955_v20  ;;  %v957_v34 = vadd.f32 %v956_v42, %v724_v19 }
 0x1af   :  { %v960_v23 = vpop.f32.mrf.mxu0 }
 0x1b0   :  { %v1038_v52 = vmax.f32 %v873_v49, %v957_v34  ;;  %v961_v53 = vadd.f32 %v960_v23, %v4834_v63 }
 0x1b1   :  { %v962_v8 = vpop.f32.mrf.mxu0 }
 0x1b2   :  { %v5117_v30 = vmax.f32 %v1037_v33, %v1038_v52  ;;  %v1039_v37 = vmax.f32 %v5035_v44, %v961_v53  ;;  %v963_v38 = vadd.f32 %v962_v8, %v730_v4  ;;  %v897_v4 = vadd.f32 %v5050_v16, %v664_v10 }
 0x1b3   :  { %v966_v45 = vpop.f32.mrf.mxu0  ;;  %v670_v8 = vadd.f32 %v4657_v26, %v4655_v25  ;;  %v6808_v25 = vld [vmem:[#allocation3_spill] sm:$0xff] }
 0x1b4   :  { %v1040_v61 = vmax.f32 %v879_v24, %v963_v38  ;;  %v967_v51 = vadd.f32 %v966_v45, %v4867_v41  ;;  %v5136_v41 = vpop.f32.mrf.mxu1  ;;  %v676_v26 = vadd.f32 %v6808_v25, %v4668_v32  ;;  %v6814_v32 = vld [vmem:[#allocation51_spill] sm:$0xff] }
 0x1b5   :  { %v968_v63 = vpop.f32.mrf.mxu0 }
 0x1b6   :  { %v5128_v19 = vmax.f32 %v1039_v37, %v1040_v61  ;;  %v1041_v44 = vmax.f32 %v5038_v40, %v967_v51  ;;  %v969_v20 = vadd.f32 %v968_v63, %v736_v60  ;;  %v777_v9 = vpop.f32.mrf.mxu1  ;;  %v6810_v60 = vld [vmem:[#allocation4_spill] sm:$0xff]  ;;  %v6811_v61 = vld [vmem:[#allocation5_spill] sm:$0xff] }
 0x1b7   :  { %v972_v42 = vpop.f32.mrf.mxu0  ;;  %v6812_v51 = vld [vmem:[#allocation52_spill] sm:$0xff] }
 0x1b8   :  { %v1042_v27 = vmax.f32 %v885_v47, %v969_v20  ;;  %v973_v31 = vadd.f32 %v972_v42, %v4903_v15  ;;  %v781_v57 = vpop.f32.mrf.mxu1  ;;  %v6813_v42 = vld [vmem:[#allocation66_spill] sm:$0xff] }
 0x1b9   :  { %v974_v49 = vpop.f32.mrf.mxu0 }
 0x1ba   :  { %v5139_v33 = vmax.f32 %v1041_v44, %v1042_v27  ;;  %v1043_v40 = vmax.f32 %v5043_v48, %v973_v31  ;;  %v975_v34 = vadd.f32 %v974_v49, %v742_v3  ;;  %v783_v63 = vpop.f32.mrf.mxu1  ;;  %v909_v44 = vadd.f32 %v5060_v7, %v676_v26  ;;  %v6815_v27 = vld [vmem:[#allocation6_spill] sm:$0xff]  ;;  %v6816_v31 = vld [vmem:[#allocation7_spill] sm:$0xff]  ;;  %v6819_v7 = vld [vmem:[#allocation8_spill] sm:$0xff] }
 0x1bb   :  { %v978_v23 = vpop.f32.mrf.mxu0  ;;  %v682_v49 = vadd.f32 %v6816_v31, %v6815_v27  ;;  %v6826_v26 = vld [vmem:[#allocation69_spill] sm:$0xff]  ;;  %v6832_v27 = vld [vmem:[#allocation15_spill] sm:$0xff] }
 0x1bc   :  { %v1044_v12 = vmax.f32 %v891_v43, %v975_v34  ;;  %v979_v15 = vadd.f32 %v978_v23, %v4933_v21  ;;  %v903_v21 = vadd.f32 %v5055_v0, %v670_v8  ;;  %v6817_v43 = vld [vmem:[#allocation53_spill] sm:$0xff]  ;;  %v6818_v23 = vld [vmem:[#allocation67_spill] sm:$0xff]  ;;  %v6822_v8 = vld [vmem:[#allocation68_spill] sm:$0xff] }
 0x1bd   :  { %v980_v55 = vpop.f32.mrf.mxu0 }
 0x1be   :  { %v5148_v28 = vmax.f32 %v1043_v40, %v1044_v12  ;;  %v1045_v52 = vmax.f32 %v5048_v39, %v979_v15  ;;  %v981_v48 = vadd.f32 %v980_v55, %v748_v11  ;;  %v5160_v39 = vld [vmem:[%s6693_s2] ss:$0 sm:$0xff]  ;;  %v766_v40 = vadd.f32 %v5107_v50, %v6817_v43  ;;  %v6820_v15 = vld [vmem:[#allocation9_spill] sm:$0xff] }
 0x1bf   :  { %v984_v53 = vpop.f32.mrf.mxu0  ;;  %v686_v55 = vadd.f32 %v6820_v15, %v6819_v7 }
 0x1c0   :  { %v1046_v17 = vmax.f32 %v897_v4, %v981_v48  ;;  %v985_v18 = vadd.f32 %v984_v53, %v4969_v46  ;;  %v6821_v4 = vld [vmem:[#allocation54_spill] sm:$0xff]  ;;  %v787_v48 = vpop.f32.mrf.mxu1 }
 0x1c1   :  { %v986_v58 = vpop.f32.mrf.mxu0 }
 0x1c2   :  { %v1069_v24 = vmax.f32 %v1045_v52, %v1046_v17  ;;  %v1047_v37 = vmax.f32 %v5053_v6, %v985_v18  ;;  %v987_v16 = vadd.f32 %v986_v58, %v4989_v59  ;;  %v680_v6 = vadd.f32 %v6811_v61, %v6810_v60  ;;  %v6827_v60 = vld [vmem:[#allocation12_spill] sm:$0xff]  ;;  %v6828_v61 = vld [vmem:[#allocation13_spill] sm:$0xff] }
 0x1c3   :  { %v990_v38 = vpop.f32.mrf.mxu0  ;;  %v764_v59 = vadd.f32 %v5098_v5, %v6812_v51  ;;  %v770_v52 = vadd.f32 %v5115_v22, %v6821_v4  ;;  %v915_v17 = vadd.f32 %v6822_v8, %v682_v49  ;;  %v6829_v51 = vld [vmem:[#allocation56_spill] sm:$0xff]  ;;  %v6833_v49 = vld [vmem:[#allocation57_spill] sm:$0xff] }
 0x1c4   :  { %v5165_v46 = vadd.f32 %v5160_v39, %v1069_v24  ;;  %v1048_v45 = vmax.f32 %v903_v21, %v987_v16  ;;  %v991_v0 = vadd.f32 %v990_v38, %v6809_v13  ;;  %v913_v10 = vadd.f32 %v6818_v23, %v680_v6  ;;  %v6823_v21 = vld [vmem:[#allocation10_spill] sm:$0xff]  ;;  %v6824_v24 = vld [vmem:[#allocation11_spill] sm:$0xff] }
 0x1c5   :  { %v992_v47 = vpop.f32.mrf.mxu0  ;;  %v6825_v16 = vld [vmem:[#allocation55_spill] sm:$0xff]  ;;  %v692_v6 = vadd.f32 %v6828_v61, %v6827_v60  ;;  %v778_v43 = vadd.f32 %v777_v9, %v6833_v49  ;;  %v5211_v9 = vld [vmem:[%s6692_s3 + $0x2f0] sm:$0xff]  ;;  %v6841_v61 = vld [vmem:[#allocation18_spill] sm:$0xff] }
 0x1c6   :  { %v1070_v20 = vmax.f32 %v1047_v37, %v1048_v45  ;;  %v1049_v2 = vmax.f32 %v6813_v42, %v991_v0  ;;  %v993_v3 = vadd.f32 %v992_v47, %v6814_v32  ;;  %v688_v37 = vadd.f32 %v6824_v24, %v6823_v21  ;;  %v789_v47 = vpop.f32.mrf.mxu1  ;;  %v6839_v24 = vld [vmem:[#allocation59_spill] sm:$0xff] }
 0x1c7   :  { %v996_v34 = vpop.f32.mrf.mxu0  ;;  %v772_v38 = vadd.f32 %v5125_v54, %v6825_v16  ;;  %v919_v45 = vadd.f32 %v6826_v26, %v686_v55  ;;  %v6836_v55 = vld [vmem:[#allocation72_spill] sm:$0xff] }
 0x1c8   :  { %v5181_v5 = vadd.f32 %v5160_v39, %v1070_v20  ;;  %v1050_v11 = vmax.f32 %v909_v44, %v993_v3  ;;  %v997_v12 = vadd.f32 %v996_v34, %v764_v59  ;;  %v776_v59 = vadd.f32 %v5136_v41, %v6829_v51  ;;  %v6830_v20 = vld [vmem:[#allocation70_spill] sm:$0xff]  ;;  %v6834_v34 = vld [vmem:[#allocation71_spill] sm:$0xff]  ;;  %v793_v15 = vpop.f32.mrf.mxu1 }
 0x1c9   :  { %v998_v53 = vpop.f32.mrf.mxu0  ;;  %v921_v42 = vadd.f32 %v6830_v20, %v688_v37  ;;  %v6831_v3 = vld [vmem:[#allocation14_spill] sm:$0xff]  ;;  %v925_v23 = vadd.f32 %v6834_v34, %v692_v6  ;;  %v784_v37 = vadd.f32 %v783_v63, %v6839_v24  ;;  %v5250_v34 = vld [vmem:[%s6692_s3 + $0x2d0] sm:$0xff] }
 0x1ca   :  { %v1071_v18 = vmax.f32 %v1049_v2, %v1050_v11  ;;  %v1051_v50 = vmax.f32 %v913_v10, %v997_v12  ;;  %v999_v58 = vadd.f32 %v998_v53, %v766_v40  ;;  %v694_v31 = vadd.f32 %v6832_v27, %v6831_v3  ;;  %v6835_v41 = vld [vmem:[#allocation58_spill] sm:$0xff]  ;;  %v795_v63 = vpop.f32.mrf.mxu1 }
 0x1cb   :  { %v1002_v25 = vpop.f32.mrf.mxu0  ;;  %v782_v7 = vadd.f32 %v781_v57, %v6835_v41  ;;  %v5219_v57 = vld [vmem:[%s6692_s3 + $0x2e8] sm:$0xff] }
 0x1cc   :  { %v5194_v13 = vadd.f32 %v5160_v39, %v1071_v18  ;;  %v1052_v22 = vmax.f32 %v915_v17, %v999_v58  ;;  %v1003_v0 = vadd.f32 %v1002_v25, %v770_v52  ;;  %v927_v4 = vadd.f32 %v6836_v55, %v694_v31  ;;  %v6838_v58 = vld [vmem:[#allocation17_spill] sm:$0xff] }
 0x1cd   :  { %v1004_v44 = vpop.f32.mrf.mxu0 }
 0x1ce   :  { %v1072_v2 = vmax.f32 %v1051_v50, %v1052_v22  ;;  %v1053_v54 = vmax.f32 %v919_v45, %v1003_v0  ;;  %v1005_v32 = vadd.f32 %v1004_v44, %v772_v38  ;;  %v6837_v50 = vld [vmem:[#allocation16_spill] sm:$0xff]  ;;  %v5225_v45 = vld [vmem:[%s6692_s3 + $0x2e0] sm:$0xff]  ;;  %v6842_v44 = vld [vmem:[#allocation73_spill] sm:$0xff] }
 0x1cf   :  { %v1008_v40 = vpop.f32.mrf.mxu0  ;;  %v700_v21 = vadd.f32 %v6838_v58, %v6837_v50  ;;  %v6840_v22 = vld [vmem:[#allocation60_spill] sm:$0xff]  ;;  %v5279_v58 = vld [vmem:[%s6692_s3 + $0x2b8] sm:$0xff] }
 0x1d0   :  { %v1093_v10 = vadd.f32 %v5160_v39, %v1072_v2  ;;  %v1054_v11 = vmax.f32 %v921_v42, %v1005_v32  ;;  %v1009_v12 = vadd.f32 %v1008_v40, %v776_v59  ;;  %v788_v0 = vadd.f32 %v787_v48, %v6840_v22  ;;  %v6843_v2 = vld [vmem:[#allocation19_spill] sm:$0xff]  ;;  %v5239_v48 = vld [vmem:[%s6692_s3 + $0x2d8] sm:$0xff]  ;;  %v6845_v32 = vld [vmem:[#allocation20_spill] sm:$0xff] }
 0x1d1   :  { %v1010_v52 = vpop.f32.mrf.mxu0  ;;  %v933_v60 = vadd.f32 %v5077_v29, %v700_v21  ;;  %v6844_v29 = vld [vmem:[#allocation61_spill] sm:$0xff]  ;;  %v6852_v21 = vld [vmem:[#allocation64_spill] sm:$0xff] }
 0x1d2   :  { %v1107_v53 = vmax.f32 %v1093_v10, 0.0  ;;  %v1073_v8 = vmax.f32 %v1053_v54, %v1054_v11  ;;  %v1055_v17 = vmax.f32 %v925_v23, %v1009_v12  ;;  %v1011_v18 = vadd.f32 %v1010_v52, %v778_v43  ;;  %v6847_v40 = vld [vmem:[#allocation21_spill] sm:$0xff]  ;;  %v6848_v23 = vld [vmem:[#allocation62_spill] sm:$0xff]  ;;  %v799_v10 = vpop.f32.mrf.mxu1  ;;  %v5258_v12 = vld [vmem:[%s6692_s3 + $0x2c8] sm:$0xff] }
 0x1d3   :  { %v1014_v16 = vpop.f32.mrf.mxu0  ;;  %v790_v54 = vadd.f32 %v789_v47, %v6844_v29  ;;  %v6846_v43 = vmov 0.0   ;;  %v794_v47 = vadd.f32 %v793_v15, %v6848_v23  ;;  %v5266_v15 = vld [vmem:[%s6692_s3 + $0x2c0] sm:$0xff]  ;;  %v800_v24 = vadd.f32 %v799_v10, %v6852_v21  ;;  %v6854_v22 = vld [vmem:[#allocation25_spill] sm:$0xff]  ;;  %v5340_v10 = vld [vmem:[%s6692_s3 + $0x288] sm:$0xff] }
 0x1d4   :  { %v1094_v38 = vadd.f32 %v5160_v39, %v1073_v8  ;;  %v1056_v25 = vmax.f32 %v927_v4, %v1011_v18  ;;  %v1015_v26 = vadd.f32 %v1014_v16, %v782_v7  ;;  %1268 = vmatmul.mubr.f32.vlgmr.msra.gmra.mxu1 %v1107_v53  ;;  %1696 = vmatmul.mubr.f32.vlgmr.msra.gmra.mxu0 %v1107_v53  ;;  %v6849_v4 = vld [vmem:[#allocation22_spill] sm:$0xff]  ;;  %v6850_v53 = vld [vmem:[#allocation63_spill] sm:$0xff]  ;;  %v6859_v23 = vld [vmem:[#allocation29_spill] sm:$0xff] }
 0x1d5   :  { %1299 = vmatpush1.msra.mxu1 %v6841_v61  ;;  %1870 = vmatpush1.msra.mxu0 %v5211_v9  ;;  %v1016_v6 = vpop.f32.mrf.mxu0  ;;  %v796_v8 = vadd.f32 %v795_v63, %v6850_v53  ;;  %v6851_v18 = vld [vmem:[#allocation23_spill] sm:$0xff]  ;;  %v6855_v61 = vld [vmem:[#allocation65_spill] sm:$0xff]  ;;  %v6862_v53 = vld [vmem:[#allocation32_spill] sm:$0xff] }
 0x1d6   :  { %v5231_v51 = vmax.f32 %v1094_v38, 0.0  ;;  %v1074_v59 = vmax.f32 %v1055_v17, %v1056_v25  ;;  %v1057_v20 = vmax.f32 %v6842_v44, %v1015_v26  ;;  %v1017_v42 = vadd.f32 %v1016_v6, %v784_v37  ;;  %1300 = vmatprep.subr.mxu1 %v6843_v2  ;;  %1871 = vmatprep.subr.mxu0 %v5219_v57  ;;  %v801_v37 = vpop.f32.mrf.mxu1  ;;  %v6853_v38 = vld [vmem:[#allocation24_spill] sm:$0xff]  ;;  %v5307_v44 = vld [vmem:[%s6692_s3 + $0x2a0] sm:$0xff]  ;;  %v6864_v21 = vld [vmem:[#allocation34_spill] sm:$0xff] }
 0x1d7   :  { %1301 = vmatpush1.msra.mxu1 %v6845_v32  ;;  %1872 = vmatpush1.msra.mxu0 %v5225_v45  ;;  %v1020_v3 = vpop.f32.mrf.mxu0  ;;  %v802_v6 = vadd.f32 %v801_v37, %v6855_v61  ;;  %v6857_v32 = vld [vmem:[#allocation27_spill] sm:$0xff]  ;;  %v5426_v61 = vld [vmem:[%s6692_s3 + $0x230] sm:$0xff] }
 0x1d8   :  { %v1095_v27 = vadd.f32 %v5160_v39, %v1074_v59  ;;  %v1058_v31 = vmax.f32 %v933_v60, %v1017_v42  ;;  %v1021_v49 = vadd.f32 %v1020_v3, %v788_v0  ;;  %1273 = vmatprep.mubr.f32.mxu1 %v6846_v43  ;;  %1302 = vmatprep.subr.mxu1 %v6847_v40  ;;  %v5291_v0 = vld [vmem:[%s6692_s3 + $0x2b0] sm:$0xff]  ;;  %v5298_v60 = vld [vmem:[%s6692_s3 + $0x2a8] sm:$0xff]  ;;  %v6856_v42 = vld [vmem:[#allocation26_spill] sm:$0xff] }
 0x1d9   :  { %1701 = vmatprep.mubr.f32.mxu0 %v6846_v43  ;;  %1873 = vmatprep.subr.mxu0 %v5239_v48  ;;  %v1022_v11 = vpop.f32.mrf.mxu0  ;;  %v5319_v3 = vld [vmem:[%s6692_s3 + $0x298] sm:$0xff]  ;;  %v6865_v37 = vld [vmem:[#allocation35_spill] sm:$0xff] }
 0x1da   :  { %v1075_v41 = vmax.f32 %v1057_v20, %v1058_v31  ;;  %v1059_v7 = vmax.f32 %v5082_v35, %v1021_v49  ;;  %1274 = vmatmul.mubr.f32.gmra.mxu1 %v5231_v51  ;;  %1702 = vmatmul.mubr.f32.gmra.mxu0 %v5231_v51  ;;  %v1023_v55 = vadd.f32 %v1022_v11, %v790_v54  ;;  %v5271_v17 = vmax.f32 %v1095_v27, 0.0  ;;  %v6858_v31 = vld [vmem:[#allocation28_spill] sm:$0xff] }
 0x1db   :  { %1303 = vmatpush1.msra.mxu1 %v6849_v4  ;;  %1874 = vmatpush1.msra.mxu0 %v5250_v34  ;;  %v1026_v52 = vpop.f32.mrf.mxu0  ;;  %v6861_v4 = vld [vmem:[#allocation31_spill] sm:$0xff] }
 0x1dc   :  { %v1060_v35 = vmax.f32 %v5084_v36, %v1023_v55  ;;  %1304 = vmatprep.subr.mxu1 %v6851_v18  ;;  %1875 = vmatprep.subr.mxu0 %v5258_v12  ;;  %v1027_v50 = vadd.f32 %v1026_v52, %v794_v47  ;;  %v1096_v16 = vadd.f32 %v5160_v39, %v1075_v41  ;;  %v5347_v41 = vld [vmem:[%s6692_s3 + $0x280] sm:$0xff]  ;;  %v5361_v52 = vld [vmem:[%s6692_s3 + $0x278] sm:$0xff]  ;;  %v5377_v18 = vld [vmem:[%s6692_s3 + $0x268] sm:$0xff] }
 0x1dd   :  { %1305 = vmatpush1.msra.mxu1 %v6853_v38  ;;  %1876 = vmatpush1.msra.mxu0 %v5266_v15  ;;  %v1028_v36 = vpop.f32.mrf.mxu0  ;;  %v6866_v38 = vld [vmem:[#allocation36_spill] sm:$0xff] }
 0x1de   :  { %v1076_v25 = vmax.f32 %v1059_v7, %v1060_v35  ;;  %v1061_v26 = vmax.f32 %v5089_v62, %v1027_v50  ;;  %1279 = vmatprep.mubr.f32.mxu1 %v6846_v43  ;;  %1306 = vmatprep.subr.mxu1 %v6854_v22  ;;  %v1029_v63 = vadd.f32 %v1028_v36, %v796_v8  ;;  %v5311_v29 = vmax.f32 %v1096_v16, 0.0  ;;  %v6863_v8 = vld [vmem:[#allocation33_spill] sm:$0xff]  ;;  %v5384_v50 = vld [vmem:[%s6692_s3 + $0x260] sm:$0xff]  ;;  %v5405_v36 = vld [vmem:[%s6692_s3 + $0x248] sm:$0xff] }
 0x1df   :  { %1707 = vmatprep.mubr.f32.mxu0 %v6846_v43  ;;  %1877 = vmatprep.subr.mxu0 %v5279_v58  ;;  %v1032_v62 = vpop.f32.mrf.mxu0  ;;  %v5370_v35 = vld [vmem:[%s6692_s3 + $0x270] sm:$0xff]  ;;  %v6868_v22 = vld [vmem:[#allocation38_spill] sm:$0xff] }
 0x1e0   :  { %1280 = vmatmul.mubr.f32.gmra.mxu1 %v5271_v17  ;;  %1708 = vmatmul.mubr.f32.gmra.mxu0 %v5271_v17  ;;  %v1062_v59 = vmax.f32 %v5091_v56, %v1029_v63  ;;  %v1033_v20 = vadd.f32 %v1032_v62, %v800_v24  ;;  %v1097_v49 = vadd.f32 %v5160_v39, %v1076_v25  ;;  %v5391_v24 = vld [vmem:[%s6692_s3 + $0x258] sm:$0xff]  ;;  %v5398_v16 = vld [vmem:[%s6692_s3 + $0x250] sm:$0xff]  ;;  %v6869_v62 = vld [vmem:[#allocation39_spill] sm:$0xff] }
 0x1e1   :  { %1307 = vmatpush1.msra.mxu1 %v6856_v42  ;;  %1878 = vmatpush1.msra.mxu0 %v5291_v0  ;;  %v1034_v2 = vpop.f32.mrf.mxu0  ;;  %v6867_v25 = vld [vmem:[#allocation37_spill] sm:$0xff]  ;;  %v5419_v63 = vld [vmem:[%s6692_s3 + $0x238] sm:$0xff]  ;;  %v5440_v42 = vld [vmem:[%s6692_s3 + $0x220] sm:$0xff] }
 0x1e2   :  { %v1077_v54 = vmax.f32 %v1061_v26, %v1062_v59  ;;  %1308 = vmatprep.subr.mxu1 %v6857_v32  ;;  %1879 = vmatprep.subr.mxu0 %v5298_v60  ;;  %v1063_v56 = vmax.f32 %v5096_v1, %v1033_v20  ;;  %v1035_v27 = vadd.f32 %v1034_v2, %v802_v6  ;;  %v5332_v1 = vld [vmem:[%s6692_s3 + $0x290] sm:$0xff]  ;;  %v5351_v7 = vmax.f32 %v1097_v49, 0.0  ;;  %v5412_v26 = vld [vmem:[%s6692_s3 + $0x240] sm:$0xff]  ;;  %v6870_v6 = vld [vmem:[#allocation40_spill] sm:$0xff] }
 0x1e3   :  { %1309 = vmatpush1.msra.mxu1 %v6858_v31  ;;  %1880 = vmatpush1.msra.mxu0 %v5307_v44  ;;  %v5433_v59 = vld [vmem:[%s6692_s3 + $0x228] sm:$0xff]  ;;  %v6871_v20 = vld [vmem:[#allocation41_spill] sm:$0xff]  ;;  %v6872_v2 = vld [vmem:[#allocation42_spill] sm:$0xff] }
 0x1e4   :  { %v5325_v40 = vadd.f32 %v5160_v39, %v1077_v54  ;;  %1285 = vmatprep.mubr.f32.mxu1 %v6846_v43  ;;  %1310 = vmatprep.subr.mxu1 %v6859_v23  ;;  %v1064_v47 = vmax.f32 %v5100_v14, %v1035_v27  ;;  %v6860_v14 = vld [vmem:[#allocation30_spill] sm:$0xff]  ;;  %v6873_v32 = vld [vmem:[#allocation43_spill] sm:$0xff]  ;;  %v1086_v27 = vadd.f32 %v5160_v39, %v5117_v30  ;;  %v6874_v31 = vld [vmem:[#allocation44_spill] sm:$0xff] }
 0x1e5   :  { %1713 = vmatprep.mubr.f32.mxu0 %v6846_v43  ;;  %1881 = vmatprep.subr.mxu0 %v5319_v3  ;;  %v5447_v54 = vld [vmem:[%s6692_s3 + $0x218] sm:$0xff]  ;;  %v5463_v49 = vld [vmem:[%s6692_s3 + $0x208] sm:$0xff]  ;;  %v6875_v23 = vld [vmem:[#allocation45_spill] sm:$0xff] }
 0x1e6   :  { %1286 = vmatmul.mubr.f32.gmra.mxu1 %v5311_v29  ;;  %1714 = vmatmul.mubr.f32.gmra.mxu0 %v5311_v29  ;;  %v1078_v11 = vmax.f32 %v1063_v56, %v1064_v47  ;;  %v5454_v56 = vld [vmem:[%s6692_s3 + $0x210] sm:$0xff]  ;;  %v6876_v47 = vld [vmem:[#allocation46_spill] sm:$0xff]  ;;  %v5472_v30 = vld [vmem:[%s6692_s3 + $0x200] sm:$0xff] }
 0x1e7   :  { %1311 = vmatpush1.msra.mxu1 %v6860_v14  ;;  %1882 = vmatpush1.msra.mxu0 %v5332_v1  ;;  %v1100_v14 = vmax.f32 %v1086_v27, 0.0  ;;  %v3562_v27 = vld [vmem:[%s6692_s3 + $0x1c8] sm:$0xff] }
 0x1e8   :  { %v5354_v55 = vadd.f32 %v5160_v39, %v1078_v11  ;;  %1312 = vmatprep.subr.mxu1 %v6861_v4  ;;  %1883 = vmatprep.subr.mxu0 %v5340_v10  ;;  %v6877_v11 = vld [vmem:[#allocation47_spill] sm:$0xff]  ;;  %v6878_v4 = vld [vmem:[#allocation48_spill] sm:$0xff] }
 0x1e9   :  { %1313 = vmatpush1.msra.mxu1 %v6862_v53  ;;  %1884 = vmatpush1.msra.mxu0 %v5347_v41  ;;  %v5481_v53 = vld [vmem:[%s6692_s3 + $0x3f8] sm:$0xff] }
 0x1ea   :  { %1291 = vmatprep.mubr.f32.mxu1 %v6846_v43  ;;  %1314 = vmatprep.subr.mxu1 %v6863_v8  ;;  %v5488_v8 = vld [vmem:[%s6692_s3 + $0x3f0] sm:$0xff] }
 0x1eb   :  { %1719 = vmatprep.mubr.f32.mxu0 %v6846_v43  ;;  %1885 = vmatprep.subr.mxu0 %v5361_v52 }
 0x1ec   :  { %1292 = vmatmul.mubr.f32.gmra.mxu1 %v5351_v7  ;;  %1720 = vmatmul.mubr.f32.gmra.mxu0 %v5351_v7 }
 0x1ed   :  { %1315 = vmatpush1.msra.mxu1 %v6864_v21  ;;  %1886 = vmatpush1.msra.mxu0 %v5370_v35  ;;  %v6879_v21 = vld [vmem:[#allocation49_spill] sm:$0xff] }
 0x1ee   :  { %1316 = vmatprep.subr.mxu1 %v6865_v37  ;;  %1887 = vmatprep.subr.mxu0 %v5377_v18  ;;  %v5494_v37 = vld [vmem:[%s6692_s3 + $0x3e8] sm:$0xff] }
 0x1ef   :  { %1317 = vmatpush1.msra.mxu1 %v6866_v38  ;;  %1888 = vmatpush1.msra.mxu0 %v5384_v50  ;;  %v1087_v38 = vadd.f32 %v5160_v39, %v5128_v19 }
 0x1f0   :  { %1318 = vmatprep.subr.mxu1 %v6867_v25  ;;  %1889 = vmatprep.subr.mxu0 %v5391_v24  ;;  %v5505_v25 = vld [vmem:[%s6692_s3 + $0x3e0] sm:$0xff] }
 0x1f1   :  { %1319 = vmatpush1.msra.mxu1 %v6868_v22  ;;  %1890 = vmatpush1.msra.mxu0 %v5398_v16  ;;  %v5511_v19 = vmax.f32 %v1087_v38, 0.0  ;;  %v1088_v22 = vadd.f32 %v5160_v39, %v5139_v33  ;;  %v5541_v33 = vld [vmem:[%s6692_s3 + $0x3c0] sm:$0xff] }
 0x1f2   :  { %1320 = vmatprep.subr.mxu1 %v6869_v62  ;;  %1891 = vmatprep.subr.mxu0 %v5405_v36  ;;  %v1089_v62 = vadd.f32 %v5160_v39, %v5148_v28  ;;  %v5577_v28 = vld [vmem:[%s6692_s3 + $0x3a0] sm:$0xff] }
 0x1f3   :  { %1321 = vmatpush1.msra.mxu1 %v6870_v6  ;;  %1892 = vmatpush1.msra.mxu0 %v5412_v26  ;;  %v5626_v6 = vmax.f32 %v5325_v40, 0.0  ;;  %v5647_v40 = vld [vmem:[%s6692_s3 + $0x360] sm:$0xff] }
 0x1f4   :  { %1322 = vmatprep.subr.mxu1 %v6871_v20  ;;  %1893 = vmatprep.subr.mxu0 %v5419_v63  ;;  %v5581_v39 = vmax.f32 %v1089_v62, 0.0  ;;  %v3556_v20 = vld [vmem:[%s6692_s3 + $0x1f8] sm:$0xff]  ;;  %v3571_v38 = vld [vmem:[%s6692_s3 + $0x180] sm:$0xff]  ;;  %v3573_v62 = vld [vmem:[%s6692_s3 + $0x170] sm:$0xff] }
 0x1f5   :  { %1323 = vmatpush1.msra.mxu1 %v6872_v2  ;;  %1894 = vmatpush1.msra.mxu0 %v5426_v61  ;;  %v3558_v2 = vld [vmem:[%s6692_s3 + $0x1e8] sm:$0xff] }
 0x1f6   :  { %1324 = vmatprep.subr.mxu1 %v6873_v32  ;;  %1895 = vmatprep.subr.mxu0 %v5433_v59  ;;  %v3560_v32 = vld [vmem:[%s6692_s3 + $0x1d8] sm:$0xff] }
 0x1f7   :  { %1325 = vmatpush1.msra.mxu1 %v6874_v31  ;;  %1896 = vmatpush1.msra.mxu0 %v5440_v42  ;;  %v3563_v31 = vld [vmem:[%s6692_s3 + $0x1c0] sm:$0xff] }
 0x1f8   :  { %1326 = vmatprep.subr.mxu1 %v6875_v23  ;;  %1897 = vmatprep.subr.mxu0 %v5447_v54  ;;  %v3565_v23 = vld [vmem:[%s6692_s3 + $0x1b0] sm:$0xff] }
 0x1f9   :  { %1327 = vmatpush1.msra.mxu1 %v6876_v47  ;;  %1898 = vmatpush1.msra.mxu0 %v5454_v56  ;;  %v3566_v47 = vld [vmem:[%s6692_s3 + $0x1a8] sm:$0xff] }
 0x1fa   :  { %1328 = vmatprep.subr.mxu1 %v6877_v11  ;;  %1899 = vmatprep.subr.mxu0 %v5463_v49  ;;  %v3567_v11 = vld [vmem:[%s6692_s3 + $0x1a0] sm:$0xff] }
 0x1fb   :  { %1329 = vmatpush1.msra.mxu1 %v6878_v4  ;;  %1362 = vmatprep.mubr.f32.mxu1 %v6846_v43  ;;  %v3570_v4 = vld [vmem:[%s6692_s3 + $0x188] sm:$0xff] }
 0x1fc   :  { %1900 = vmatpush1.msra.mxu0 %v5472_v30  ;;  %1933 = vmatprep.mubr.f32.mxu0 %v6846_v43 }
 0x1fd   :  { %1363 = vmatmul.mubr.f32.vlgmr.msra.gmra.mxu1 %v1100_v14  ;;  %1431 = vmatprep.subr.mxu1 %v6879_v21  ;;  %v3568_v14 = vld [vmem:[%s6692_s3 + $0x198] sm:$0xff]  ;;  %v1106_v21 = vmax.f32 %v5194_v13, 0.0 }
 0x1fe   :  { %1934 = vmatmul.mubr.f32.vlgmr.msra.gmra.mxu0 %v5231_v51  ;;  %2117 = vmatprep.subr.mxu0 %v5481_v53 }
 0x1ff   :  { %1432 = vmatpush1.msra.mxu1 %v5211_v9  ;;  %2118 = vmatpush1.msra.mxu0 %v5488_v8  ;;  %v5516_v9 = vld [vmem:[%s6692_s3 + $0x3d8] sm:$0xff] }
 0x200   :  { %1433 = vmatprep.subr.mxu1 %v5219_v57  ;;  %2119 = vmatprep.subr.mxu0 %v5494_v37  ;;  %v5523_v57 = vld [vmem:[%s6692_s3 + $0x3d0] sm:$0xff] }
 0x201   :  { %1368 = vmatprep.mubr.f32.mxu1 %v6846_v43  ;;  %1434 = vmatpush1.msra.mxu1 %v5225_v45  ;;  %v5532_v45 = vld [vmem:[%s6692_s3 + $0x3c8] sm:$0xff] }
 0x202   :  { %1939 = vmatprep.mubr.f32.mxu0 %v6846_v43  ;;  %2120 = vmatpush1.msra.mxu0 %v5505_v25 }
 0x203   :  { %1369 = vmatmul.mubr.f32.gmra.mxu1 %v5511_v19  ;;  %1435 = vmatprep.subr.mxu1 %v5239_v48  ;;  %v5545_v48 = vmax.f32 %v1088_v22, 0.0  ;;  %v3572_v22 = vld [vmem:[%s6692_s3 + $0x178] sm:$0xff] }
 0x204   :  { %1940 = vmatmul.mubr.f32.gmra.mxu0 %v5271_v17  ;;  %2121 = vmatprep.subr.mxu0 %v5516_v9 }
 0x205   :  { %1436 = vmatpush1.msra.mxu1 %v5250_v34  ;;  %2122 = vmatpush1.msra.mxu0 %v5523_v57  ;;  %v5552_v34 = vld [vmem:[%s6692_s3 + $0x3b8] sm:$0xff] }
 0x206   :  { %1437 = vmatprep.subr.mxu1 %v5258_v12  ;;  %2123 = vmatprep.subr.mxu0 %v5532_v45  ;;  %v5559_v12 = vld [vmem:[%s6692_s3 + $0x3b0] sm:$0xff] }
 0x207   :  { %1374 = vmatprep.mubr.f32.mxu1 %v6846_v43  ;;  %1438 = vmatpush1.msra.mxu1 %v5266_v15  ;;  %v5568_v15 = vld [vmem:[%s6692_s3 + $0x3a8] sm:$0xff] }
 0x208   :  { %1945 = vmatprep.mubr.f32.mxu0 %v6846_v43  ;;  %2124 = vmatpush1.msra.mxu0 %v5541_v33 }
 0x209   :  { %1375 = vmatmul.mubr.f32.gmra.mxu1 %v5545_v48  ;;  %1439 = vmatprep.subr.mxu1 %v5279_v58  ;;  %v5588_v58 = vld [vmem:[%s6692_s3 + $0x398] sm:$0xff] }
 0x20a   :  { %1946 = vmatmul.mubr.f32.gmra.mxu0 %v5311_v29  ;;  %2125 = vmatprep.subr.mxu0 %v5552_v34 }
 0x20b   :  { %1440 = vmatpush1.msra.mxu1 %v5291_v0  ;;  %2126 = vmatpush1.msra.mxu0 %v5559_v12  ;;  %v5595_v0 = vld [vmem:[%s6692_s3 + $0x390] sm:$0xff] }
 0x20c   :  { %1441 = vmatprep.subr.mxu1 %v5298_v60  ;;  %2127 = vmatprep.subr.mxu0 %v5568_v15  ;;  %v5602_v60 = vld [vmem:[%s6692_s3 + $0x388] sm:$0xff] }
 0x20d   :  { %1380 = vmatprep.mubr.f32.mxu1 %v6846_v43  ;;  %1442 = vmatpush1.msra.mxu1 %v5307_v44  ;;  %v5611_v44 = vld [vmem:[%s6692_s3 + $0x380] sm:$0xff] }
 0x20e   :  { %1951 = vmatprep.mubr.f32.mxu0 %v6846_v43  ;;  %2128 = vmatpush1.msra.mxu0 %v5577_v28 }
 0x20f   :  { %1381 = vmatmul.mubr.f32.gmra.mxu1 %v5581_v39  ;;  %1443 = vmatprep.subr.mxu1 %v5319_v3  ;;  %v5616_v3 = vmax.f32 %v5165_v46, 0.0  ;;  %v5633_v46 = vld [vmem:[%s6692_s3 + $0x370] sm:$0xff] }
 0x210   :  { %1952 = vmatmul.mubr.f32.gmra.mxu0 %v5351_v7  ;;  %2129 = vmatprep.subr.mxu0 %v5588_v58 }
 0x211   :  { %1444 = vmatpush1.msra.mxu1 %v5332_v1  ;;  %2130 = vmatpush1.msra.mxu0 %v5595_v0  ;;  %v5623_v1 = vld [vmem:[%s6692_s3 + $0x378] sm:$0xff] }
 0x212   :  { %1445 = vmatprep.subr.mxu1 %v5340_v10  ;;  %2131 = vmatprep.subr.mxu0 %v5602_v60  ;;  %v5640_v10 = vld [vmem:[%s6692_s3 + $0x368] sm:$0xff] }
 0x213   :  { %1386 = vmatprep.mubr.f32.mxu1 %v6846_v43  ;;  %1446 = vmatpush1.msra.mxu1 %v5347_v41  ;;  %v5654_v41 = vld [vmem:[%s6692_s3 + $0x358] sm:$0xff] }
 0x214   :  { %1957 = vmatprep.mubr.f32.mxu0 %v6846_v43  ;;  %2132 = vmatpush1.msra.mxu0 %v5611_v44 }
 0x215   :  { %1387 = vmatmul.mubr.f32.gmra.mxu1 %v5616_v3  ;;  %1447 = vmatprep.subr.mxu1 %v5361_v52  ;;  %v5661_v52 = vld [vmem:[%s6692_s3 + $0x350] sm:$0xff] }
 0x216   :  { %1958 = vmatmul.mubr.f32.gmra.mxu0 %v5626_v6  ;;  %2133 = vmatprep.subr.mxu0 %v5623_v1 }
 0x217   :  { %1448 = vmatpush1.msra.mxu1 %v5370_v35  ;;  %2134 = vmatpush1.msra.mxu0 %v5633_v46  ;;  %v5668_v35 = vld [vmem:[%s6692_s3 + $0x348] sm:$0xff] }
 0x218   :  { %1449 = vmatprep.subr.mxu1 %v5377_v18  ;;  %2135 = vmatprep.subr.mxu0 %v5640_v10  ;;  %v5675_v18 = vld [vmem:[%s6692_s3 + $0x340] sm:$0xff] }
 0x219   :  { %1450 = vmatpush1.msra.mxu1 %v5384_v50  ;;  %2136 = vmatpush1.msra.mxu0 %v5647_v40  ;;  %v5682_v50 = vld [vmem:[%s6692_s3 + $0x338] sm:$0xff] }
 0x21a   :  { %1451 = vmatprep.subr.mxu1 %v5391_v24  ;;  %2137 = vmatprep.subr.mxu0 %v5654_v41  ;;  %v5689_v24 = vld [vmem:[%s6692_s3 + $0x330] sm:$0xff] }
 0x21b   :  { %1452 = vmatpush1.msra.mxu1 %v5398_v16  ;;  %2138 = vmatpush1.msra.mxu0 %v5661_v52  ;;  %v5696_v16 = vld [vmem:[%s6692_s3 + $0x328] sm:$0xff] }
 0x21c   :  { %1453 = vmatprep.subr.mxu1 %v5405_v36  ;;  %2139 = vmatprep.subr.mxu0 %v5668_v35  ;;  %v5703_v36 = vld [vmem:[%s6692_s3 + $0x320] sm:$0xff] }
 0x21d   :  { %1454 = vmatpush1.msra.mxu1 %v5412_v26  ;;  %2140 = vmatpush1.msra.mxu0 %v5675_v18  ;;  %v5710_v26 = vld [vmem:[%s6692_s3 + $0x318] sm:$0xff] }
 0x21e   :  { %1455 = vmatprep.subr.mxu1 %v5419_v63  ;;  %2141 = vmatprep.subr.mxu0 %v5682_v50  ;;  %v5717_v63 = vld [vmem:[%s6692_s3 + $0x310] sm:$0xff] }
 0x21f   :  { %1456 = vmatpush1.msra.mxu1 %v5426_v61  ;;  %2142 = vmatpush1.msra.mxu0 %v5689_v24  ;;  %v5724_v61 = vld [vmem:[%s6692_s3 + $0x308] sm:$0xff] }
 0x220   :  { %1457 = vmatprep.subr.mxu1 %v5433_v59  ;;  %2143 = vmatprep.subr.mxu0 %v5696_v16  ;;  %v5733_v59 = vld [vmem:[%s6692_s3 + $0x300] sm:$0xff] }
 0x221   :  { %1458 = vmatpush1.msra.mxu1 %v5440_v42  ;;  %2144 = vmatpush1.msra.mxu0 %v5703_v36  ;;  %v3557_v42 = vld [vmem:[%s6692_s3 + $0x1f0] sm:$0xff] }
 0x222   :  { %1459 = vmatprep.subr.mxu1 %v5447_v54  ;;  %2145 = vmatprep.subr.mxu0 %v5710_v26  ;;  %v3559_v54 = vld [vmem:[%s6692_s3 + $0x1e0] sm:$0xff] }
 0x223   :  { %1460 = vmatpush1.msra.mxu1 %v5454_v56  ;;  %2146 = vmatpush1.msra.mxu0 %v5717_v63  ;;  %v3561_v56 = vld [vmem:[%s6692_s3 + $0x1d0] sm:$0xff] }
 0x224   :  { %1461 = vmatprep.subr.mxu1 %v5463_v49  ;;  %2147 = vmatprep.subr.mxu0 %v5724_v61  ;;  %v3564_v49 = vld [vmem:[%s6692_s3 + $0x1b8] sm:$0xff] }
 0x225   :  { %1462 = vmatpush1.msra.mxu1 %v5472_v30  ;;  %1495 = vmatprep.mubr.f32.mxu1 %v6846_v43  ;;  %v5786_v30 = vmax.f32 %v5181_v5, 0.0  ;;  %v3569_v5 = vld [vmem:[%s6692_s3 + $0x190] sm:$0xff] }
 0x226   :  { %2148 = vmatpush1.msra.mxu0 %v5733_v59  ;;  %2181 = vmatprep.mubr.f32.mxu0 %v6846_v43 }
 0x227   :  { %1496 = vmatmul.mubr.f32.vlgmr.msra.gmra.mxu1 %v5511_v19  ;;  %1536 = vmatprep.subr.mxu1 %v3556_v20  ;;  %v3574_v20 = vld [vmem:[%s6692_s3 + $0x168] sm:$0xff] }
 0x228   :  { %2182 = vmatmul.mubr.f32.vlgmr.msra.gmra.mxu0 %v5545_v48  ;;  %1537 = vmatpush1.msra.mxu1 %v3557_v42  ;;  %v3575_v42 = vld [vmem:[%s6692_s3 + $0x160] sm:$0xff] }
 0x229   :  { %1538 = vmatprep.subr.mxu1 %v3558_v2  ;;  %1501 = vmatprep.mubr.f32.mxu1 %v6846_v43  ;;  %v3576_v2 = vld [vmem:[%s6692_s3 + $0x158] sm:$0xff] }
 0x22a   :  { %1539 = vmatpush1.msra.mxu1 %v3559_v54  ;;  %2187 = vmatprep.mubr.f32.mxu0 %v6846_v43  ;;  %v3577_v54 = vld [vmem:[%s6692_s3 + $0x150] sm:$0xff] }
 0x22b   :  { %1502 = vmatmul.mubr.f32.gmra.mxu1 %v5545_v48  ;;  %1540 = vmatprep.subr.mxu1 %v3560_v32  ;;  %v3578_v32 = vld [vmem:[%s6692_s3 + $0x148] sm:$0xff] }
 0x22c   :  { %2188 = vmatmul.mubr.f32.gmra.mxu0 %v5581_v39  ;;  %1541 = vmatpush1.msra.mxu1 %v3561_v56  ;;  %v3579_v56 = vld [vmem:[%s6692_s3 + $0x140] sm:$0xff] }
 0x22d   :  { %1542 = vmatprep.subr.mxu1 %v3562_v27  ;;  %1507 = vmatprep.mubr.f32.mxu1 %v6846_v43  ;;  %v3580_v27 = vld [vmem:[%s6692_s3 + $0x138] sm:$0xff] }
 0x22e   :  { %1543 = vmatpush1.msra.mxu1 %v3563_v31  ;;  %2193 = vmatprep.mubr.f32.mxu0 %v6846_v43  ;;  %v3581_v31 = vld [vmem:[%s6692_s3 + $0x130] sm:$0xff] }
 0x22f   :  { %1508 = vmatmul.mubr.f32.gmra.mxu1 %v5581_v39  ;;  %1544 = vmatprep.subr.mxu1 %v3564_v49  ;;  %v3582_v49 = vld [vmem:[%s6692_s3 + $0x128] sm:$0xff] }
 0x230   :  { %2194 = vmatmul.mubr.f32.gmra.mxu0 %v5616_v3  ;;  %1545 = vmatpush1.msra.mxu1 %v3565_v23  ;;  %v3583_v23 = vld [vmem:[%s6692_s3 + $0x120] sm:$0xff] }
 0x231   :  { %1546 = vmatprep.subr.mxu1 %v3566_v47  ;;  %1513 = vmatprep.mubr.f32.mxu1 %v6846_v43  ;;  %v3584_v47 = vld [vmem:[%s6692_s3 + $0x118] sm:$0xff] }
 0x232   :  { %1547 = vmatpush1.msra.mxu1 %v3567_v11  ;;  %2199 = vmatprep.mubr.f32.mxu0 %v6846_v43  ;;  %v3585_v11 = vld [vmem:[%s6692_s3 + $0x110] sm:$0xff] }
 0x233   :  { %1514 = vmatmul.mubr.f32.gmra.mxu1 %v5616_v3  ;;  %1548 = vmatprep.subr.mxu1 %v3568_v14  ;;  %v3586_v14 = vld [vmem:[%s6692_s3 + $0x108] sm:$0xff] }
 0x234   :  { %2200 = vmatmul.mubr.f32.gmra.mxu0 %v5786_v30  ;;  %1549 = vmatpush1.msra.mxu1 %v3569_v5  ;;  %v3587_v5 = vld [vmem:[%s6692_s3 + $0x100] sm:$0xff] }
 0x235   :  { %1550 = vmatprep.subr.mxu1 %v3570_v4  ;;  %1519 = vmatprep.mubr.f32.mxu1 %v6846_v43 }
 0x236   :  { %1551 = vmatpush1.msra.mxu1 %v3571_v38  ;;  %2205 = vmatprep.mubr.f32.mxu0 %v6846_v43 }
 0x237   :  { %1520 = vmatmul.mubr.f32.gmra.mxu1 %v5786_v30  ;;  %1552 = vmatprep.subr.mxu1 %v3572_v22 }
 0x238   :  { %2206 = vmatmul.mubr.f32.gmra.mxu0 %v1106_v21  ;;  %1553 = vmatpush1.msra.mxu1 %v3573_v62 }
 0x239   :  { %1554 = vmatprep.subr.mxu1 %v3574_v20  ;;  %1600 = vmatprep.mubr.f32.mxu1 %v6846_v43 }
 0x23a   :  { %1555 = vmatpush1.msra.mxu1 %v3575_v42  ;;  %3321 = vmatprep.subr.mxu0 %v6846_v43 }
 0x23b   :  { %1556 = vmatprep.subr.mxu1 %v3576_v2  ;;  %3353 = vmatprep.mubr.msk.f32.mxu0 %vm3589_vm0, %v6846_v43 }
 0x23c   :  { %1557 = vmatpush1.msra.mxu1 %v3577_v54 }
 0x23d   :  { %1558 = vmatprep.subr.mxu1 %v3578_v32 }
 0x23e   :  { %1559 = vmatpush1.msra.mxu1 %v3579_v56 }
 0x23f   :  { %1560 = vmatprep.subr.mxu1 %v3580_v27 }
 0x240   :  { %1561 = vmatpush1.msra.mxu1 %v3581_v31 }
 0x241   :  { %1562 = vmatprep.subr.mxu1 %v3582_v49 }
 0x242   :  { %1563 = vmatpush1.msra.mxu1 %v3583_v23 }
 0x243   :  { %1564 = vmatprep.subr.mxu1 %v3584_v47 }
 0x244   :  { %1565 = vmatpush1.msra.mxu1 %v3585_v11  ;;  %v2379_v11 = vld [vmem:[%s6694_s5 + $0x78] sm:$0xff] }
 0x245   :  { %1566 = vmatprep.subr.mxu1 %v3586_v14 }
 0x246   :  { %1567 = vmatpush1.msra.mxu1 %v3587_v5 }
 0x247   :  { %1601 = vmatmul.mubr.f32.vlgmr.msra.gmra.mxu1 %v5511_v19  ;;  %1764 = vmatprep.subr.mxu1 %v5481_v53  ;;  %v5905_v53 = vld [vmem:[%s6692_s3 + $0x4f8] sm:$0xff] }
 0x248   :  { %1765 = vmatpush1.msra.mxu1 %v5488_v8  ;;  %1606 = vmatprep.mubr.f32.mxu1 %v6846_v43  ;;  %v5911_v8 = vld [vmem:[%s6692_s3 + $0x4f0] sm:$0xff]  ;;  %v5931_v19 = vld [vmem:[%s6692_s3 + $0x4d8] sm:$0xff] }
 0x249   :  { %1766 = vmatprep.subr.mxu1 %v5494_v37  ;;  %v5917_v37 = vld [vmem:[%s6692_s3 + $0x4e8] sm:$0xff] }
 0x24a   :  { %1767 = vmatpush1.msra.mxu1 %v5505_v25  ;;  %v5924_v25 = vld [vmem:[%s6692_s3 + $0x4e0] sm:$0xff] }
 0x24b   :  { %1607 = vmatmul.mubr.f32.gmra.mxu1 %v5545_v48  ;;  %1768 = vmatprep.subr.mxu1 %v5516_v9  ;;  %v5943_v9 = vld [vmem:[%s6692_s3 + $0x4c8] sm:$0xff] }
 0x24c   :  { %1769 = vmatpush1.msra.mxu1 %v5523_v57  ;;  %1612 = vmatprep.mubr.f32.mxu1 %v6846_v43  ;;  %v5950_v57 = vld [vmem:[%s6692_s3 + $0x4c0] sm:$0xff] }
 0x24d   :  { %1770 = vmatprep.subr.mxu1 %v5532_v45  ;;  %v5957_v45 = vld [vmem:[%s6692_s3 + $0x4b8] sm:$0xff] }
 0x24e   :  { %1771 = vmatpush1.msra.mxu1 %v5541_v33  ;;  %v5963_v33 = vld [vmem:[%s6692_s3 + $0x4b0] sm:$0xff] }
 0x24f   :  { %1613 = vmatmul.mubr.f32.gmra.mxu1 %v5581_v39  ;;  %1772 = vmatprep.subr.mxu1 %v5552_v34  ;;  %v5969_v34 = vld [vmem:[%s6692_s3 + $0x4a8] sm:$0xff] }
 0x250   :  { %1773 = vmatpush1.msra.mxu1 %v5559_v12  ;;  %1618 = vmatprep.mubr.f32.mxu1 %v6846_v43  ;;  %v5976_v12 = vld [vmem:[%s6692_s3 + $0x4a0] sm:$0xff] }
 0x251   :  { %1774 = vmatprep.subr.mxu1 %v5568_v15  ;;  %v5983_v15 = vld [vmem:[%s6692_s3 + $0x498] sm:$0xff] }
 0x252   :  { %1775 = vmatpush1.msra.mxu1 %v5577_v28  ;;  %v5989_v28 = vld [vmem:[%s6692_s3 + $0x490] sm:$0xff] }
 0x253   :  { %1619 = vmatmul.mubr.f32.gmra.mxu1 %v5616_v3  ;;  %1776 = vmatprep.subr.mxu1 %v5588_v58  ;;  %v5995_v58 = vld [vmem:[%s6692_s3 + $0x488] sm:$0xff] }
 0x254   :  { %1777 = vmatpush1.msra.mxu1 %v5595_v0  ;;  %1624 = vmatprep.mubr.f32.mxu1 %v6846_v43  ;;  %v3121_v0 = vld [vmem:[%s6692_s3 + $0x480] sm:$0xff] }
 0x255   :  { %1778 = vmatprep.subr.mxu1 %v5602_v60  ;;  %v3120_v60 = vld [vmem:[%s6692_s3 + $0x478] sm:$0xff] }
 0x256   :  { %1779 = vmatpush1.msra.mxu1 %v5611_v44  ;;  %v3119_v44 = vld [vmem:[%s6692_s3 + $0x470] sm:$0xff] }
 0x257   :  { %1625 = vmatmul.mubr.f32.gmra.mxu1 %v5786_v30  ;;  %1780 = vmatprep.subr.mxu1 %v5623_v1  ;;  %v3118_v1 = vld [vmem:[%s6692_s3 + $0x468] sm:$0xff] }
 0x258   :  { %1781 = vmatpush1.msra.mxu1 %v5633_v46  ;;  %1828 = vmatprep.mubr.f32.mxu1 %v6846_v43  ;;  %v3117_v46 = vld [vmem:[%s6692_s3 + $0x460] sm:$0xff] }
 0x259   :  { %1782 = vmatprep.subr.mxu1 %v5640_v10  ;;  %v3116_v10 = vld [vmem:[%s6692_s3 + $0x458] sm:$0xff] }
 0x25a   :  { %1783 = vmatpush1.msra.mxu1 %v5647_v40  ;;  %v3115_v40 = vld [vmem:[%s6692_s3 + $0x450] sm:$0xff] }
 0x25b   :  { %1784 = vmatprep.subr.mxu1 %v5654_v41  ;;  %v3114_v41 = vld [vmem:[%s6692_s3 + $0x448] sm:$0xff] }
 0x25c   :  { %1785 = vmatpush1.msra.mxu1 %v5661_v52  ;;  %v3113_v52 = vld [vmem:[%s6692_s3 + $0x440] sm:$0xff] }
 0x25d   :  { %1786 = vmatprep.subr.mxu1 %v5668_v35  ;;  %v3112_v35 = vld [vmem:[%s6692_s3 + $0x438] sm:$0xff] }
 0x25e   :  { %1787 = vmatpush1.msra.mxu1 %v5675_v18  ;;  %v3111_v18 = vld [vmem:[%s6692_s3 + $0x430] sm:$0xff] }
 0x25f   :  { %1788 = vmatprep.subr.mxu1 %v5682_v50  ;;  %v3110_v50 = vld [vmem:[%s6692_s3 + $0x428] sm:$0xff] }
 0x260   :  { %1789 = vmatpush1.msra.mxu1 %v5689_v24  ;;  %v3109_v24 = vld [vmem:[%s6692_s3 + $0x420] sm:$0xff] }
 0x261   :  { %1790 = vmatprep.subr.mxu1 %v5696_v16  ;;  %v3108_v16 = vld [vmem:[%s6692_s3 + $0x418] sm:$0xff] }
 0x262   :  { %1791 = vmatpush1.msra.mxu1 %v5703_v36  ;;  %v3107_v36 = vld [vmem:[%s6692_s3 + $0x410] sm:$0xff] }
 0x263   :  { %1792 = vmatprep.subr.mxu1 %v5710_v26  ;;  %v3106_v26 = vld [vmem:[%s6692_s3 + $0x408] sm:$0xff] }
 0x264   :  { %1793 = vmatpush1.msra.mxu1 %v5717_v63  ;;  %v3105_v63 = vld [vmem:[%s6692_s3 + $0x400] sm:$0xff] }
 0x265   :  { %1794 = vmatprep.subr.mxu1 %v5724_v61 }
 0x266   :  { %1795 = vmatpush1.msra.mxu1 %v5733_v59 }
 0x267   :  { %1829 = vmatmul.mubr.f32.vlgmr.msra.gmra.mxu1 %v5231_v51  ;;  %2012 = vmatprep.subr.mxu1 %v5905_v53  ;;  %v5937_v51 = vld [vmem:[%s6692_s3 + $0x4d0] sm:$0xff] }
 0x268   :  { %2013 = vmatpush1.msra.mxu1 %v5911_v8  ;;  %1834 = vmatprep.mubr.f32.mxu1 %v6846_v43 }
 0x269   :  { %2014 = vmatprep.subr.mxu1 %v5917_v37 }
 0x26a   :  { %2015 = vmatpush1.msra.mxu1 %v5924_v25 }
 0x26b   :  { %1835 = vmatmul.mubr.f32.gmra.mxu1 %v5271_v17  ;;  %2016 = vmatprep.subr.mxu1 %v5931_v19 }
 0x26c   :  { %2017 = vmatpush1.msra.mxu1 %v5937_v51  ;;  %1840 = vmatprep.mubr.f32.mxu1 %v6846_v43 }
 0x26d   :  { %2018 = vmatprep.subr.mxu1 %v5943_v9 }
 0x26e   :  { %2019 = vmatpush1.msra.mxu1 %v5950_v57 }
 0x26f   :  { %1841 = vmatmul.mubr.f32.gmra.mxu1 %v5311_v29  ;;  %2020 = vmatprep.subr.mxu1 %v5957_v45 }
 0x270   :  { %2021 = vmatpush1.msra.mxu1 %v5963_v33  ;;  %1846 = vmatprep.mubr.f32.mxu1 %v6846_v43 }
 0x271   :  { %2022 = vmatprep.subr.mxu1 %v5969_v34 }
 0x272   :  { %2023 = vmatpush1.msra.mxu1 %v5976_v12 }
 0x273   :  { %1847 = vmatmul.mubr.f32.gmra.mxu1 %v5351_v7  ;;  %2024 = vmatprep.subr.mxu1 %v5983_v15 }
 0x274   :  { %2025 = vmatpush1.msra.mxu1 %v5989_v28  ;;  %1852 = vmatprep.mubr.f32.mxu1 %v6846_v43 }
 0x275   :  { %2026 = vmatprep.subr.mxu1 %v5995_v58 }
 0x276   :  { %2027 = vmatpush1.msra.mxu1 %v3121_v0 }
 0x277   :  { %1853 = vmatmul.mubr.f32.gmra.mxu1 %v5626_v6  ;;  %2028 = vmatprep.subr.mxu1 %v3120_v60 }
 0x278   :  { %2029 = vmatpush1.msra.mxu1 %v3119_v44  ;;  %2076 = vmatprep.mubr.f32.mxu1 %v6846_v43 }
 0x279   :  { %2030 = vmatprep.subr.mxu1 %v3118_v1 }
 0x27a   :  { %2031 = vmatpush1.msra.mxu1 %v3117_v46 }
 0x27b   :  { %2032 = vmatprep.subr.mxu1 %v3116_v10 }
 0x27c   :  { %2033 = vmatpush1.msra.mxu1 %v3115_v40 }
 0x27d   :  { %2034 = vmatprep.subr.mxu1 %v3114_v41 }
 0x27e   :  { %2035 = vmatpush1.msra.mxu1 %v3113_v52 }
 0x27f   :  { %2036 = vmatprep.subr.mxu1 %v3112_v35 }
 0x280   :  { %2037 = vmatpush1.msra.mxu1 %v3111_v18 }
 0x281   :  { %2038 = vmatprep.subr.mxu1 %v3110_v50 }
 0x282   :  { %2039 = vmatpush1.msra.mxu1 %v3109_v24 }
 0x283   :  { %2040 = vmatprep.subr.mxu1 %v3108_v16 }
 0x284   :  { %2041 = vmatpush1.msra.mxu1 %v3107_v36 }
 0x285   :  { %2042 = vmatprep.subr.mxu1 %v3106_v26 }
 0x286   :  { %2043 = vmatpush1.msra.mxu1 %v3105_v63 }
 0x287   :  { %2077 = vmatmul.mubr.f32.vlgmr.msra.gmra.mxu1 %v5545_v48  ;;  %2227 = vmatprep.subr.mxu1 %v5905_v53 }
 0x288   :  { %2228 = vmatpush1.msra.mxu1 %v5911_v8  ;;  %2082 = vmatprep.mubr.f32.mxu1 %v6846_v43  ;;  %v2378_v8 = vld [vmem:[%s6694_s5 + $0x70] sm:$0xff] }
 0x289   :  { %2229 = vmatprep.subr.mxu1 %v5917_v37 }
 0x28a   :  { %2230 = vmatpush1.msra.mxu1 %v5924_v25 }
 0x28b   :  { %2083 = vmatmul.mubr.f32.gmra.mxu1 %v5581_v39  ;;  %2231 = vmatprep.subr.mxu1 %v5931_v19  ;;  %v3153_v19 = vld [vmem:[%s6694_s5 + $0xf8] sm:$0xff] }
 0x28c   :  { %2232 = vmatpush1.msra.mxu1 %v5937_v51  ;;  %2088 = vmatprep.mubr.f32.mxu1 %v6846_v43  ;;  %v2377_v51 = vld [vmem:[%s6694_s5 + $0x68] sm:$0xff] }
 0x28d   :  { %2233 = vmatprep.subr.mxu1 %v5943_v9  ;;  %3322 = vmatpush3.msra.mxu0 %v3153_v19 }
 0x28e   :  { %2234 = vmatpush1.msra.mxu1 %v5950_v57  ;;  %3323 = vmatprep.subr.mxu0 %v6846_v43  ;;  %v3152_v57 = vld [vmem:[%s6694_s5 + $0xf0] sm:$0xff] }
 0x28f   :  { %2089 = vmatmul.mubr.f32.gmra.mxu1 %v5616_v3  ;;  %2235 = vmatprep.subr.mxu1 %v5957_v45  ;;  %v2376_v45 = vld [vmem:[%s6694_s5 + $0x60] sm:$0xff] }
 0x290   :  { %2236 = vmatpush1.msra.mxu1 %v5963_v33  ;;  %2094 = vmatprep.mubr.f32.mxu1 %v6846_v43  ;;  %v3151_v33 = vld [vmem:[%s6694_s5 + $0xe8] sm:$0xff] }
 0x291   :  { %2237 = vmatprep.subr.mxu1 %v5969_v34  ;;  %3324 = vmatpush3.msra.mxu0 %v3152_v57  ;;  %v2375_v34 = vld [vmem:[%s6694_s5 + $0x58] sm:$0xff] }
 0x292   :  { %2238 = vmatpush1.msra.mxu1 %v5976_v12  ;;  %3325 = vmatprep.subr.mxu0 %v6846_v43  ;;  %v3150_v12 = vld [vmem:[%s6694_s5 + $0xe0] sm:$0xff] }
 0x293   :  { %2095 = vmatmul.mubr.f32.gmra.mxu1 %v5786_v30  ;;  %2239 = vmatprep.subr.mxu1 %v5983_v15  ;;  %v2374_v15 = vld [vmem:[%s6694_s5 + $0x50] sm:$0xff] }
 0x294   :  { %2240 = vmatpush1.msra.mxu1 %v5989_v28  ;;  %2100 = vmatprep.mubr.f32.mxu1 %v6846_v43  ;;  %v1269_v48 = vpop.f32.mrf.mxu1  ;;  %v6105_v49 = vpop.f32.mrf.mxu0 }
 0x295   :  { %2241 = vmatprep.subr.mxu1 %v5995_v58  ;;  %3326 = vmatpush3.msra.mxu0 %v3151_v33  ;;  %v3149_v58 = vld [vmem:[%s6694_s5 + $0xd8] sm:$0xff] }
 0x296   :  { %2242 = vmatpush1.msra.mxu1 %v3121_v0  ;;  %v1271_v39 = vpop.f32.mrf.mxu1  ;;  %v6112_v14 = vpop.f32.mrf.mxu0  ;;  %3327 = vmatprep.subr.mxu0 %v6846_v43  ;;  %v2373_v0 = vld [vmem:[%s6694_s5 + $0x48] sm:$0xff] }
 0x297   :  { %2101 = vmatmul.mubr.f32.gmra.mxu1 %v1106_v21  ;;  %2243 = vmatprep.subr.mxu1 %v3120_v60  ;;  %v3148_v60 = vld [vmem:[%s6694_s5 + $0xd0] sm:$0xff] }
 0x298   :  { %2244 = vmatpush1.msra.mxu1 %v3119_v44  ;;  %2291 = vmatprep.mubr.f32.mxu1 %v6846_v43  ;;  %v2372_v44 = vld [vmem:[%s6694_s5 + $0x40] sm:$0xff] }
 0x299   :  { %2245 = vmatprep.subr.mxu1 %v3118_v1  ;;  %3328 = vmatpush3.msra.mxu0 %v3150_v12 }
 0x29a   :  { %2246 = vmatpush1.msra.mxu1 %v3117_v46  ;;  %v1275_v3 = vpop.f32.mrf.mxu1  ;;  %v6129_v9 = vpop.f32.mrf.mxu0  ;;  %3329 = vmatprep.subr.mxu0 %v6846_v43  ;;  %v3147_v46 = vld [vmem:[%s6694_s5 + $0xc8] sm:$0xff] }
 0x29b   :  { %2247 = vmatprep.subr.mxu1 %v3116_v10  ;;  %3330 = vmatpush3.msra.mxu0 %v3149_v58  ;;  %v2371_v10 = vld [vmem:[%s6694_s5 + $0x38] sm:$0xff] }
 0x29c   :  { %2248 = vmatpush1.msra.mxu1 %v3115_v40  ;;  %v1277_v13 = vpop.f32.mrf.mxu1  ;;  %v6153_v28 = vpop.f32.mrf.mxu0  ;;  %3331 = vmatprep.subr.mxu0 %v6846_v43  ;;  %v3146_v40 = vld [vmem:[%s6694_s5 + $0xc0] sm:$0xff] }
 0x29d   :  { %2249 = vmatprep.subr.mxu1 %v3114_v41  ;;  %3332 = vmatpush3.msra.mxu0 %v3148_v60  ;;  %v2370_v41 = vld [vmem:[%s6694_s5 + $0x30] sm:$0xff] }
 0x29e   :  { %2250 = vmatpush1.msra.mxu1 %v3113_v52  ;;  %3333 = vmatprep.subr.mxu0 %v6846_v43 }
 0x29f   :  { %2251 = vmatprep.subr.mxu1 %v3112_v35  ;;  %3334 = vmatpush3.msra.mxu0 %v3147_v46 }
 0x2a0   :  { %2252 = vmatpush1.msra.mxu1 %v3111_v18  ;;  %v1281_v61 = vpop.f32.mrf.mxu1  ;;  %v6171_v1 = vpop.f32.mrf.mxu0  ;;  %3335 = vmatprep.subr.mxu0 %v6846_v43 }
 0x2a1   :  { %2253 = vmatprep.subr.mxu1 %v3110_v50  ;;  %3336 = vmatpush3.msra.mxu0 %v3146_v40  ;;  %v3145_v50 = vld [vmem:[%s6694_s5 + $0xb8] sm:$0xff] }
 0x2a2   :  { %2254 = vmatpush1.msra.mxu1 %v3109_v24  ;;  %v1283_v59 = vpop.f32.mrf.mxu1  ;;  %v6189_v52 = vpop.f32.mrf.mxu0  ;;  %3337 = vmatprep.subr.mxu0 %v6846_v43  ;;  %v2369_v24 = vld [vmem:[%s6694_s5 + $0x28] sm:$0xff] }
 0x2a3   :  { %2255 = vmatprep.subr.mxu1 %v3108_v16  ;;  %3338 = vmatpush3.msra.mxu0 %v3145_v50 }
 0x2a4   :  { %2256 = vmatpush1.msra.mxu1 %v3107_v36  ;;  %3339 = vmatprep.subr.mxu0 %v6846_v43 }
 0x2a5   :  { %2257 = vmatprep.subr.mxu1 %v3106_v26 }
 0x2a6   :  { %2258 = vmatpush1.msra.mxu1 %v3105_v63  ;;  %v1287_v30 = vpop.f32.mrf.mxu1  ;;  %v6204_v16 = vpop.f32.mrf.mxu0  ;;  %v3144_v63 = vld [vmem:[%s6694_s5 + $0xb0] sm:$0xff] }
 0x2a7   :  { %2292 = vmatmul.mubr.f32.vlgmr.msra.gmra.mxu1 %v5271_v17  ;;  %3356 = vmatprep.subr.mxu1 %v6846_v43  ;;  %v1113_v17 = vmax.f32 %v5354_v55, 0.0 }
 0x2a8   :  { %2297 = vmatprep.mubr.f32.mxu1 %v6846_v43  ;;  %v1289_v4 = vpop.f32.mrf.mxu1  ;;  %3357 = vmatpush3.msra.mxu1 %v2379_v11 }
 0x2a9   :  { %3358 = vmatprep.subr.mxu1 %v6846_v43  ;;  %3340 = vmatpush3.msra.mxu0 %v3144_v63 }
 0x2aa   :  { %3359 = vmatpush3.msra.mxu1 %v2378_v8  ;;  %3341 = vmatprep.subr.mxu0 %v6846_v43 }
 0x2ab   :  { %2298 = vmatmul.mubr.f32.gmra.mxu1 %v5311_v29  ;;  %3360 = vmatprep.subr.mxu1 %v6846_v43 }
 0x2ac   :  { %2303 = vmatprep.mubr.f32.mxu1 %v6846_v43  ;;  %v1293_v21 = vpop.f32.mrf.mxu1  ;;  %3361 = vmatpush3.msra.mxu1 %v2377_v51 }
 0x2ad   :  { %3362 = vmatprep.subr.mxu1 %v6846_v43 }
 0x2ae   :  { %v1295_v38 = vpop.f32.mrf.mxu1  ;;  %3363 = vmatpush3.msra.mxu1 %v2376_v45 }
 0x2af   :  { %2304 = vmatmul.mubr.f32.gmra.mxu1 %v5351_v7  ;;  %3364 = vmatprep.subr.mxu1 %v6846_v43 }
 0x2b0   :  { %2309 = vmatprep.mubr.f32.mxu1 %v6846_v43  ;;  %3365 = vmatpush3.msra.mxu1 %v2375_v34 }
 0x2b1   :  { %3366 = vmatprep.subr.mxu1 %v6846_v43 }
 0x2b2   :  { %3367 = vmatpush3.msra.mxu1 %v2374_v15 }
 0x2b3   :  { %2310 = vmatmul.mubr.f32.gmra.mxu1 %v5626_v6  ;;  %3368 = vmatprep.subr.mxu1 %v6846_v43 }
 0x2b4   :  { %2315 = vmatprep.mubr.f32.mxu1 %v6846_v43  ;;  %3369 = vmatpush3.msra.mxu1 %v2373_v0 }
 0x2b5   :  { %3370 = vmatprep.subr.mxu1 %v6846_v43 }
 0x2b6   :  { %3371 = vmatpush3.msra.mxu1 %v2372_v44 }
 0x2b7   :  { %2316 = vmatmul.mubr.f32.gmra.mxu1 %v1113_v17  ;;  %3372 = vmatprep.subr.mxu1 %v6846_v43  ;;  %v3142_v17 = vld [vmem:[%s6694_s5 + $0xa0] sm:$0xff] }
 0x2b8   :  { %3373 = vmatpush3.msra.mxu1 %v2371_v10  ;;  %3388 = vmatprep.mubr.msk.f32.mxu1 %vm3589_vm0, %v6846_v43 }
 0x2b9   :  { %3374 = vmatprep.subr.mxu1 %v6846_v43 }
 0x2ba   :  { %3375 = vmatpush3.msra.mxu1 %v2370_v41 }
 0x2bb   :  { %3376 = vmatprep.subr.mxu1 %v6846_v43 }
 0x2bc   :  { %3377 = vmatpush3.msra.mxu1 %v2369_v24 }
 0x2bd   :  { %v1364_v22 = vpop.f32.mrf.mxu1  ;;  %3378 = vmatprep.subr.mxu1 %v6846_v43 }
 0x2be   :  { %v6091_v29 = vadd.f32 %v1364_v22, %v1269_v48  ;;  %v2368_v48 = vld [vmem:[%s6694_s5 + $0x20] sm:$0xff] }
 0x2bf   :  { %v1366_v62 = vpop.f32.mrf.mxu1  ;;  %3379 = vmatpush3.msra.mxu1 %v2368_v48 }
 0x2c0   :  { %v6093_v20 = vadd.f32 %v1366_v62, %v1271_v39  ;;  %3380 = vmatprep.subr.mxu1 %v6846_v43  ;;  %v2365_v62 = vld [vmem:[%s6694_s5 + $0x8] sm:$0xff] }
 0x2c3   :  { %v1370_v7 = vpop.f32.mrf.mxu1 }
 0x2c4   :  { %v6095_v42 = vadd.f32 %v1370_v7, %v1275_v3 }
 0x2c5   :  { %v1372_v2 = vpop.f32.mrf.mxu1 }
 0x2c6   :  { %v6097_v54 = vadd.f32 %v1372_v2, %v1277_v13  ;;  %v3143_v13 = vld [vmem:[%s6694_s5 + $0xa8] sm:$0xff]  ;;  %v3140_v2 = vld [vmem:[%s6694_s5 + $0x90] sm:$0xff] }
 0x2c7   :  { %3342 = vmatpush3.msra.mxu0 %v3143_v13 }
 0x2c8   :  { %3343 = vmatprep.subr.mxu0 %v6846_v43 }
 0x2c9   :  { %v1376_v6 = vpop.f32.mrf.mxu1  ;;  %3344 = vmatpush3.msra.mxu0 %v3142_v17 }
 0x2ca   :  { %v6099_v32 = vadd.f32 %v1376_v6, %v1281_v61  ;;  %v2367_v61 = vld [vmem:[%s6694_s5 + $0x18] sm:$0xff]  ;;  %3345 = vmatprep.subr.mxu0 %v6846_v43 }
 0x2cb   :  { %v1378_v56 = vpop.f32.mrf.mxu1  ;;  %3381 = vmatpush3.msra.mxu1 %v2367_v61 }
 0x2cc   :  { %v6101_v55 = vadd.f32 %v1378_v56, %v1283_v59  ;;  %v6228_v59 = vpop.f32.mrf.mxu0  ;;  %3382 = vmatprep.subr.mxu1 %v6846_v43  ;;  %v3139_v56 = vld [vmem:[%s6694_s5 + $0x88] sm:$0xff] }
 0x2cf   :  { %v1382_v27 = vpop.f32.mrf.mxu1 }
 0x2d0   :  { %v6103_v31 = vadd.f32 %v1382_v27, %v1287_v30 }
 0x2d1   :  { %v1384_v23 = vpop.f32.mrf.mxu1 }
 0x2d2   :  { %v6107_v47 = vadd.f32 %v1384_v23, %v1289_v4 }
 0x2d5   :  { %v1388_v5 = vpop.f32.mrf.mxu1 }
 0x2d6   :  { %v6114_v53 = vadd.f32 %v1388_v5, %v1293_v21  ;;  %v2366_v21 = vld [vmem:[%s6694_s5 + $0x10] sm:$0xff] }
 0x2d7   :  { %v1390_v37 = vpop.f32.mrf.mxu1  ;;  %3383 = vmatpush3.msra.mxu1 %v2366_v21 }
 0x2d8   :  { %v6120_v25 = vadd.f32 %v1390_v37, %v1295_v38  ;;  %3384 = vmatprep.subr.mxu1 %v6846_v43 }
 0x2d9   :  { %3385 = vmatpush3.msra.mxu1 %v2365_v62 }
 0x2da   :  { %3386 = vmatprep.subr.mxu1 %v6846_v43 }
 0x2e7   :  { %v1497_v35 = vpop.f32.mrf.mxu1 }
 0x2e8   :  { %v6194_v18 = vadd.f32 %v1497_v35, %v6091_v29  ;;  %v3141_v29 = vld [vmem:[%s6694_s5 + $0x98] sm:$0xff] }
 0x2e9   :  { %v1499_v36 = vpop.f32.mrf.mxu1  ;;  %3346 = vmatpush3.msra.mxu0 %v3141_v29 }
 0x2ea   :  { %v6207_v26 = vadd.f32 %v1499_v36, %v6093_v20  ;;  %v6252_v20 = vpop.f32.mrf.mxu0  ;;  %3347 = vmatprep.subr.mxu0 %v6846_v43 }
 0x2eb   :  { %v1503_v39 = vpop.f32.mrf.mxu1  ;;  %3348 = vmatpush3.msra.mxu0 %v3140_v2 }
 0x2ec   :  { %v6218_v3 = vadd.f32 %v1503_v39, %v6095_v42  ;;  %3349 = vmatprep.subr.mxu0 %v6846_v43 }
 0x2ed   :  { %v1505_v30 = vpop.f32.mrf.mxu1  ;;  %3350 = vmatpush3.msra.mxu0 %v3139_v56 }
 0x2ee   :  { %v6231_v4 = vadd.f32 %v1505_v30, %v6097_v54  ;;  %v2364_v54 = vld [vmem:[%s6694_s5] sm:$0xff]  ;;  %3351 = vmatprep.subr.mxu0 %v6846_v43 }
 0x2ef   :  { %v1509_v38 = vpop.f32.mrf.mxu1  ;;  %3387 = vmatpush3.msra.mxu1 %v2364_v54 }
 0x2f0   :  { %v6242_v22 = vadd.f32 %v1509_v38, %v6099_v32  ;;  %3426 = vmatprep.subr.mxu1 %v6846_v43 }
 0x2f1   :  { %v1511_v7 = vpop.f32.mrf.mxu1 }
 0x2f2   :  { %v1531_v42 = vadd.f32 %v1511_v7, %v6101_v55  ;;  %v1723_v55 = vpop.f32.mrf.mxu0 }
 0x2f3   :  { %v1515_v6 = vpop.f32.mrf.mxu1 }
 0x2f4   :  { %v6264_v32 = vadd.f32 %v1515_v6, %v6103_v31  ;;  %v3138_v31 = vld [vmem:[%s6694_s5 + $0x80] sm:$0xff]  ;;  %v1935_v11 = vpop.f32.mrf.mxu0 }
 0x2f5   :  { %v1517_v27 = vpop.f32.mrf.mxu1  ;;  %3352 = vmatpush3.msra.mxu0 %v3138_v31 }
 0x2f6   :  { %v6274_v23 = vadd.f32 %v1517_v27, %v6107_v47  ;;  %3391 = vmatprep.subr.mxu0 %v6846_v43  ;;  %v1937_v19 = vpop.f32.mrf.mxu0 }
 0x2f7   :  { %v1521_v5 = vpop.f32.mrf.mxu1 }
 0x2f8   :  { %v1534_v8 = vadd.f32 %v1521_v5, %v6114_v53  ;;  %v1941_v51 = vpop.f32.mrf.mxu0 }
 0x2f9   :  { %v1523_v37 = vpop.f32.mrf.mxu1 }
 0x2fa   :  { %v1535_v47 = vadd.f32 %v1523_v37, %v6120_v25  ;;  %v1943_v57 = vpop.f32.mrf.mxu0 }
 0x2fc   :  { %v6285_v45 = vpop.f32.mrf.mxu0 }
 0x2fe   :  { %v6287_v12 = vpop.f32.mrf.mxu0 }
 0x300   :  { %v6289_v0 = vpop.f32.mrf.mxu0 }
 0x302   :  { %v6294_v46 = vpop.f32.mrf.mxu0 }
 0x304   :  { %v6298_v40 = vpop.f32.mrf.mxu0 }
 0x306   :  { %v1961_v24 = vpop.f32.mrf.mxu0 }
 0x307   :  { %v1602_v33 = vpop.f32.mrf.mxu1 }
 0x309   :  { %v1604_v34 = vpop.f32.mrf.mxu1 }
 0x30b   :  { %v1608_v15 = vpop.f32.mrf.mxu1 }
 0x30d   :  { %v1610_v58 = vpop.f32.mrf.mxu1 }
 0x30e   :  { %v1706_v43 = vadd.f32 %v6153_v28, %v1610_v58 }
 0x30f   :  { %v1614_v60 = vpop.f32.mrf.mxu1 }
 0x311   :  { %v1616_v53 = vpop.f32.mrf.mxu1 }
 0x312   :  { %v6292_v44 = vadd.f32 %v6189_v52, %v1616_v53 }
 0x313   :  { %v1620_v25 = vpop.f32.mrf.mxu1 }
 0x315   :  { %v6296_v10 = vpop.f32.mrf.mxu1 }
 0x317   :  { %v6300_v41 = vpop.f32.mrf.mxu1 }
 0x319   :  { %v1628_v35 = vpop.f32.mrf.mxu1 }
 0x31a   :  { %v1724_v50 = vadd.f32 %v1723_v55, %v1628_v35 }
 0x31c   :  { %v6302_v36 = vadd.f32 %v1961_v24, %v1724_v50  ;;  %v1698_v24 = vadd.f32 %v6105_v49, %v1602_v33 }
 0x31e   :  { %6880 = vst [vmem:[#allocation3_spill] sm:$0xff] %v6302_v36 }
 0x327   :  { %v1830_v63 = vpop.f32.mrf.mxu1 }
 0x329   :  { %v1832_v48 = vpop.f32.mrf.mxu1 }
 0x32a   :  { %v1860_v49 = vadd.f32 %v1832_v48, %v6207_v26  ;;  %v1722_v48 = vadd.f32 %v6252_v20, %v6300_v41 }
 0x32b   :  { %v1836_v39 = vpop.f32.mrf.mxu1 }
 0x32c   :  { %v1861_v26 = vadd.f32 %v1836_v39, %v6218_v3 }
 0x32d   :  { %v1838_v13 = vpop.f32.mrf.mxu1 }
 0x32f   :  { %v1842_v52 = vpop.f32.mrf.mxu1 }
 0x330   :  { %v6305_v61 = vadd.f32 %v1842_v52, %v6242_v22  ;;  %v2183_v22 = vpop.f32.mrf.mxu0 }
 0x331   :  { %v1844_v30 = vpop.f32.mrf.mxu1 }
 0x332   :  { %v6307_v17 = vadd.f32 %v1844_v30, %v1531_v42  ;;  %v2185_v37 = vpop.f32.mrf.mxu0  ;;  %v1700_v30 = vadd.f32 %v6112_v14, %v1604_v34 }
 0x333   :  { %v6309_v21 = vpop.f32.mrf.mxu1 }
 0x335   :  { %v6311_v38 = vpop.f32.mrf.mxu1 }
 0x337   :  { %v1854_v29 = vpop.f32.mrf.mxu1 }
 0x338   :  { %v1867_v62 = vadd.f32 %v1854_v29, %v1534_v8  ;;  %v1964_v29 = vadd.f32 %v1935_v11, %v1698_v24 }
 0x339   :  { %v1856_v7 = vpop.f32.mrf.mxu1 }
 0x33a   :  { %v1868_v2 = vadd.f32 %v1856_v7, %v1535_v47  ;;  %v2189_v47 = vpop.f32.mrf.mxu0  ;;  %v1704_v7 = vadd.f32 %v6129_v9, %v1608_v15  ;;  %v1716_v9 = vadd.f32 %v6204_v16, %v1620_v25 }
 0x33c   :  { %v2191_v52 = vpop.f32.mrf.mxu0 }
 0x33e   :  { %v2195_v36 = vpop.f32.mrf.mxu0 }
 0x347   :  { %v2078_v54 = vpop.f32.mrf.mxu1 }
 0x349   :  { %v2080_v6 = vpop.f32.mrf.mxu1 }
 0x34b   :  { %v2084_v56 = vpop.f32.mrf.mxu1 }
 0x34c   :  { %v2109_v3 = vadd.f32 %v2084_v56, %v1861_v26 }
 0x34d   :  { %v2086_v55 = vpop.f32.mrf.mxu1 }
 0x34f   :  { %v2090_v27 = vpop.f32.mrf.mxu1 }
 0x351   :  { %v6313_v31 = vpop.f32.mrf.mxu1 }
 0x352   :  { %v2112_v56 = vadd.f32 %v6313_v31, %v6307_v17 }
 0x353   :  { %v6315_v5 = vpop.f32.mrf.mxu1 }
 0x354   :  { %6881 = vst [vmem:[#allocation50_spill] sm:$0xff] %v6315_v5  ;;  %v1710_v5 = vadd.f32 %v6171_v1, %v1614_v60 }
 0x355   :  { %v6317_v42 = vpop.f32.mrf.mxu1 }
 0x356   :  { %6882 = vst [vmem:[#allocation4_spill] sm:$0xff] %v6317_v42  ;;  %v1965_v42 = vadd.f32 %v1937_v19, %v1700_v30  ;;  %v1968_v11 = vadd.f32 %v6285_v45, %v1710_v5  ;;  %v2108_v19 = vadd.f32 %v2080_v6, %v1860_v49  ;;  %v1862_v45 = vadd.f32 %v1838_v13, %v6231_v4 }
 0x357   :  { %v2102_v53 = vpop.f32.mrf.mxu1  ;;  %v2111_v6 = vadd.f32 %v2090_v27, %v6305_v61  ;;  %v6887_v49 = vmov 0.0  }
 0x358   :  { %v6319_v35 = vadd.f32 %v2102_v53, %v1867_v62  ;;  %v1966_v62 = vadd.f32 %v1941_v51, %v1704_v7  ;;  %v2212_v53 = vadd.f32 %v2183_v22, %v1964_v29  ;;  %v2213_v14 = vadd.f32 %v2185_v37, %v1965_v42  ;;  %v3184_v7 = vld [vmem:[%s6694_s5 + $0x1f0] sm:$0xff] }
 0x359   :  { %v2104_v50 = vpop.f32.mrf.mxu1  ;;  %v1972_v37 = vadd.f32 %v6298_v40, %v1722_v48  ;;  %v1866_v40 = vadd.f32 %v6311_v38, %v6274_v23 }
 0x35a   :  { %6883 = vst [vmem:[#allocation5_spill] sm:$0xff] %v6319_v35  ;;  %v6321_v8 = vadd.f32 %v2104_v50, %v1868_v2  ;;  %v2197_v35 = vpop.f32.mrf.mxu0  ;;  %v1967_v2 = vadd.f32 %v1943_v57, %v1706_v43  ;;  %v2214_v1 = vadd.f32 %v2189_v47, %v1966_v62  ;;  %v1969_v43 = vadd.f32 %v6287_v12, %v6292_v44  ;;  %v6344_v12 = vld [vmem:[%s6695_s4] ss:$0 sm:$0xff] }
 0x35b   :  { %v2216_v44 = vadd.f32 %v2195_v36, %v1968_v11  ;;  %v1865_v36 = vadd.f32 %v6309_v21, %v6264_v32  ;;  %v6885_v32 = vld [vmem:[#allocation50_spill] sm:$0xff] }
 0x35c   :  { %6884 = vst [vmem:[#allocation52_spill] sm:$0xff] %v6321_v8  ;;  %v1859_v8 = vadd.f32 %v1830_v63, %v6194_v18  ;;  %v2201_v51 = vpop.f32.mrf.mxu0  ;;  %v1718_v18 = vadd.f32 %v6228_v59, %v6296_v10  ;;  %v2215_v58 = vadd.f32 %v2191_v52, %v1967_v2  ;;  %v1970_v63 = vadd.f32 %v6289_v0, %v1716_v9  ;;  %v3169_v11 = vld [vmem:[%s6694_s5 + $0x178] sm:$0xff]  ;;  %v3183_v9 = vld [vmem:[%s6694_s5 + $0x1e8] sm:$0xff] }
 0x35d   :  { %v2110_v10 = vadd.f32 %v2086_v55, %v1862_v45  ;;  %v2217_v22 = vadd.f32 %v2197_v35, %v1969_v43  ;;  %v3185_v35 = vld [vmem:[%s6694_s5 + $0x1f8] sm:$0xff]  ;;  %v2113_v21 = vadd.f32 %v6885_v32, %v1865_v36  ;;  %v6886_v62 = vld [vmem:[#allocation4_spill] sm:$0xff]  ;;  %v3168_v43 = vld [vmem:[%s6694_s5 + $0x170] sm:$0xff] }
 0x35e   :  { %v2107_v28 = vadd.f32 %v2078_v54, %v1859_v8  ;;  %v2203_v4 = vpop.f32.mrf.mxu0  ;;  %v1971_v13 = vadd.f32 %v6294_v46, %v1718_v18  ;;  %v2218_v8 = vadd.f32 %v2201_v51, %v1970_v63  ;;  %v3182_v18 = vld [vmem:[%s6694_s5 + $0x1e0] sm:$0xff]  ;;  %v3159_v36 = vld [vmem:[%s6694_s5 + $0x128] sm:$0xff]  ;;  %v3201_v32 = vld [vmem:[%s6694_s5 + $0x278] sm:$0xff] }
 0x360   :  { %v2207_v24 = vpop.f32.mrf.mxu0  ;;  %v2219_v30 = vadd.f32 %v2203_v4, %v1971_v13  ;;  %v3164_v4 = vld [vmem:[%s6694_s5 + $0x150] sm:$0xff]  ;;  %v3178_v13 = vld [vmem:[%s6694_s5 + $0x1c0] sm:$0xff] }
 0x363   :  { %v6890_v63 = vld [vmem:[#allocation52_spill] sm:$0xff] }
 0x367   :  { %v2293_v50 = vpop.f32.mrf.mxu1 }
 0x368   :  { %v2322_v33 = vadd.f32 %v2293_v50, %v2212_v53  ;;  %v2114_v53 = vadd.f32 %v6886_v62, %v1866_v40  ;;  %v2220_v50 = vadd.f32 %v2207_v24, %v1972_v37  ;;  %v3174_v37 = vld [vmem:[%s6694_s5 + $0x1a0] sm:$0xff]  ;;  %v3195_v62 = vld [vmem:[%s6694_s5 + $0x248] sm:$0xff] }
 0x369   :  { %v2295_v34 = vpop.f32.mrf.mxu1 }
 0x36a   :  { %v2323_v15 = vadd.f32 %v2295_v34, %v2213_v14  ;;  %v2332_v60 = vmax.f32 %v2107_v28, %v2322_v33  ;;  %v2209_v34 = vpop.f32.mrf.mxu0 }
 0x36b   :  { %v2299_v57 = vpop.f32.mrf.mxu1 }
 0x36c   :  { %v2333_v16 = vmax.f32 %v2108_v19, %v2323_v15  ;;  %v2324_v25 = vadd.f32 %v2299_v57, %v2214_v1  ;;  %v6888_v1 = vld [vmem:[#allocation3_spill] sm:$0xff] }
 0x36d   :  { %v2301_v59 = vpop.f32.mrf.mxu1  ;;  %v2221_v51 = vadd.f32 %v2209_v34, %v6888_v1  ;;  %v2821_v1 = vld [vmem:[%s6696_s7 + $0x58] sm:$0xff] }
 0x36e   :  { %v2342_v39 = vmax.f32 %v2332_v60, %v2333_v16  ;;  %v2325_v54 = vadd.f32 %v2301_v59, %v2215_v58  ;;  %v2334_v41 = vmax.f32 %v2109_v3, %v2324_v25  ;;  %v6889_v58 = vld [vmem:[#allocation5_spill] sm:$0xff]  ;;  %v3167_v16 = vld [vmem:[%s6694_s5 + $0x168] sm:$0xff]  ;;  %v3181_v25 = vld [vmem:[%s6694_s5 + $0x1d8] sm:$0xff] }
 0x36f   :  { %v2305_v0 = vpop.f32.mrf.mxu1  ;;  %v3166_v59 = vld [vmem:[%s6694_s5 + $0x160] sm:$0xff] }
 0x370   :  { %v2354_v20 = vadd.f32 %v6344_v12, %v2342_v39  ;;  %v2335_v5 = vmax.f32 %v2110_v10, %v2325_v54  ;;  %v2326_v42 = vadd.f32 %v2305_v0, %v2216_v44  ;;  %v3180_v44 = vld [vmem:[%s6694_s5 + $0x1d0] sm:$0xff]  ;;  %v3165_v10 = vld [vmem:[%s6694_s5 + $0x158] sm:$0xff]  ;;  %v3179_v39 = vld [vmem:[%s6694_s5 + $0x1c8] sm:$0xff] }
 0x371   :  { %v2307_v55 = vpop.f32.mrf.mxu1  ;;  %v3177_v0 = vld [vmem:[%s6694_s5 + $0x1b8] sm:$0xff] }
 0x372   :  { %v2359_v46 = vmax.f32 %v2354_v20, 0.0  ;;  %v2343_v47 = vmax.f32 %v2334_v41, %v2335_v5  ;;  %v2336_v61 = vmax.f32 %v2111_v6, %v2326_v42  ;;  %v2327_v27 = vadd.f32 %v2307_v55, %v2217_v22  ;;  %v3163_v6 = vld [vmem:[%s6694_s5 + $0x148] sm:$0xff]  ;;  %v3162_v22 = vld [vmem:[%s6694_s5 + $0x140] sm:$0xff]  ;;  %v3176_v20 = vld [vmem:[%s6694_s5 + $0x1b0] sm:$0xff] }
 0x373   :  { %v2311_v52 = vpop.f32.mrf.mxu1  ;;  %v3161_v41 = vld [vmem:[%s6694_s5 + $0x138] sm:$0xff]  ;;  %v3175_v5 = vld [vmem:[%s6694_s5 + $0x1a8] sm:$0xff]  ;;  %v3160_v42 = vld [vmem:[%s6694_s5 + $0x130] sm:$0xff] }
 0x374   :  { %v2355_v17 = vadd.f32 %v6344_v12, %v2343_v47  ;;  %v2337_v31 = vmax.f32 %v2112_v56, %v2327_v27  ;;  %v2328_v29 = vadd.f32 %v2311_v52, %v2218_v8  ;;  %3389 = vmatmul.mubr.f32.vlgmr.msra.gmra.mxu1 %v2359_v46  ;;  %v3173_v56 = vld [vmem:[%s6694_s5 + $0x198] sm:$0xff]  ;;  %v3158_v55 = vld [vmem:[%s6694_s5 + $0x120] sm:$0xff]  ;;  %v3172_v8 = vld [vmem:[%s6694_s5 + $0x190] sm:$0xff] }
 0x375   :  { %3427 = vmatpush3.msra.mxu1 %v3185_v35  ;;  %v2313_v2 = vpop.f32.mrf.mxu1  ;;  %3458 = vmatprep.mubr.msk.f32.mxu1 %vm3589_vm0, %v6887_v49  ;;  %v3157_v47 = vld [vmem:[%s6694_s5 + $0x118] sm:$0xff]  ;;  %v3156_v27 = vld [vmem:[%s6694_s5 + $0x110] sm:$0xff]  ;;  %v3170_v35 = vld [vmem:[%s6694_s5 + $0x180] sm:$0xff] }
 0x376   :  { %v2360_v23 = vmax.f32 %v2355_v17, 0.0  ;;  %v6367_v38 = vmax.f32 %v2336_v61, %v2337_v31  ;;  %v2338_v33 = vmax.f32 %v2113_v21, %v2328_v29  ;;  %v2329_v14 = vadd.f32 %v2313_v2, %v2219_v30  ;;  %3428 = vmatprep.subr.mxu1 %v6887_v49  ;;  %v3171_v61 = vld [vmem:[%s6694_s5 + $0x188] sm:$0xff]  ;;  %v3154_v30 = vld [vmem:[%s6694_s5 + $0x100] sm:$0xff]  ;;  %v3200_v21 = vld [vmem:[%s6694_s5 + $0x270] sm:$0xff] }
 0x377   :  { %3429 = vmatpush3.msra.mxu1 %v3184_v7  ;;  %v2317_v28 = vpop.f32.mrf.mxu1  ;;  %v3155_v52 = vld [vmem:[%s6694_s5 + $0x108] sm:$0xff]  ;;  %v3198_v31 = vld [vmem:[%s6694_s5 + $0x260] sm:$0xff]  ;;  %v3197_v29 = vld [vmem:[%s6694_s5 + $0x258] sm:$0xff] }
 0x378   :  { %v2339_v19 = vmax.f32 %v2114_v53, %v2329_v14  ;;  %v2330_v15 = vadd.f32 %v2317_v28, %v2220_v50  ;;  %3430 = vmatprep.subr.mxu1 %v6887_v49  ;;  %3354 = vmatmul.mubr.f32.vlgmr.msra.gmra.mxu0 %v2360_v23  ;;  %v2356_v24 = vadd.f32 %v6344_v12, %v6367_v38  ;;  %v3199_v17 = vld [vmem:[%s6694_s5 + $0x268] sm:$0xff]  ;;  %v3196_v7 = vld [vmem:[%s6694_s5 + $0x250] sm:$0xff]  ;;  %v3194_v53 = vld [vmem:[%s6694_s5 + $0x240] sm:$0xff] }
 0x379   :  { %3392 = vmatpush3.msra.mxu0 %v3169_v11  ;;  %3431 = vmatpush3.msra.mxu1 %v3183_v9  ;;  %v2319_v26 = vpop.f32.mrf.mxu1  ;;  %v3193_v2 = vld [vmem:[%s6694_s5 + $0x238] sm:$0xff]  ;;  %v3192_v50 = vld [vmem:[%s6694_s5 + $0x230] sm:$0xff]  ;;  %v3191_v23 = vld [vmem:[%s6694_s5 + $0x228] sm:$0xff] }
 0x37a   :  { %v6384_v57 = vmax.f32 %v2338_v33, %v2339_v19  ;;  %v2340_v45 = vmax.f32 %v6889_v58, %v2330_v15  ;;  %v2331_v60 = vadd.f32 %v2319_v26, %v2221_v51  ;;  %3393 = vmatprep.subr.mxu0 %v6887_v49  ;;  %3432 = vmatprep.subr.mxu1 %v6887_v49  ;;  %v3190_v38 = vld [vmem:[%s6694_s5 + $0x220] sm:$0xff]  ;;  %v3189_v33 = vld [vmem:[%s6694_s5 + $0x218] sm:$0xff]  ;;  %v3188_v14 = vld [vmem:[%s6694_s5 + $0x210] sm:$0xff] }
 0x37b   :  { %3394 = vmatpush3.msra.mxu0 %v3168_v43  ;;  %3433 = vmatpush3.msra.mxu1 %v3182_v18  ;;  %v3187_v11 = vld [vmem:[%s6694_s5 + $0x208] sm:$0xff]  ;;  %v3186_v9 = vld [vmem:[%s6694_s5 + $0x200] sm:$0xff]  ;;  %v2824_v28 = vld [vmem:[%s6696_s7 + $0x70] sm:$0xff] }
 0x37c   :  { %v2341_v48 = vmax.f32 %v6890_v63, %v2331_v60  ;;  %3395 = vmatprep.subr.mxu0 %v6887_v49  ;;  %3434 = vmatprep.subr.mxu1 %v6887_v49  ;;  %v2357_v46 = vadd.f32 %v6344_v12, %v6384_v57  ;;  %v2823_v19 = vld [vmem:[%s6696_s7 + $0x68] sm:$0xff]  ;;  %v2822_v15 = vld [vmem:[%s6696_s7 + $0x60] sm:$0xff]  ;;  %v2820_v51 = vld [vmem:[%s6696_s7 + $0x50] sm:$0xff] }
 0x37d   :  { %3396 = vmatpush3.msra.mxu0 %v3167_v16  ;;  %3435 = vmatpush3.msra.mxu1 %v3181_v25  ;;  %v2819_v43 = vld [vmem:[%s6696_s7 + $0x48] sm:$0xff]  ;;  %v2818_v18 = vld [vmem:[%s6696_s7 + $0x40] sm:$0xff]  ;;  %v2817_v26 = vld [vmem:[%s6696_s7 + $0x38] sm:$0xff] }
 0x37e   :  { %v2346_v3 = vmax.f32 %v2340_v45, %v2341_v48  ;;  %3397 = vmatprep.subr.mxu0 %v6887_v49  ;;  %3436 = vmatprep.subr.mxu1 %v6887_v49  ;;  %v2362_v40 = vmax.f32 %v2357_v46, 0.0  ;;  %v2816_v57 = vld [vmem:[%s6696_s7 + $0x30] sm:$0xff]  ;;  %v2815_v58 = vld [vmem:[%s6696_s7 + $0x28] sm:$0xff]  ;;  %v2814_v45 = vld [vmem:[%s6696_s7 + $0x20] sm:$0xff] }
 0x37f   :  { %3398 = vmatpush3.msra.mxu0 %v3166_v59  ;;  %3437 = vmatpush3.msra.mxu1 %v3180_v44  ;;  %v2813_v60 = vld [vmem:[%s6696_s7 + $0x18] sm:$0xff]  ;;  %v2812_v16 = vld [vmem:[%s6696_s7 + $0x10] sm:$0xff]  ;;  %v2811_v25 = vld [vmem:[%s6696_s7 + $0x8] sm:$0xff] }
 0x380   :  { %v6413_v54 = vadd.f32 %v6344_v12, %v2346_v3  ;;  %3399 = vmatprep.subr.mxu0 %v6887_v49  ;;  %3438 = vmatprep.subr.mxu1 %v6887_v49  ;;  %v2361_v12 = vmax.f32 %v2356_v24, 0.0  ;;  %v2810_v63 = vld [vmem:[%s6696_s7] sm:$0xff]  ;;  %v2917_v48 = vld [vmem:[%s6697_s9 + $0x50] sm:$0xf]  ;;  %v2916_v59 = vld [vmem:[%s6697_s9 + $0x48] sm:$0xff] }
 0x381   :  { %3400 = vmatpush3.msra.mxu0 %v3165_v10  ;;  %3439 = vmatpush3.msra.mxu1 %v3179_v39  ;;  %v2915_v44 = vld [vmem:[%s6697_s9 + $0x40] sm:$0xff]  ;;  %v2914_v3 = vld [vmem:[%s6697_s9 + $0x38] sm:$0xff]  ;;  %v2913_v10 = vld [vmem:[%s6697_s9 + $0x30] sm:$0xff] }
 0x382   :  { %3401 = vmatprep.subr.mxu0 %v6887_v49  ;;  %3440 = vmatprep.subr.mxu1 %v6887_v49  ;;  %v2363_v34 = vmax.f32 %v6413_v54, 0.0  ;;  %v2912_v39 = vld [vmem:[%s6697_s9 + $0x28] sm:$0xff]  ;;  %v2911_v54 = vld [vmem:[%s6697_s9 + $0x20] sm:$0xff] }
 0x383   :  { %3402 = vmatpush3.msra.mxu0 %v3164_v4  ;;  %3441 = vmatpush3.msra.mxu1 %v3178_v13  ;;  %v2910_v4 = vld [vmem:[%s6697_s9 + $0x18] sm:$0xff]  ;;  %v2908_v24 = vld [vmem:[%s6697_s9 + $0x8] sm:$0xff] }
 0x384   :  { %3403 = vmatprep.subr.mxu0 %v6887_v49  ;;  %3442 = vmatprep.subr.mxu1 %v6887_v49 }
 0x385   :  { %3404 = vmatpush3.msra.mxu0 %v3163_v6  ;;  %3443 = vmatpush3.msra.mxu1 %v3177_v0 }
 0x386   :  { %3405 = vmatprep.subr.mxu0 %v6887_v49  ;;  %3444 = vmatprep.subr.mxu1 %v6887_v49 }
 0x387   :  { %3406 = vmatpush3.msra.mxu0 %v3162_v22  ;;  %3445 = vmatpush3.msra.mxu1 %v3176_v20 }
 0x388   :  { %3407 = vmatprep.subr.mxu0 %v6887_v49  ;;  %3446 = vmatprep.subr.mxu1 %v6887_v49 }
 0x389   :  { %3408 = vmatpush3.msra.mxu0 %v3161_v41  ;;  %3447 = vmatpush3.msra.mxu1 %v3175_v5 }
 0x38a   :  { %3409 = vmatprep.subr.mxu0 %v6887_v49  ;;  %3448 = vmatprep.subr.mxu1 %v6887_v49 }
 0x38b   :  { %3410 = vmatpush3.msra.mxu0 %v3160_v42  ;;  %3449 = vmatpush3.msra.mxu1 %v3174_v37 }
 0x38c   :  { %3411 = vmatprep.subr.mxu0 %v6887_v49  ;;  %3450 = vmatprep.subr.mxu1 %v6887_v49 }
 0x38d   :  { %3412 = vmatpush3.msra.mxu0 %v3159_v36  ;;  %3451 = vmatpush3.msra.mxu1 %v3173_v56 }
 0x38e   :  { %3413 = vmatprep.subr.mxu0 %v6887_v49  ;;  %3452 = vmatprep.subr.mxu1 %v6887_v49 }
 0x38f   :  { %3414 = vmatpush3.msra.mxu0 %v3158_v55  ;;  %3453 = vmatpush3.msra.mxu1 %v3172_v8  ;;  %v3202_v8 = vld [vmem:[%s6698_s6] ss:$0 sm:$0xff] }
 0x390   :  { %3415 = vmatprep.subr.mxu0 %v6887_v49  ;;  %3454 = vmatprep.subr.mxu1 %v6887_v49 }
 0x391   :  { %3416 = vmatpush3.msra.mxu0 %v3157_v47  ;;  %3455 = vmatpush3.msra.mxu1 %v3171_v61 }
 0x392   :  { %3417 = vmatprep.subr.mxu0 %v6887_v49  ;;  %3456 = vmatprep.subr.mxu1 %v6887_v49 }
 0x393   :  { %3418 = vmatpush3.msra.mxu0 %v3156_v27  ;;  %3457 = vmatpush3.msra.mxu1 %v3170_v35  ;;  %v2909_v35 = vld [vmem:[%s6697_s9 + $0x10] sm:$0xff] }
 0x394   :  { %3419 = vmatprep.subr.mxu0 %v6887_v49  ;;  %3459 = vmatmul.mubr.f32.vlgmr.msra.gmra.mxu1 %v2362_v40  ;;  %v2907_v40 = vld [vmem:[%s6697_s9] sm:$0xff] }
 0x395   :  { %3420 = vmatpush3.msra.mxu0 %v3155_v52  ;;  %3423 = vmatprep.mubr.msk.f32.mxu0 %vm3589_vm0, %v6887_v49  ;;  %v3203_v52 = vld [vmem:[%s6699_s8] ss:$0 sm:$0xff] }
 0x396   :  { %3421 = vmatprep.subr.mxu0 %v6887_v49  ;;  %3496 = vmatprep.subr.mxu1 %v6887_v49 }
 0x397   :  { %3422 = vmatpush3.msra.mxu0 %v3154_v30  ;;  %3526 = vmatprep.mubr.msk.f32.mxu1 %vm3589_vm0, %v6887_v49 }
 0x398   :  { %3424 = vmatmul.mubr.f32.vlgmr.msra.gmra.mxu0 %v2361_v12  ;;  %3461 = vmatprep.subr.mxu0 %v6887_v49 }
 0x399   :  { %3462 = vmatpush3.msra.mxu0 %v3201_v32  ;;  %3493 = vmatprep.mubr.msk.f32.mxu0 %vm3589_vm0, %v6887_v49 }
 0x39a   :  { %3463 = vmatprep.subr.mxu0 %v6887_v49  ;;  %3497 = vmatpush3.msra.mxu1 %v2824_v28 }
 0x39b   :  { %3464 = vmatpush3.msra.mxu0 %v3200_v21  ;;  %3498 = vmatprep.subr.mxu1 %v6887_v49 }
 0x39c   :  { %3465 = vmatprep.subr.mxu0 %v6887_v49  ;;  %3499 = vmatpush3.msra.mxu1 %v2823_v19 }
 0x39d   :  { %3466 = vmatpush3.msra.mxu0 %v3199_v17  ;;  %3500 = vmatprep.subr.mxu1 %v6887_v49  ;;  %v3205_v17 = vld [vmem:[%s6700_s10] ss:$0 sm:$0xff] }
 0x39e   :  { %3467 = vmatprep.subr.mxu0 %v6887_v49  ;;  %3501 = vmatpush3.msra.mxu1 %v2822_v15 }
 0x39f   :  { %3468 = vmatpush3.msra.mxu0 %v3198_v31  ;;  %3502 = vmatprep.subr.mxu1 %v6887_v49 }
 0x3a0   :  { %3469 = vmatprep.subr.mxu0 %v6887_v49  ;;  %3503 = vmatpush3.msra.mxu1 %v2821_v1 }
 0x3a1   :  { %3470 = vmatpush3.msra.mxu0 %v3197_v29  ;;  %3504 = vmatprep.subr.mxu1 %v6887_v49 }
 0x3a2   :  { %3471 = vmatprep.subr.mxu0 %v6887_v49  ;;  %3505 = vmatpush3.msra.mxu1 %v2820_v51 }
 0x3a3   :  { %3472 = vmatpush3.msra.mxu0 %v3196_v7  ;;  %3506 = vmatprep.subr.mxu1 %v6887_v49 }
 0x3a4   :  { %3473 = vmatprep.subr.mxu0 %v6887_v49  ;;  %3507 = vmatpush3.msra.mxu1 %v2819_v43 }
 0x3a5   :  { %3474 = vmatpush3.msra.mxu0 %v3195_v62  ;;  %3508 = vmatprep.subr.mxu1 %v6887_v49 }
 0x3a6   :  { %3475 = vmatprep.subr.mxu0 %v6887_v49  ;;  %3509 = vmatpush3.msra.mxu1 %v2818_v18 }
 0x3a7   :  { %3476 = vmatpush3.msra.mxu0 %v3194_v53  ;;  %3510 = vmatprep.subr.mxu1 %v6887_v49 }
 0x3a8   :  { %3477 = vmatprep.subr.mxu0 %v6887_v49  ;;  %3511 = vmatpush3.msra.mxu1 %v2817_v26 }
 0x3a9   :  { %3478 = vmatpush3.msra.mxu0 %v3193_v2  ;;  %3512 = vmatprep.subr.mxu1 %v6887_v49 }
 0x3aa   :  { %3479 = vmatprep.subr.mxu0 %v6887_v49  ;;  %3513 = vmatpush3.msra.mxu1 %v2816_v57 }
 0x3ab   :  { %3480 = vmatpush3.msra.mxu0 %v3192_v50  ;;  %3514 = vmatprep.subr.mxu1 %v6887_v49 }
 0x3ac   :  { %3481 = vmatprep.subr.mxu0 %v6887_v49  ;;  %3515 = vmatpush3.msra.mxu1 %v2815_v58 }
 0x3ad   :  { %3482 = vmatpush3.msra.mxu0 %v3191_v23  ;;  %3516 = vmatprep.subr.mxu1 %v6887_v49 }
 0x3ae   :  { %3483 = vmatprep.subr.mxu0 %v6887_v49  ;;  %3517 = vmatpush3.msra.mxu1 %v2814_v45 }
 0x3af   :  { %3484 = vmatpush3.msra.mxu0 %v3190_v38  ;;  %3518 = vmatprep.subr.mxu1 %v6887_v49 }
 0x3b0   :  { %3485 = vmatprep.subr.mxu0 %v6887_v49  ;;  %3519 = vmatpush3.msra.mxu1 %v2813_v60 }
 0x3b1   :  { %3486 = vmatpush3.msra.mxu0 %v3189_v33  ;;  %3520 = vmatprep.subr.mxu1 %v6887_v49 }
 0x3b2   :  { %3487 = vmatprep.subr.mxu0 %v6887_v49  ;;  %3521 = vmatpush3.msra.mxu1 %v2812_v16 }
 0x3b3   :  { %3488 = vmatpush3.msra.mxu0 %v3188_v14  ;;  %3522 = vmatprep.subr.mxu1 %v6887_v49 }
 0x3b4   :  { %3489 = vmatprep.subr.mxu0 %v6887_v49  ;;  %3523 = vmatpush3.msra.mxu1 %v2811_v25 }
 0x3b5   :  { %3490 = vmatpush3.msra.mxu0 %v3187_v11  ;;  %3524 = vmatprep.subr.mxu1 %v6887_v49 }
 0x3b6   :  { %3491 = vmatprep.subr.mxu0 %v6887_v49  ;;  %3525 = vmatpush3.msra.mxu1 %v2810_v63 }
 0x3b7   :  { %3492 = vmatpush3.msra.mxu0 %v3186_v9 }
 0x3b8   :  { %3494 = vmatmul.mubr.f32.vlgmr.msra.gmra.mxu0 %v2363_v34  ;;  %3529 = vmatprep.subr.mxu0 %v6887_v49 }
 0x3b9   :  { %3551 = vmatprep.mubr.msk.f32.mxu0 %vm3589_vm0, %v6887_v49  ;;  %3530 = vmatpush3.msk.msra.mxu0 %vm2929_vm1, %v2917_v48 }
 0x3ba   :  { %3531 = vmatprep.subr.mxu0 %v6887_v49 }
 0x3bb   :  { %3532 = vmatpush3.msra.mxu0 %v2916_v59 }
 0x3bc   :  { %3533 = vmatprep.subr.mxu0 %v6887_v49 }
 0x3bd   :  { %3534 = vmatpush3.msra.mxu0 %v2915_v44 }
 0x3be   :  { %3535 = vmatprep.subr.mxu0 %v6887_v49 }
 0x3bf   :  { %3536 = vmatpush3.msra.mxu0 %v2914_v3 }
 0x3c0   :  { %3537 = vmatprep.subr.mxu0 %v6887_v49 }
 0x3c1   :  { %3538 = vmatpush3.msra.mxu0 %v2913_v10 }
 0x3c2   :  { %3539 = vmatprep.subr.mxu0 %v6887_v49 }
 0x3c3   :  { %3540 = vmatpush3.msra.mxu0 %v2912_v39 }
 0x3c4   :  { %3541 = vmatprep.subr.mxu0 %v6887_v49 }
 0x3c5   :  { %3542 = vmatpush3.msra.mxu0 %v2911_v54 }
 0x3c6   :  { %3543 = vmatprep.subr.mxu0 %v6887_v49 }
 0x3c7   :  { %3544 = vmatpush3.msra.mxu0 %v2910_v4 }
 0x3c8   :  { %3545 = vmatprep.subr.mxu0 %v6887_v49 }
 0x3c9   :  { %3546 = vmatpush3.msra.mxu0 %v2909_v35 }
 0x3ca   :  { %3547 = vmatprep.subr.mxu0 %v6887_v49 }
 0x3cb   :  { %3548 = vmatpush3.msra.mxu0 %v2908_v24 }
 0x3cc   :  { %3549 = vmatprep.subr.mxu0 %v6887_v49 }
 0x3cd   :  { %3550 = vmatpush3.msra.mxu0 %v2907_v40 }
 0x434   :  { %v2533_v13 = vpop.f32.mrf.mxu1 }
 0x436   :  { %v3390_v6 = vpop.f32.mrf.mxu1 }
 0x438   :  { %v2463_v0 = vpop.f32.mrf.mxu0 }
 0x439   :  { %v2534_v37 = vadd.f32 %v2533_v13, %v2463_v0 }
 0x43a   :  { %v3355_v22 = vpop.f32.mrf.mxu0 }
 0x454   :  { %v2708_v20 = vpop.f32.mrf.mxu1 }
 0x456   :  { %v3460_v41 = vpop.f32.mrf.mxu1 }
 0x458   :  { %v2620_v5 = vpop.f32.mrf.mxu0 }
 0x459   :  { %v2624_v36 = vadd.f32 %v2620_v5, %v2534_v37 }
 0x45a   :  { %v3425_v42 = vpop.f32.mrf.mxu0 }
 0x45b   :  { %v2712_v56 = vadd.f32 %v2708_v20, %v2624_v36 }
 0x478   :  { %v2796_v55 = vpop.f32.mrf.mxu0 }
 0x479   :  { %v2800_v46 = vadd.f32 %v2796_v55, %v2712_v56 }
 0x47a   :  { %v3495_v47 = vpop.f32.mrf.mxu0 }
 0x47b   :  { %v2808_v61 = vadd.f32 %v3202_v8, %v2800_v46 }
 0x47d   :  { %v2809_v27 = vmax.f32 %v2808_v61, 0.0 }
 0x47f   :  { %3527 = vmatmul.mubr.msk.f32.vlgmr.msra.gmra.mxu1 %vm2832_vm2, %v2809_v27 }
 0x53f   :  { %v2902_v30 = vpop.f32.mrf.mxu1 }
 0x540   :  { %v2903_v12 = vadd.f32 %v3203_v52, %v2902_v30 }
 0x541   :  { %v3528_v32 = vpop.f32.mrf.mxu1 }
 0x542   :  { %v2906_v21 = vmax.f32 %v2903_v12, 0.0 }
 0x544   :  { %3552 = vmatmul.mubr.msk.f32.vlgmr.msra.gmra.mxu0 %vm2925_vm3, %v2906_v21 }
 0x604   :  { %v2999_v49 = vpop.f32.mrf.mxu0 }
 0x605   :  { %v3000_v31 = vadd.f32 %v3205_v17, %v2999_v49 }
 0x606   :  { %v3553_v29 = vpop.f32.mrf.mxu0 }
 0x607   :  { %3003 = vst [vmem:[%s6701_s11] sm:$0xff] %v3000_v31 }

</bundles_post_ra>
